<compile_context>
chip_gen: v5e
topology: v5e:2x2
jax: 0.10.0
libtpu: 0.0.40
codegen_flags: <defaults>
</compile_context>

<pallas_src>
import jax
import jax.numpy as jnp
from jax.experimental import pallas as pl
from jax.experimental.pallas import tpu as pltpu

KERNEL = 3  # all Conv1d layers use kernel_size=3


# ----------------------------- in-kernel helpers -----------------------------

def _conv1d(x, w_flat, b, pad):
    """x: (L, C_in) f32; w_flat: (KERNEL*C_in, C_out), row k*C_in+c == W[c_out, c, k];
    b: (1, C_out). Returns (L + 2*pad - 2, C_out) f32. Bias folded into first matmul."""
    L, c_in = x.shape
    l_out = L + 2 * pad - (KERNEL - 1)
    z = jnp.zeros((pad, c_in), x.dtype)
    xp = jnp.concatenate([z, x, z], axis=0)              # zero padding along length (sublanes)
    out = jnp.dot(xp[0:l_out, :], w_flat[0:c_in, :],
                  preferred_element_type=jnp.float32) + b
    for k in range(1, KERNEL):                           # conv = sum of shifted matmuls (MXU)
        out = out + jnp.dot(xp[k:k + l_out, :], w_flat[k * c_in:(k + 1) * c_in, :],
                            preferred_element_type=jnp.float32)
    return out


def _maxpool2_relu(x):
    """MaxPool1d(2, stride=2, floor) over length (sublane axis) then ReLU.
    Vectorized: even/odd rows picked via tiny 0/1 selection matmuls (MXU),
    one VPU max — no per-row slicing or concat."""
    L, _ = x.shape
    lp = L // 2
    p = jax.lax.broadcasted_iota(jnp.int32, (lp, L), 0)   # output row index
    j = jax.lax.broadcasted_iota(jnp.int32, (lp, L), 1)   # input row index
    s_even = (j == 2 * p).astype(x.dtype)
    s_odd = (j == 2 * p + 1).astype(x.dtype)
    pooled = jnp.maximum(
        jnp.dot(s_even, x, preferred_element_type=jnp.float32),
        jnp.dot(s_odd, x, preferred_element_type=jnp.float32))
    return jnp.maximum(pooled, 0.0)


# ------------------------------ fused Pallas kernel ---------------------------

def blosum_fused_kernel(apt_ref, pep_ref,
                        wa1_ref, ba1_ref, wa2_ref, ba2_ref,
                        wp1_ref, bp1_ref, wp2_ref, bp2_ref,
                        w1a_ref, w1p_ref, b1_ref,
                        w2_ref, b2_ref, w3_ref, b3_ref,
                        out_ref):
    # Conv branches. Activations laid out (L, C): length on sublanes, channels on lanes.
    ha = _maxpool2_relu(_conv1d(apt_ref[...], wa1_ref[...], ba1_ref[...], pad=2))  # (21, 25)
    ha = _maxpool2_relu(_conv1d(ha, wa2_ref[...], ba2_ref[...], pad=2))            # (11, 50)
    hp = _maxpool2_relu(_conv1d(pep_ref[...], wp1_ref[...], bp1_ref[...], pad=2))  # (4, 40)
    hp = _maxpool2_relu(_conv1d(hp, wp2_ref[...], bp2_ref[...], pad=2))            # (3, 80)

    # fc1: torch's channel-major flatten is folded into per-length-row weight blocks
    # prepared outside the kernel (w1a_ref: (11, 50, 500), w1p_ref: (3, 80, 500), bf16).
    # y[j] = b1[j] + sum_l h_apt[l,:] @ W1a[l] + sum_l h_pep[l,:] @ W1p[l]
    y = b1_ref[...]                                                                 # (1, 500) f32
    for l in range(ha.shape[0]):
        y = y + jnp.dot(ha[l:l + 1, :].astype(jnp.bfloat16), w1a_ref[l],
                        preferred_element_type=jnp.float32)
    for l in range(hp.shape[0]):
        y = y + jnp.dot(hp[l:l + 1, :].astype(jnp.bfloat16), w1p_ref[l],
                        preferred_element_type=jnp.float32)

    # fc2 (bf16 weights, f32 accumulate) — no ReLU, matching the reference forward.
    y = jnp.dot(y.astype(jnp.bfloat16), w2_ref[...],
                preferred_element_type=jnp.float32) + b2_ref[...]                   # (1, 200)

    # fc3 with N=1: VPU multiply + lane reduce (avoids a fully padded 1-lane MXU dot).
    y = jnp.sum(y * w3_ref[...], axis=-1, keepdims=True) + b3_ref[...]              # (1, 1)

    # sigmoid (exp overflow for very negative y saturates correctly to 0).
    out_ref[...] = 1.0 / (1.0 + jnp.exp(-y))


# --------------------------------- wrappers -----------------------------------

_VMEM = pl.BlockSpec(memory_space=pltpu.MemorySpace.VMEM)

# Branch output geometry implied by fc1's 790 input features.
_L_APT, _C_APT = 11, 50   # apt branch: (11, 50) -> 550 features
_L_PEP, _C_PEP = 3, 80    # pep branch: (3, 80)  -> 240 features


def _flatten_conv_w(w):
    # (C_out, C_in, K) -> (K*C_in, C_out) with row k*C_in + c == W[c_out, c, k]
    c_out, c_in, k = w.shape
    return jnp.transpose(w, (2, 1, 0)).reshape(k * c_in, c_out)


def prepare_params(params):
    """One-time weight re-layout (hoisted out of the per-call path)."""
    wa1, ba1 = params["apt1"]
    wa2, ba2 = params["apt2"]
    wp1, bp1 = params["pep1"]
    wp2, bp2 = params["pep2"]
    w1, b1 = params["fc1"]
    w2, b2 = params["fc2"]
    w3, b3 = params["fc3"]

    n_apt = _C_APT * _L_APT  # 550
    # fc1 columns are ordered channel-major (c*L + l) by torch's view(-1,1).T flatten.
    # Re-block them as per-length-row (L, C, 500) so the kernel contracts each
    # (1, C) activation row directly — no in-kernel transpose/reshape needed.
    w1a = jnp.transpose(w1[:, :n_apt].reshape(w1.shape[0], _C_APT, _L_APT),
                        (2, 1, 0)).astype(jnp.bfloat16)          # (11, 50, 500)
    w1p = jnp.transpose(w1[:, n_apt:].reshape(w1.shape[0], _C_PEP, _L_PEP),
                        (2, 1, 0)).astype(jnp.bfloat16)          # (3, 80, 500)

    return dict(
        wa1=_flatten_conv_w(wa1), ba1=ba1[None, :],
        wa2=_flatten_conv_w(wa2), ba2=ba2[None, :],
        wp1=_flatten_conv_w(wp1), bp1=bp1[None, :],
        wp2=_flatten_conv_w(wp2), bp2=bp2[None, :],
        w1a=w1a, w1p=w1p, b1=b1[None, :],
        w2=w2.T.astype(jnp.bfloat16), b2=b2[None, :],
        w3=w3, b3=b3[None, :],
    )


@jax.jit
def blosum_forward(apt, pep, prep):
    # apt: (1, 4, 40) NCL, pep: (1, 20, 7) NCL -> (L, C) for the kernel.
    apt_lc = jnp.transpose(apt[0], (1, 0)).astype(jnp.float32)   # (40, 4)
    pep_lc = jnp.transpose(pep[0], (1, 0)).astype(jnp.float32)   # (7, 20)

    return pl.pallas_call(
        blosum_fused_kernel,
        out_shape=jax.ShapeDtypeStruct((1, 1), jnp.float32),
        in_specs=[_VMEM] * 17,
        out_specs=_VMEM,
    )(apt_lc, pep_lc,
      prep["wa1"], prep["ba1"], prep["wa2"], prep["ba2"],
      prep["wp1"], prep["bp1"], prep["wp2"], prep["bp2"],
      prep["w1a"], prep["w1p"], prep["b1"],
      prep["w2"], prep["b2"], prep["w3"], prep["b3"])


# ----------------------------- deterministic init ------------------------------

def init_params(key):
    def conv_init(k, c_out, c_in, ksz):
        kw, kb = jax.random.split(k)
        bound = 1.0 / (c_in * ksz) ** 0.5
        w = jax.random.uniform(kw, (c_out, c_in, ksz), jnp.float32, -bound, bound)
        b = jax.random.uniform(kb, (c_out,), jnp.float32, -bound, bound)
        return w, b

    def lin_init(k, out_f, in_f):
        kw, kb = jax.random.split(k)
        bound = 1.0 / in_f ** 0.5
        w = jax.random.uniform(kw, (out_f, in_f), jnp.float32, -bound, bound)
        b = jax.random.uniform(kb, (out_f,), jnp.float32, -bound, bound)
        return w, b

    keys = jax.random.split(key, 7)
    return {
        "apt1": conv_init(keys[0], 25, 4, 3),
        "apt2": conv_init(keys[1], 50, 25, 3),
        "pep1": conv_init(keys[2], 40, 20, 3),
        "pep2": conv_init(keys[3], 80, 40, 3),
        "fc1": lin_init(keys[4], 500, 790),
        "fc2": lin_init(keys[5], 200, 500),
        "fc3": lin_init(keys[6], 1, 200),
    }


if __name__ == "__main__":
    key = jax.random.PRNGKey(0)
    k_apt, k_pep, k_par = jax.random.split(key, 3)

    apt = jax.random.normal(k_apt, (1, 4, 40), jnp.float32)   # aptamer: 4 channels, length 40
    pep = jax.random.normal(k_pep, (1, 20, 7), jnp.float32)   # peptide: 20 channels, length 7
    params = init_params(k_par)
    prep = jax.tree_util.tree_map(jax.block_until_ready, prepare_params(params))  # hoisted once

    out = blosum_forward(apt, pep, prep)
    out = jax.block_until_ready(out)
    assert out.shape == (1, 1)
    assert bool(jnp.all((out >= 0.0) & (out <= 1.0)))
    print("KERNEL_OK")
</pallas_src>

<mosaic_0001>
module attributes {stable_mosaic.version = 11 : i64} {
  func.func @blosum_fused_kernel(%arg0: memref<40x4xf32, #tpu.memory_space<vmem>>, %arg1: memref<7x20xf32, #tpu.memory_space<vmem>>, %arg2: memref<12x25xf32, #tpu.memory_space<vmem>>, %arg3: memref<1x25xf32, #tpu.memory_space<vmem>>, %arg4: memref<75x50xf32, #tpu.memory_space<vmem>>, %arg5: memref<1x50xf32, #tpu.memory_space<vmem>>, %arg6: memref<60x40xf32, #tpu.memory_space<vmem>>, %arg7: memref<1x40xf32, #tpu.memory_space<vmem>>, %arg8: memref<120x80xf32, #tpu.memory_space<vmem>>, %arg9: memref<1x80xf32, #tpu.memory_space<vmem>>, %arg10: memref<11x50x500xbf16, #tpu.memory_space<vmem>>, %arg11: memref<3x80x500xbf16, #tpu.memory_space<vmem>>, %arg12: memref<1x500xf32, #tpu.memory_space<vmem>>, %arg13: memref<500x200xbf16, #tpu.memory_space<vmem>>, %arg14: memref<1x200xf32, #tpu.memory_space<vmem>>, %arg15: memref<1x200xf32, #tpu.memory_space<vmem>>, %arg16: memref<1x1xf32, #tpu.memory_space<vmem>>, %arg17: memref<1x1xf32, #tpu.memory_space<vmem>>) attributes {dimension_semantics = [], scalar_prefetch = 0 : i64, scratch_operands = 0 : i64, tpu.core_type = #tpu.core_type<tc>} {
    %c0 = arith.constant 0 : index
    %c0_0 = arith.constant 0 : index
    %0 = vector.load %arg0[%c0, %c0_0] : memref<40x4xf32, #tpu.memory_space<vmem>>, vector<40x4xf32>
    %c0_1 = arith.constant 0 : index
    %c0_2 = arith.constant 0 : index
    %1 = vector.load %arg2[%c0_1, %c0_2] : memref<12x25xf32, #tpu.memory_space<vmem>>, vector<12x25xf32>
    %c0_3 = arith.constant 0 : index
    %c0_4 = arith.constant 0 : index
    %2 = vector.load %arg3[%c0_3, %c0_4] : memref<1x25xf32, #tpu.memory_space<vmem>>, vector<1x25xf32>
    %cst = arith.constant 0.000000e+00 : f32
    %3 = vector.broadcast %cst : f32 to vector<2x4xf32>
    %4 = tpu.concatenate %3, %0, %3 in 0 : vector<2x4xf32>, vector<40x4xf32>, vector<2x4xf32> -> vector<44x4xf32>
    %5 = vector.extract_strided_slice %4 {offsets = [0, 0], sizes = [42, 4], strides = [1, 1]} : vector<44x4xf32> to vector<42x4xf32>
    %6 = vector.extract_strided_slice %1 {offsets = [0, 0], sizes = [4, 25], strides = [1, 1]} : vector<12x25xf32> to vector<4x25xf32>
    %cst_5 = arith.constant dense<0.000000e+00> : vector<42x25xf32>
    %7 = tpu.matmul %5, %6, %cst_5 {dimension_numbers = #tpu.dot_dimension_numbers<[1], [0], [0], [1], [0, 0, 1, 1], [], []>} : vector<42x4xf32>, vector<4x25xf32>, vector<42x25xf32> -> vector<42x25xf32>
    %8 = vector.broadcast %2 : vector<1x25xf32> to vector<42x25xf32>
    %9 = arith.addf %7, %8 : vector<42x25xf32>
    %10 = vector.extract_strided_slice %4 {offsets = [1, 0], sizes = [42, 4], strides = [1, 1]} : vector<44x4xf32> to vector<42x4xf32>
    %11 = vector.extract_strided_slice %1 {offsets = [4, 0], sizes = [4, 25], strides = [1, 1]} : vector<12x25xf32> to vector<4x25xf32>
    %cst_6 = arith.constant dense<0.000000e+00> : vector<42x25xf32>
    %12 = tpu.matmul %10, %11, %cst_6 {dimension_numbers = #tpu.dot_dimension_numbers<[1], [0], [0], [1], [0, 0, 1, 1], [], []>} : vector<42x4xf32>, vector<4x25xf32>, vector<42x25xf32> -> vector<42x25xf32>
    %13 = arith.addf %9, %12 : vector<42x25xf32>
    %14 = vector.extract_strided_slice %4 {offsets = [2, 0], sizes = [42, 4], strides = [1, 1]} : vector<44x4xf32> to vector<42x4xf32>
    %15 = vector.extract_strided_slice %1 {offsets = [8, 0], sizes = [4, 25], strides = [1, 1]} : vector<12x25xf32> to vector<4x25xf32>
    %cst_7 = arith.constant dense<0.000000e+00> : vector<42x25xf32>
    %16 = tpu.matmul %14, %15, %cst_7 {dimension_numbers = #tpu.dot_dimension_numbers<[1], [0], [0], [1], [0, 0, 1, 1], [], []>} : vector<42x4xf32>, vector<4x25xf32>, vector<42x25xf32> -> vector<42x25xf32>
    %17 = arith.addf %13, %16 : vector<42x25xf32>
    %18 = tpu.iota {dimensions = array<i32: 0>} : vector<21x42xi32>
    %19 = tpu.iota {dimensions = array<i32: 1>} : vector<21x42xi32>
    %c2_i32 = arith.constant 2 : i32
    %20 = vector.broadcast %c2_i32 : i32 to vector<21x42xi32>
    %21 = arith.muli %20, %18 : vector<21x42xi32>
    %22 = arith.cmpi eq, %19, %21 : vector<21x42xi32>
    %23 = arith.extui %22 : vector<21x42xi1> to vector<21x42xi32>
    %24 = arith.sitofp %23 : vector<21x42xi32> to vector<21x42xf32>
    %c2_i32_8 = arith.constant 2 : i32
    %25 = vector.broadcast %c2_i32_8 : i32 to vector<21x42xi32>
    %26 = arith.muli %25, %18 : vector<21x42xi32>
    %c1_i32 = arith.constant 1 : i32
    %27 = vector.broadcast %c1_i32 : i32 to vector<21x42xi32>
    %28 = arith.addi %26, %27 : vector<21x42xi32>
    %29 = arith.cmpi eq, %19, %28 : vector<21x42xi32>
    %30 = arith.extui %29 : vector<21x42xi1> to vector<21x42xi32>
    %31 = arith.sitofp %30 : vector<21x42xi32> to vector<21x42xf32>
    %cst_9 = arith.constant dense<0.000000e+00> : vector<21x25xf32>
    %32 = tpu.matmul %24, %17, %cst_9 {dimension_numbers = #tpu.dot_dimension_numbers<[1], [0], [0], [1], [0, 0, 1, 1], [], []>} : vector<21x42xf32>, vector<42x25xf32>, vector<21x25xf32> -> vector<21x25xf32>
    %cst_10 = arith.constant dense<0.000000e+00> : vector<21x25xf32>
    %33 = tpu.matmul %31, %17, %cst_10 {dimension_numbers = #tpu.dot_dimension_numbers<[1], [0], [0], [1], [0, 0, 1, 1], [], []>} : vector<21x42xf32>, vector<42x25xf32>, vector<21x25xf32> -> vector<21x25xf32>
    %34 = arith.maximumf %32, %33 : vector<21x25xf32>
    %cst_11 = arith.constant 0.000000e+00 : f32
    %35 = vector.broadcast %cst_11 : f32 to vector<21x25xf32>
    %36 = arith.maximumf %34, %35 : vector<21x25xf32>
    %c0_12 = arith.constant 0 : index
    %c0_13 = arith.constant 0 : index
    %37 = vector.load %arg4[%c0_12, %c0_13] : memref<75x50xf32, #tpu.memory_space<vmem>>, vector<75x50xf32>
    %c0_14 = arith.constant 0 : index
    %c0_15 = arith.constant 0 : index
    %38 = vector.load %arg5[%c0_14, %c0_15] : memref<1x50xf32, #tpu.memory_space<vmem>>, vector<1x50xf32>
    %cst_16 = arith.constant 0.000000e+00 : f32
    %39 = vector.broadcast %cst_16 : f32 to vector<2x25xf32>
    %40 = tpu.concatenate %39, %36, %39 in 0 : vector<2x25xf32>, vector<21x25xf32>, vector<2x25xf32> -> vector<25x25xf32>
    %41 = vector.extract_strided_slice %40 {offsets = [0, 0], sizes = [23, 25], strides = [1, 1]} : vector<25x25xf32> to vector<23x25xf32>
    %42 = vector.extract_strided_slice %37 {offsets = [0, 0], sizes = [25, 50], strides = [1, 1]} : vector<75x50xf32> to vector<25x50xf32>
    %cst_17 = arith.constant dense<0.000000e+00> : vector<23x50xf32>
    %43 = tpu.matmul %41, %42, %cst_17 {dimension_numbers = #tpu.dot_dimension_numbers<[1], [0], [0], [1], [0, 0, 1, 1], [], []>} : vector<23x25xf32>, vector<25x50xf32>, vector<23x50xf32> -> vector<23x50xf32>
    %44 = vector.broadcast %38 : vector<1x50xf32> to vector<23x50xf32>
    %45 = arith.addf %43, %44 : vector<23x50xf32>
    %46 = vector.extract_strided_slice %40 {offsets = [1, 0], sizes = [23, 25], strides = [1, 1]} : vector<25x25xf32> to vector<23x25xf32>
    %47 = vector.extract_strided_slice %37 {offsets = [25, 0], sizes = [25, 50], strides = [1, 1]} : vector<75x50xf32> to vector<25x50xf32>
    %cst_18 = arith.constant dense<0.000000e+00> : vector<23x50xf32>
    %48 = tpu.matmul %46, %47, %cst_18 {dimension_numbers = #tpu.dot_dimension_numbers<[1], [0], [0], [1], [0, 0, 1, 1], [], []>} : vector<23x25xf32>, vector<25x50xf32>, vector<23x50xf32> -> vector<23x50xf32>
    %49 = arith.addf %45, %48 : vector<23x50xf32>
    %50 = vector.extract_strided_slice %40 {offsets = [2, 0], sizes = [23, 25], strides = [1, 1]} : vector<25x25xf32> to vector<23x25xf32>
    %51 = vector.extract_strided_slice %37 {offsets = [50, 0], sizes = [25, 50], strides = [1, 1]} : vector<75x50xf32> to vector<25x50xf32>
    %cst_19 = arith.constant dense<0.000000e+00> : vector<23x50xf32>
    %52 = tpu.matmul %50, %51, %cst_19 {dimension_numbers = #tpu.dot_dimension_numbers<[1], [0], [0], [1], [0, 0, 1, 1], [], []>} : vector<23x25xf32>, vector<25x50xf32>, vector<23x50xf32> -> vector<23x50xf32>
    %53 = arith.addf %49, %52 : vector<23x50xf32>
    %54 = tpu.iota {dimensions = array<i32: 0>} : vector<11x23xi32>
    %55 = tpu.iota {dimensions = array<i32: 1>} : vector<11x23xi32>
    %c2_i32_20 = arith.constant 2 : i32
    %56 = vector.broadcast %c2_i32_20 : i32 to vector<11x23xi32>
    %57 = arith.muli %56, %54 : vector<11x23xi32>
    %58 = arith.cmpi eq, %55, %57 : vector<11x23xi32>
    %59 = arith.extui %58 : vector<11x23xi1> to vector<11x23xi32>
    %60 = arith.sitofp %59 : vector<11x23xi32> to vector<11x23xf32>
    %c2_i32_21 = arith.constant 2 : i32
    %61 = vector.broadcast %c2_i32_21 : i32 to vector<11x23xi32>
    %62 = arith.muli %61, %54 : vector<11x23xi32>
    %c1_i32_22 = arith.constant 1 : i32
    %63 = vector.broadcast %c1_i32_22 : i32 to vector<11x23xi32>
    %64 = arith.addi %62, %63 : vector<11x23xi32>
    %65 = arith.cmpi eq, %55, %64 : vector<11x23xi32>
    %66 = arith.extui %65 : vector<11x23xi1> to vector<11x23xi32>
    %67 = arith.sitofp %66 : vector<11x23xi32> to vector<11x23xf32>
    %cst_23 = arith.constant dense<0.000000e+00> : vector<11x50xf32>
    %68 = tpu.matmul %60, %53, %cst_23 {dimension_numbers = #tpu.dot_dimension_numbers<[1], [0], [0], [1], [0, 0, 1, 1], [], []>} : vector<11x23xf32>, vector<23x50xf32>, vector<11x50xf32> -> vector<11x50xf32>
    %cst_24 = arith.constant dense<0.000000e+00> : vector<11x50xf32>
    %69 = tpu.matmul %67, %53, %cst_24 {dimension_numbers = #tpu.dot_dimension_numbers<[1], [0], [0], [1], [0, 0, 1, 1], [], []>} : vector<11x23xf32>, vector<23x50xf32>, vector<11x50xf32> -> vector<11x50xf32>
    %70 = arith.maximumf %68, %69 : vector<11x50xf32>
    %cst_25 = arith.constant 0.000000e+00 : f32
    %71 = vector.broadcast %cst_25 : f32 to vector<11x50xf32>
    %72 = arith.maximumf %70, %71 : vector<11x50xf32>
    %c0_26 = arith.constant 0 : index
    %c0_27 = arith.constant 0 : index
    %73 = vector.load %arg1[%c0_26, %c0_27] : memref<7x20xf32, #tpu.memory_space<vmem>>, vector<7x20xf32>
    %c0_28 = arith.constant 0 : index
    %c0_29 = arith.constant 0 : index
    %74 = vector.load %arg6[%c0_28, %c0_29] : memref<60x40xf32, #tpu.memory_space<vmem>>, vector<60x40xf32>
    %c0_30 = arith.constant 0 : index
    %c0_31 = arith.constant 0 : index
    %75 = vector.load %arg7[%c0_30, %c0_31] : memref<1x40xf32, #tpu.memory_space<vmem>>, vector<1x40xf32>
    %cst_32 = arith.constant 0.000000e+00 : f32
    %76 = vector.broadcast %cst_32 : f32 to vector<2x20xf32>
    %77 = tpu.concatenate %76, %73, %76 in 0 : vector<2x20xf32>, vector<7x20xf32>, vector<2x20xf32> -> vector<11x20xf32>
    %78 = vector.extract_strided_slice %77 {offsets = [0, 0], sizes = [9, 20], strides = [1, 1]} : vector<11x20xf32> to vector<9x20xf32>
    %79 = vector.extract_strided_slice %74 {offsets = [0, 0], sizes = [20, 40], strides = [1, 1]} : vector<60x40xf32> to vector<20x40xf32>
    %cst_33 = arith.constant dense<0.000000e+00> : vector<9x40xf32>
    %80 = tpu.matmul %78, %79, %cst_33 {dimension_numbers = #tpu.dot_dimension_numbers<[1], [0], [0], [1], [0, 0, 1, 1], [], []>} : vector<9x20xf32>, vector<20x40xf32>, vector<9x40xf32> -> vector<9x40xf32>
    %81 = vector.broadcast %75 : vector<1x40xf32> to vector<9x40xf32>
    %82 = arith.addf %80, %81 : vector<9x40xf32>
    %83 = vector.extract_strided_slice %77 {offsets = [1, 0], sizes = [9, 20], strides = [1, 1]} : vector<11x20xf32> to vector<9x20xf32>
    %84 = vector.extract_strided_slice %74 {offsets = [20, 0], sizes = [20, 40], strides = [1, 1]} : vector<60x40xf32> to vector<20x40xf32>
    %cst_34 = arith.constant dense<0.000000e+00> : vector<9x40xf32>
    %85 = tpu.matmul %83, %84, %cst_34 {dimension_numbers = #tpu.dot_dimension_numbers<[1], [0], [0], [1], [0, 0, 1, 1], [], []>} : vector<9x20xf32>, vector<20x40xf32>, vector<9x40xf32> -> vector<9x40xf32>
    %86 = arith.addf %82, %85 : vector<9x40xf32>
    %87 = vector.extract_strided_slice %77 {offsets = [2, 0], sizes = [9, 20], strides = [1, 1]} : vector<11x20xf32> to vector<9x20xf32>
    %88 = vector.extract_strided_slice %74 {offsets = [40, 0], sizes = [20, 40], strides = [1, 1]} : vector<60x40xf32> to vector<20x40xf32>
    %cst_35 = arith.constant dense<0.000000e+00> : vector<9x40xf32>
    %89 = tpu.matmul %87, %88, %cst_35 {dimension_numbers = #tpu.dot_dimension_numbers<[1], [0], [0], [1], [0, 0, 1, 1], [], []>} : vector<9x20xf32>, vector<20x40xf32>, vector<9x40xf32> -> vector<9x40xf32>
    %90 = arith.addf %86, %89 : vector<9x40xf32>
    %91 = tpu.iota {dimensions = array<i32: 0>} : vector<4x9xi32>
    %92 = tpu.iota {dimensions = array<i32: 1>} : vector<4x9xi32>
    %c2_i32_36 = arith.constant 2 : i32
    %93 = vector.broadcast %c2_i32_36 : i32 to vector<4x9xi32>
    %94 = arith.muli %93, %91 : vector<4x9xi32>
    %95 = arith.cmpi eq, %92, %94 : vector<4x9xi32>
    %96 = arith.extui %95 : vector<4x9xi1> to vector<4x9xi32>
    %97 = arith.sitofp %96 : vector<4x9xi32> to vector<4x9xf32>
    %c2_i32_37 = arith.constant 2 : i32
    %98 = vector.broadcast %c2_i32_37 : i32 to vector<4x9xi32>
    %99 = arith.muli %98, %91 : vector<4x9xi32>
    %c1_i32_38 = arith.constant 1 : i32
    %100 = vector.broadcast %c1_i32_38 : i32 to vector<4x9xi32>
    %101 = arith.addi %99, %100 : vector<4x9xi32>
    %102 = arith.cmpi eq, %92, %101 : vector<4x9xi32>
    %103 = arith.extui %102 : vector<4x9xi1> to vector<4x9xi32>
    %104 = arith.sitofp %103 : vector<4x9xi32> to vector<4x9xf32>
    %cst_39 = arith.constant dense<0.000000e+00> : vector<4x40xf32>
    %105 = tpu.matmul %97, %90, %cst_39 {dimension_numbers = #tpu.dot_dimension_numbers<[1], [0], [0], [1], [0, 0, 1, 1], [], []>} : vector<4x9xf32>, vector<9x40xf32>, vector<4x40xf32> -> vector<4x40xf32>
    %cst_40 = arith.constant dense<0.000000e+00> : vector<4x40xf32>
    %106 = tpu.matmul %104, %90, %cst_40 {dimension_numbers = #tpu.dot_dimension_numbers<[1], [0], [0], [1], [0, 0, 1, 1], [], []>} : vector<4x9xf32>, vector<9x40xf32>, vector<4x40xf32> -> vector<4x40xf32>
    %107 = arith.maximumf %105, %106 : vector<4x40xf32>
    %cst_41 = arith.constant 0.000000e+00 : f32
    %108 = vector.broadcast %cst_41 : f32 to vector<4x40xf32>
    %109 = arith.maximumf %107, %108 : vector<4x40xf32>
    %c0_42 = arith.constant 0 : index
    %c0_43 = arith.constant 0 : index
    %110 = vector.load %arg8[%c0_42, %c0_43] : memref<120x80xf32, #tpu.memory_space<vmem>>, vector<120x80xf32>
    %c0_44 = arith.constant 0 : index
    %c0_45 = arith.constant 0 : index
    %111 = vector.load %arg9[%c0_44, %c0_45] : memref<1x80xf32, #tpu.memory_space<vmem>>, vector<1x80xf32>
    %cst_46 = arith.constant 0.000000e+00 : f32
    %112 = vector.broadcast %cst_46 : f32 to vector<2x40xf32>
    %113 = tpu.concatenate %112, %109, %112 in 0 : vector<2x40xf32>, vector<4x40xf32>, vector<2x40xf32> -> vector<8x40xf32>
    %114 = vector.extract_strided_slice %113 {offsets = [0, 0], sizes = [6, 40], strides = [1, 1]} : vector<8x40xf32> to vector<6x40xf32>
    %115 = vector.extract_strided_slice %110 {offsets = [0, 0], sizes = [40, 80], strides = [1, 1]} : vector<120x80xf32> to vector<40x80xf32>
    %cst_47 = arith.constant dense<0.000000e+00> : vector<6x80xf32>
    %116 = tpu.matmul %114, %115, %cst_47 {dimension_numbers = #tpu.dot_dimension_numbers<[1], [0], [0], [1], [0, 0, 1, 1], [], []>} : vector<6x40xf32>, vector<40x80xf32>, vector<6x80xf32> -> vector<6x80xf32>
    %117 = vector.broadcast %111 : vector<1x80xf32> to vector<6x80xf32>
    %118 = arith.addf %116, %117 : vector<6x80xf32>
    %119 = vector.extract_strided_slice %113 {offsets = [1, 0], sizes = [6, 40], strides = [1, 1]} : vector<8x40xf32> to vector<6x40xf32>
    %120 = vector.extract_strided_slice %110 {offsets = [40, 0], sizes = [40, 80], strides = [1, 1]} : vector<120x80xf32> to vector<40x80xf32>
    %cst_48 = arith.constant dense<0.000000e+00> : vector<6x80xf32>
    %121 = tpu.matmul %119, %120, %cst_48 {dimension_numbers = #tpu.dot_dimension_numbers<[1], [0], [0], [1], [0, 0, 1, 1], [], []>} : vector<6x40xf32>, vector<40x80xf32>, vector<6x80xf32> -> vector<6x80xf32>
    %122 = arith.addf %118, %121 : vector<6x80xf32>
    %123 = vector.extract_strided_slice %113 {offsets = [2, 0], sizes = [6, 40], strides = [1, 1]} : vector<8x40xf32> to vector<6x40xf32>
    %124 = vector.extract_strided_slice %110 {offsets = [80, 0], sizes = [40, 80], strides = [1, 1]} : vector<120x80xf32> to vector<40x80xf32>
    %cst_49 = arith.constant dense<0.000000e+00> : vector<6x80xf32>
    %125 = tpu.matmul %123, %124, %cst_49 {dimension_numbers = #tpu.dot_dimension_numbers<[1], [0], [0], [1], [0, 0, 1, 1], [], []>} : vector<6x40xf32>, vector<40x80xf32>, vector<6x80xf32> -> vector<6x80xf32>
    %126 = arith.addf %122, %125 : vector<6x80xf32>
    %127 = tpu.iota {dimensions = array<i32: 0>} : vector<3x6xi32>
    %128 = tpu.iota {dimensions = array<i32: 1>} : vector<3x6xi32>
    %c2_i32_50 = arith.constant 2 : i32
    %129 = vector.broadcast %c2_i32_50 : i32 to vector<3x6xi32>
    %130 = arith.muli %129, %127 : vector<3x6xi32>
    %131 = arith.cmpi eq, %128, %130 : vector<3x6xi32>
    %132 = arith.extui %131 : vector<3x6xi1> to vector<3x6xi32>
    %133 = arith.sitofp %132 : vector<3x6xi32> to vector<3x6xf32>
    %c2_i32_51 = arith.constant 2 : i32
    %134 = vector.broadcast %c2_i32_51 : i32 to vector<3x6xi32>
    %135 = arith.muli %134, %127 : vector<3x6xi32>
    %c1_i32_52 = arith.constant 1 : i32
    %136 = vector.broadcast %c1_i32_52 : i32 to vector<3x6xi32>
    %137 = arith.addi %135, %136 : vector<3x6xi32>
    %138 = arith.cmpi eq, %128, %137 : vector<3x6xi32>
    %139 = arith.extui %138 : vector<3x6xi1> to vector<3x6xi32>
    %140 = arith.sitofp %139 : vector<3x6xi32> to vector<3x6xf32>
    %cst_53 = arith.constant dense<0.000000e+00> : vector<3x80xf32>
    %141 = tpu.matmul %133, %126, %cst_53 {dimension_numbers = #tpu.dot_dimension_numbers<[1], [0], [0], [1], [0, 0, 1, 1], [], []>} : vector<3x6xf32>, vector<6x80xf32>, vector<3x80xf32> -> vector<3x80xf32>
    %cst_54 = arith.constant dense<0.000000e+00> : vector<3x80xf32>
    %142 = tpu.matmul %140, %126, %cst_54 {dimension_numbers = #tpu.dot_dimension_numbers<[1], [0], [0], [1], [0, 0, 1, 1], [], []>} : vector<3x6xf32>, vector<6x80xf32>, vector<3x80xf32> -> vector<3x80xf32>
    %143 = arith.maximumf %141, %142 : vector<3x80xf32>
    %cst_55 = arith.constant 0.000000e+00 : f32
    %144 = vector.broadcast %cst_55 : f32 to vector<3x80xf32>
    %145 = arith.maximumf %143, %144 : vector<3x80xf32>
    %c0_56 = arith.constant 0 : index
    %c0_57 = arith.constant 0 : index
    %146 = vector.load %arg12[%c0_56, %c0_57] : memref<1x500xf32, #tpu.memory_space<vmem>>, vector<1x500xf32>
    %147 = vector.extract_strided_slice %72 {offsets = [0, 0], sizes = [1, 50], strides = [1, 1]} : vector<11x50xf32> to vector<1x50xf32>
    %148 = arith.truncf %147 : vector<1x50xf32> to vector<1x50xbf16>
    %c0_58 = arith.constant 0 : index
    %c0_59 = arith.constant 0 : index
    %c0_60 = arith.constant 0 : index
    %149 = vector.load %arg10[%c0_58, %c0_59, %c0_60] : memref<11x50x500xbf16, #tpu.memory_space<vmem>>, vector<1x50x500xbf16>
    %150 = vector.shape_cast %149 : vector<1x50x500xbf16> to vector<50x500xbf16>
    %cst_61 = arith.constant dense<0.000000e+00> : vector<1x500xf32>
    %151 = tpu.matmul %148, %150, %cst_61 {dimension_numbers = #tpu.dot_dimension_numbers<[1], [0], [0], [1], [0, 0, 1, 1], [], []>} : vector<1x50xbf16>, vector<50x500xbf16>, vector<1x500xf32> -> vector<1x500xf32>
    %152 = arith.addf %146, %151 : vector<1x500xf32>
    %153 = vector.extract_strided_slice %72 {offsets = [1, 0], sizes = [1, 50], strides = [1, 1]} : vector<11x50xf32> to vector<1x50xf32>
    %154 = arith.truncf %153 : vector<1x50xf32> to vector<1x50xbf16>
    %c1 = arith.constant 1 : index
    %c0_62 = arith.constant 0 : index
    %c0_63 = arith.constant 0 : index
    %155 = vector.load %arg10[%c1, %c0_62, %c0_63] : memref<11x50x500xbf16, #tpu.memory_space<vmem>>, vector<1x50x500xbf16>
    %156 = vector.shape_cast %155 : vector<1x50x500xbf16> to vector<50x500xbf16>
    %cst_64 = arith.constant dense<0.000000e+00> : vector<1x500xf32>
    %157 = tpu.matmul %154, %156, %cst_64 {dimension_numbers = #tpu.dot_dimension_numbers<[1], [0], [0], [1], [0, 0, 1, 1], [], []>} : vector<1x50xbf16>, vector<50x500xbf16>, vector<1x500xf32> -> vector<1x500xf32>
    %158 = arith.addf %152, %157 : vector<1x500xf32>
    %159 = vector.extract_strided_slice %72 {offsets = [2, 0], sizes = [1, 50], strides = [1, 1]} : vector<11x50xf32> to vector<1x50xf32>
    %160 = arith.truncf %159 : vector<1x50xf32> to vector<1x50xbf16>
    %c2 = arith.constant 2 : index
    %c0_65 = arith.constant 0 : index
    %c0_66 = arith.constant 0 : index
    %161 = vector.load %arg10[%c2, %c0_65, %c0_66] : memref<11x50x500xbf16, #tpu.memory_space<vmem>>, vector<1x50x500xbf16>
    %162 = vector.shape_cast %161 : vector<1x50x500xbf16> to vector<50x500xbf16>
    %cst_67 = arith.constant dense<0.000000e+00> : vector<1x500xf32>
    %163 = tpu.matmul %160, %162, %cst_67 {dimension_numbers = #tpu.dot_dimension_numbers<[1], [0], [0], [1], [0, 0, 1, 1], [], []>} : vector<1x50xbf16>, vector<50x500xbf16>, vector<1x500xf32> -> vector<1x500xf32>
    %164 = arith.addf %158, %163 : vector<1x500xf32>
    %165 = vector.extract_strided_slice %72 {offsets = [3, 0], sizes = [1, 50], strides = [1, 1]} : vector<11x50xf32> to vector<1x50xf32>
    %166 = arith.truncf %165 : vector<1x50xf32> to vector<1x50xbf16>
    %c3 = arith.constant 3 : index
    %c0_68 = arith.constant 0 : index
    %c0_69 = arith.constant 0 : index
    %167 = vector.load %arg10[%c3, %c0_68, %c0_69] : memref<11x50x500xbf16, #tpu.memory_space<vmem>>, vector<1x50x500xbf16>
    %168 = vector.shape_cast %167 : vector<1x50x500xbf16> to vector<50x500xbf16>
    %cst_70 = arith.constant dense<0.000000e+00> : vector<1x500xf32>
    %169 = tpu.matmul %166, %168, %cst_70 {dimension_numbers = #tpu.dot_dimension_numbers<[1], [0], [0], [1], [0, 0, 1, 1], [], []>} : vector<1x50xbf16>, vector<50x500xbf16>, vector<1x500xf32> -> vector<1x500xf32>
    %170 = arith.addf %164, %169 : vector<1x500xf32>
    %171 = vector.extract_strided_slice %72 {offsets = [4, 0], sizes = [1, 50], strides = [1, 1]} : vector<11x50xf32> to vector<1x50xf32>
    %172 = arith.truncf %171 : vector<1x50xf32> to vector<1x50xbf16>
    %c4 = arith.constant 4 : index
    %c0_71 = arith.constant 0 : index
    %c0_72 = arith.constant 0 : index
    %173 = vector.load %arg10[%c4, %c0_71, %c0_72] : memref<11x50x500xbf16, #tpu.memory_space<vmem>>, vector<1x50x500xbf16>
    %174 = vector.shape_cast %173 : vector<1x50x500xbf16> to vector<50x500xbf16>
    %cst_73 = arith.constant dense<0.000000e+00> : vector<1x500xf32>
    %175 = tpu.matmul %172, %174, %cst_73 {dimension_numbers = #tpu.dot_dimension_numbers<[1], [0], [0], [1], [0, 0, 1, 1], [], []>} : vector<1x50xbf16>, vector<50x500xbf16>, vector<1x500xf32> -> vector<1x500xf32>
    %176 = arith.addf %170, %175 : vector<1x500xf32>
    %177 = vector.extract_strided_slice %72 {offsets = [5, 0], sizes = [1, 50], strides = [1, 1]} : vector<11x50xf32> to vector<1x50xf32>
    %178 = arith.truncf %177 : vector<1x50xf32> to vector<1x50xbf16>
    %c5 = arith.constant 5 : index
    %c0_74 = arith.constant 0 : index
    %c0_75 = arith.constant 0 : index
    %179 = vector.load %arg10[%c5, %c0_74, %c0_75] : memref<11x50x500xbf16, #tpu.memory_space<vmem>>, vector<1x50x500xbf16>
    %180 = vector.shape_cast %179 : vector<1x50x500xbf16> to vector<50x500xbf16>
    %cst_76 = arith.constant dense<0.000000e+00> : vector<1x500xf32>
    %181 = tpu.matmul %178, %180, %cst_76 {dimension_numbers = #tpu.dot_dimension_numbers<[1], [0], [0], [1], [0, 0, 1, 1], [], []>} : vector<1x50xbf16>, vector<50x500xbf16>, vector<1x500xf32> -> vector<1x500xf32>
    %182 = arith.addf %176, %181 : vector<1x500xf32>
    %183 = vector.extract_strided_slice %72 {offsets = [6, 0], sizes = [1, 50], strides = [1, 1]} : vector<11x50xf32> to vector<1x50xf32>
    %184 = arith.truncf %183 : vector<1x50xf32> to vector<1x50xbf16>
    %c6 = arith.constant 6 : index
    %c0_77 = arith.constant 0 : index
    %c0_78 = arith.constant 0 : index
    %185 = vector.load %arg10[%c6, %c0_77, %c0_78] : memref<11x50x500xbf16, #tpu.memory_space<vmem>>, vector<1x50x500xbf16>
    %186 = vector.shape_cast %185 : vector<1x50x500xbf16> to vector<50x500xbf16>
    %cst_79 = arith.constant dense<0.000000e+00> : vector<1x500xf32>
    %187 = tpu.matmul %184, %186, %cst_79 {dimension_numbers = #tpu.dot_dimension_numbers<[1], [0], [0], [1], [0, 0, 1, 1], [], []>} : vector<1x50xbf16>, vector<50x500xbf16>, vector<1x500xf32> -> vector<1x500xf32>
    %188 = arith.addf %182, %187 : vector<1x500xf32>
    %189 = vector.extract_strided_slice %72 {offsets = [7, 0], sizes = [1, 50], strides = [1, 1]} : vector<11x50xf32> to vector<1x50xf32>
    %190 = arith.truncf %189 : vector<1x50xf32> to vector<1x50xbf16>
    %c7 = arith.constant 7 : index
    %c0_80 = arith.constant 0 : index
    %c0_81 = arith.constant 0 : index
    %191 = vector.load %arg10[%c7, %c0_80, %c0_81] : memref<11x50x500xbf16, #tpu.memory_space<vmem>>, vector<1x50x500xbf16>
    %192 = vector.shape_cast %191 : vector<1x50x500xbf16> to vector<50x500xbf16>
    %cst_82 = arith.constant dense<0.000000e+00> : vector<1x500xf32>
    %193 = tpu.matmul %190, %192, %cst_82 {dimension_numbers = #tpu.dot_dimension_numbers<[1], [0], [0], [1], [0, 0, 1, 1], [], []>} : vector<1x50xbf16>, vector<50x500xbf16>, vector<1x500xf32> -> vector<1x500xf32>
    %194 = arith.addf %188, %193 : vector<1x500xf32>
    %195 = vector.extract_strided_slice %72 {offsets = [8, 0], sizes = [1, 50], strides = [1, 1]} : vector<11x50xf32> to vector<1x50xf32>
    %196 = arith.truncf %195 : vector<1x50xf32> to vector<1x50xbf16>
    %c8 = arith.constant 8 : index
    %c0_83 = arith.constant 0 : index
    %c0_84 = arith.constant 0 : index
    %197 = vector.load %arg10[%c8, %c0_83, %c0_84] : memref<11x50x500xbf16, #tpu.memory_space<vmem>>, vector<1x50x500xbf16>
    %198 = vector.shape_cast %197 : vector<1x50x500xbf16> to vector<50x500xbf16>
    %cst_85 = arith.constant dense<0.000000e+00> : vector<1x500xf32>
    %199 = tpu.matmul %196, %198, %cst_85 {dimension_numbers = #tpu.dot_dimension_numbers<[1], [0], [0], [1], [0, 0, 1, 1], [], []>} : vector<1x50xbf16>, vector<50x500xbf16>, vector<1x500xf32> -> vector<1x500xf32>
    %200 = arith.addf %194, %199 : vector<1x500xf32>
    %201 = vector.extract_strided_slice %72 {offsets = [9, 0], sizes = [1, 50], strides = [1, 1]} : vector<11x50xf32> to vector<1x50xf32>
    %202 = arith.truncf %201 : vector<1x50xf32> to vector<1x50xbf16>
    %c9 = arith.constant 9 : index
    %c0_86 = arith.constant 0 : index
    %c0_87 = arith.constant 0 : index
    %203 = vector.load %arg10[%c9, %c0_86, %c0_87] : memref<11x50x500xbf16, #tpu.memory_space<vmem>>, vector<1x50x500xbf16>
    %204 = vector.shape_cast %203 : vector<1x50x500xbf16> to vector<50x500xbf16>
    %cst_88 = arith.constant dense<0.000000e+00> : vector<1x500xf32>
    %205 = tpu.matmul %202, %204, %cst_88 {dimension_numbers = #tpu.dot_dimension_numbers<[1], [0], [0], [1], [0, 0, 1, 1], [], []>} : vector<1x50xbf16>, vector<50x500xbf16>, vector<1x500xf32> -> vector<1x500xf32>
    %206 = arith.addf %200, %205 : vector<1x500xf32>
    %207 = vector.extract_strided_slice %72 {offsets = [10, 0], sizes = [1, 50], strides = [1, 1]} : vector<11x50xf32> to vector<1x50xf32>
    %208 = arith.truncf %207 : vector<1x50xf32> to vector<1x50xbf16>
    %c10 = arith.constant 10 : index
    %c0_89 = arith.constant 0 : index
    %c0_90 = arith.constant 0 : index
    %209 = vector.load %arg10[%c10, %c0_89, %c0_90] : memref<11x50x500xbf16, #tpu.memory_space<vmem>>, vector<1x50x500xbf16>
    %210 = vector.shape_cast %209 : vector<1x50x500xbf16> to vector<50x500xbf16>
    %cst_91 = arith.constant dense<0.000000e+00> : vector<1x500xf32>
    %211 = tpu.matmul %208, %210, %cst_91 {dimension_numbers = #tpu.dot_dimension_numbers<[1], [0], [0], [1], [0, 0, 1, 1], [], []>} : vector<1x50xbf16>, vector<50x500xbf16>, vector<1x500xf32> -> vector<1x500xf32>
    %212 = arith.addf %206, %211 : vector<1x500xf32>
    %213 = vector.extract_strided_slice %145 {offsets = [0, 0], sizes = [1, 80], strides = [1, 1]} : vector<3x80xf32> to vector<1x80xf32>
    %214 = arith.truncf %213 : vector<1x80xf32> to vector<1x80xbf16>
    %c0_92 = arith.constant 0 : index
    %c0_93 = arith.constant 0 : index
    %c0_94 = arith.constant 0 : index
    %215 = vector.load %arg11[%c0_92, %c0_93, %c0_94] : memref<3x80x500xbf16, #tpu.memory_space<vmem>>, vector<1x80x500xbf16>
    %216 = vector.shape_cast %215 : vector<1x80x500xbf16> to vector<80x500xbf16>
    %cst_95 = arith.constant dense<0.000000e+00> : vector<1x500xf32>
    %217 = tpu.matmul %214, %216, %cst_95 {dimension_numbers = #tpu.dot_dimension_numbers<[1], [0], [0], [1], [0, 0, 1, 1], [], []>} : vector<1x80xbf16>, vector<80x500xbf16>, vector<1x500xf32> -> vector<1x500xf32>
    %218 = arith.addf %212, %217 : vector<1x500xf32>
    %219 = vector.extract_strided_slice %145 {offsets = [1, 0], sizes = [1, 80], strides = [1, 1]} : vector<3x80xf32> to vector<1x80xf32>
    %220 = arith.truncf %219 : vector<1x80xf32> to vector<1x80xbf16>
    %c1_96 = arith.constant 1 : index
    %c0_97 = arith.constant 0 : index
    %c0_98 = arith.constant 0 : index
    %221 = vector.load %arg11[%c1_96, %c0_97, %c0_98] : memref<3x80x500xbf16, #tpu.memory_space<vmem>>, vector<1x80x500xbf16>
    %222 = vector.shape_cast %221 : vector<1x80x500xbf16> to vector<80x500xbf16>
    %cst_99 = arith.constant dense<0.000000e+00> : vector<1x500xf32>
    %223 = tpu.matmul %220, %222, %cst_99 {dimension_numbers = #tpu.dot_dimension_numbers<[1], [0], [0], [1], [0, 0, 1, 1], [], []>} : vector<1x80xbf16>, vector<80x500xbf16>, vector<1x500xf32> -> vector<1x500xf32>
    %224 = arith.addf %218, %223 : vector<1x500xf32>
    %225 = vector.extract_strided_slice %145 {offsets = [2, 0], sizes = [1, 80], strides = [1, 1]} : vector<3x80xf32> to vector<1x80xf32>
    %226 = arith.truncf %225 : vector<1x80xf32> to vector<1x80xbf16>
    %c2_100 = arith.constant 2 : index
    %c0_101 = arith.constant 0 : index
    %c0_102 = arith.constant 0 : index
    %227 = vector.load %arg11[%c2_100, %c0_101, %c0_102] : memref<3x80x500xbf16, #tpu.memory_space<vmem>>, vector<1x80x500xbf16>
    %228 = vector.shape_cast %227 : vector<1x80x500xbf16> to vector<80x500xbf16>
    %cst_103 = arith.constant dense<0.000000e+00> : vector<1x500xf32>
    %229 = tpu.matmul %226, %228, %cst_103 {dimension_numbers = #tpu.dot_dimension_numbers<[1], [0], [0], [1], [0, 0, 1, 1], [], []>} : vector<1x80xbf16>, vector<80x500xbf16>, vector<1x500xf32> -> vector<1x500xf32>
    %230 = arith.addf %224, %229 : vector<1x500xf32>
    %231 = arith.truncf %230 : vector<1x500xf32> to vector<1x500xbf16>
    %c0_104 = arith.constant 0 : index
    %c0_105 = arith.constant 0 : index
    %232 = vector.load %arg13[%c0_104, %c0_105] : memref<500x200xbf16, #tpu.memory_space<vmem>>, vector<500x200xbf16>
    %cst_106 = arith.constant dense<0.000000e+00> : vector<1x200xf32>
    %233 = tpu.matmul %231, %232, %cst_106 {dimension_numbers = #tpu.dot_dimension_numbers<[1], [0], [0], [1], [0, 0, 1, 1], [], []>} : vector<1x500xbf16>, vector<500x200xbf16>, vector<1x200xf32> -> vector<1x200xf32>
    %c0_107 = arith.constant 0 : index
    %c0_108 = arith.constant 0 : index
    %234 = vector.load %arg14[%c0_107, %c0_108] : memref<1x200xf32, #tpu.memory_space<vmem>>, vector<1x200xf32>
    %235 = arith.addf %233, %234 : vector<1x200xf32>
    %c0_109 = arith.constant 0 : index
    %c0_110 = arith.constant 0 : index
    %236 = vector.load %arg15[%c0_109, %c0_110] : memref<1x200xf32, #tpu.memory_space<vmem>>, vector<1x200xf32>
    %237 = arith.mulf %235, %236 : vector<1x200xf32>
    %cst_111 = arith.constant dense<0.000000e+00> : vector<1xf32>
    %238 = vector.multi_reduction <add>, %237, %cst_111 [1] : vector<1x200xf32> to vector<1xf32>
    %239 = vector.shape_cast %238 : vector<1xf32> to vector<1x1xf32>
    %c0_112 = arith.constant 0 : index
    %c0_113 = arith.constant 0 : index
    %240 = vector.load %arg16[%c0_112, %c0_113] : memref<1x1xf32, #tpu.memory_space<vmem>>, vector<1x1xf32>
    %241 = arith.addf %239, %240 : vector<1x1xf32>
    %cst_114 = arith.constant 0.000000e+00 : f32
    %242 = vector.broadcast %cst_114 : f32 to vector<1x1xf32>
    %243 = arith.subf %242, %241 : vector<1x1xf32>
    %244 = math.exp %243 : vector<1x1xf32>
    %cst_115 = arith.constant 1.000000e+00 : f32
    %245 = vector.broadcast %cst_115 : f32 to vector<1x1xf32>
    %246 = arith.addf %245, %244 : vector<1x1xf32>
    %cst_116 = arith.constant 1.000000e+00 : f32
    %247 = vector.broadcast %cst_116 : f32 to vector<1x1xf32>
    %248 = arith.divf %247, %246 : vector<1x1xf32>
    %c0_117 = arith.constant 0 : index
    %c0_118 = arith.constant 0 : index
    %249 = vector.load %arg17[%c0_117, %c0_118] : memref<1x1xf32, #tpu.memory_space<vmem>>, vector<1x1xf32>
    tpu.vector_store %arg17[%c0_117, %c0_118], %248 {strides = array<i32>} : memref<1x1xf32, #tpu.memory_space<vmem>>, vector<1x1xf32>,
    return
  }
}

</mosaic_0001>

<bundles_post_ra>
// kernel: blosum_forward.1
= control target key start
LH: loop header
LB: loop body
LE: loop exit
PB: predicated region body
PF: predicated region fallthrough
CT: control target
= control target key end

     0   :  { %s6973_s0 = inlined_call_operand.vmem [shape: f32[40,4], index: 0, kind: input, shape index: {}]   ;;  %s6974_s1 = inlined_call_operand.vmem [shape: f32[7,20], index: 1, kind: input, shape index: {}]   ;;  %s6975_s2 = inlined_call_operand.vmem [shape: f32[12,25], index: 2, kind: input, shape index: {}]   ;;  %s6976_s3 = inlined_call_operand.vmem [shape: f32[1,25], index: 3, kind: input, shape index: {}]   ;;  %s6977_s4 = inlined_call_operand.vmem [shape: f32[75,50], index: 4, kind: input, shape index: {}]   ;;  %s6978_s5 = inlined_call_operand.vmem [shape: f32[1,50], index: 5, kind: input, shape index: {}]   ;;  %s6979_s6 = inlined_call_operand.vmem [shape: f32[60,40], index: 6, kind: input, shape index: {}]   ;;  %s6980_s7 = inlined_call_operand.vmem [shape: f32[1,40], index: 7, kind: input, shape index: {}]   ;;  %s6981_s8 = inlined_call_operand.vmem [shape: f32[120,80], index: 8, kind: input, shape index: {}]   ;;  %s6982_s9 = inlined_call_operand.vmem [shape: f32[1,80], index: 9, kind: input, shape index: {}]   ;;  %s6983_s10 = inlined_call_operand.hbm [shape: bf16[11,50,500], index: 10, kind: input, shape index: {}]   ;;  %s6984_s11 = inlined_call_operand.vmem [shape: bf16[3,80,500], index: 11, kind: input, shape index: {}]   ;;  %s6985_s12 = inlined_call_operand.vmem [shape: f32[1,500], index: 12, kind: input, shape index: {}]   ;;  %s6986_s13 = inlined_call_operand.vmem [shape: bf16[500,200], index: 13, kind: input, shape index: {}]   ;;  %s6987_s14 = inlined_call_operand.vmem [shape: f32[1,200], index: 14, kind: input, shape index: {}]   ;;  %s6988_s15 = inlined_call_operand.vmem [shape: f32[1,200], index: 15, kind: input, shape index: {}]   ;;  %s6989_s16 = inlined_call_operand.<no memory space> [shape: f32[1,1], index: 16, kind: input, shape index: {}]   ;;  %s6990_s17 = inlined_call_operand.hbm [shape: f32[1,1], index: 17, kind: output, shape index: {}]  }
   0x1   :  { %6992 = sst [smem:[#allocation9_spill]] %s6973_s0  ;;  %v22_v0 = vstv %s6989_s16 }
   0x2   :  { %6993 = sst [smem:[#allocation10_spill]] %s6974_s1  ;;  %23 = vst [vmem:[#allocation2] sm:$0x1] %v22_v0 }
   0x3   :  { %24 = vsyncpa [#allocation4], 0 }
   0x4   :  { %25 = vsyncpa [#allocation5], 0  ;;  %s50_s28 = sshll.u32 %s6983_s10, 4  ;;  %s5432_s29 = smov [#allocation3]   ;;  %s51_s28 = int_to_ptr.hbm [resolvable:$true] %s50_s28 }
   0x5   :  { %s52_s0 = sshll.u32 %s5432_s29, 4  ;;  %s5433_s30 = smov 256   ;;  %s53_s0 = int_to_ptr.vmem [resolvable:$true] %s52_s0 }
   0x6   :  { %s5434_s18 = smov 16  }
   0x7   :  { %58 = dma.hbm_to_vmem [thread:$0]  %s51_s28, 19712, %s53_s0, [#allocation4], %s5433_s30, %s5433_s30, %s5434_s18  }
   0x8   :  { %5428 = dma.done.wait [#allocation4], 19712  }
   0x9   :  { %5429 = vsyncadd [#allocation4], 4294947584  ;;  %vm121_vm0 = vcmask 1043456   ;;  %v82_v1 = vld [vmem:[%s6975_s2 + $0x8] sm:$0xf]  ;;  %s6994_s21 = sld [smem:[#allocation9_spill]]  ;;  %v296_v62 = vlaneseq }
   0xa   :  { %vm89_vm1 = vcmask 1041408   ;;  %3940 = vmatpush.msk.msra.mxu2 %vm121_vm0, %v82_v1  ;;  %v81_v6 = vld [vmem:[%s6975_s2] sm:$0xff]  ;;  %vm106_vm2 = vcmask 31744   ;;  %vm228_vm3 = vcmask 1045504   ;;  %vm160_vm4 = vcmask 1046528   ;;  %s6995_s10 = sld [smem:[#allocation10_spill]] }
   0xb   :  { %3926 = vmatpush.msk.msra.mxu0 %vm121_vm0, %v81_v6  ;;  %v172_v8 = vrot.slane %v81_v6, 4  ;;  %v5372_v56 = vld [vmem:[%s6976_s3] ss:$0 sm:$0xff]  ;;  %vm326_vm6 = vcmask 343040   ;;  %vm441_vm12 = vcmask 1040384   ;;  %vm432_vm13 = vcmask 203776  }
   0xc   :  { %vm664_vm14 = vcmask 162816   ;;  %vm584_vm15 = vcmask 187392  }
   0xd   :  { %3933 = vmatpush.msk.msra.mxu1 %vm121_vm0, %v172_v8 }
   0xf   :  { %v76_v2 = vld [vmem:[%s6994_s21] sm:$0xff]  ;;  %v77_v3 = vld [vmem:[%s6994_s21 + $0x8] sm:$0xff]  ;;  %v78_v7 = vld [vmem:[%s6994_s21 + $0x10] sm:$0xff] }
  0x10   :  { %v90_v4 = vrot.slane %v76_v2, 6  ;;  %v91_v5 = vrot.slane %v77_v3, 6  ;;  %v93_v9 = vrot.slane %v78_v7, 6  ;;  %v79_v19 = vld [vmem:[%s6994_s21 + $0x18] sm:$0xff]  ;;  %v80_v26 = vld [vmem:[%s6994_s21 + $0x20] sm:$0xff] }
  0x11   :  { %v95_v22 = vrot.slane %v79_v19, 6  ;;  %v97_v29 = vrot.slane %v80_v26, 6 }
  0x12   :  { %v92_v10 = vsel %vm89_vm1, %v90_v4, %v91_v5  ;;  %v101_v11 = vsel %vm89_vm1, 0.0, %v90_v4  ;;  %v94_v16 = vsel %vm89_vm1, %v91_v5, %v93_v9  ;;  %v297_v4 = vshrl.u32 %v296_v62, 7 }
  0x13   :  { %v229_v12 = vrot.slane %v101_v11, 2  ;;  %v230_v13 = vrot.slane %v92_v10, 2  ;;  %3927 = vmatmul.msk.f32.vlgmr.msra.gmra.mxu0 %vm106_vm2, %v101_v11  ;;  %v161_v14 = vrot.slane %v101_v11, 1  ;;  %v162_v15 = vrot.slane %v92_v10, 1 }
  0x14   :  { %v232_v20 = vrot.slane %v94_v16, 2  ;;  %v164_v21 = vrot.slane %v94_v16, 1  ;;  %v96_v25 = vsel %vm89_vm1, %v93_v9, %v95_v22  ;;  %v98_v32 = vsel %vm89_vm1, %v95_v22, %v97_v29 }
  0x15   :  { %v231_v17 = vsel %vm228_vm3, %v229_v12, %v230_v13  ;;  %v163_v18 = vsel %vm160_vm4, %v161_v14, %v162_v15  ;;  %v234_v27 = vrot.slane %v96_v25, 2  ;;  %v166_v28 = vrot.slane %v96_v25, 1 }
  0x16   :  { %3941 = vmatmul.msk.f32.vlgmr.msra.gmra.mxu2 %vm106_vm2, %v231_v17  ;;  %3934 = vmatmul.msk.f32.vlgmr.msra.gmra.mxu1 %vm106_vm2, %v163_v18  ;;  %v233_v23 = vsel %vm228_vm3, %v230_v13, %v232_v20  ;;  %v165_v24 = vsel %vm160_vm4, %v162_v15, %v164_v21  ;;  %v236_v33 = vrot.slane %v98_v32, 2  ;;  %v168_v34 = vrot.slane %v98_v32, 1 }
  0x17   :  { %v235_v30 = vsel %vm228_vm3, %v232_v20, %v234_v27  ;;  %v167_v31 = vsel %vm160_vm4, %v164_v21, %v166_v28  ;;  %v102_v37 = vsel %vm89_vm1, %v97_v29, 0.0  ;;  %v301_v11 = vand.u32 127, %v296_v62 }
  0x18   :  { %v237_v35 = vsel %vm228_vm3, %v234_v27, %v236_v33  ;;  %v169_v36 = vsel %vm160_vm4, %v166_v28, %v168_v34  ;;  %v238_v38 = vrot.slane %v102_v37, 2  ;;  %v170_v39 = vrot.slane %v102_v37, 1 }
  0x19   :  { %v302_v12 = vmul.u32 2, %v297_v4  ;;  %v298_v17 = vadd.s32 8, %v297_v4  ;;  %v5435_v20 = vmov 0.0  }
  0x1a   :  { %v239_v40 = vsel %vm228_vm3, %v236_v33, %v238_v38  ;;  %v171_v41 = vsel %vm160_vm4, %v168_v34, %v170_v39  ;;  %v415_v33 = vld [vmem:[%s6977_s4 + $0x48] sm:$0x7] }
  0x1b   :  { %3928 = vmatmul.msk.f32.gmra.mxu0 %vm106_vm2, %v92_v10  ;;  %vm305_vm5 = vcmp.eq.s32.totalorder %v301_v11, %v302_v12  ;;  %v303_v22 = vmul.u32 2, %v298_v17  ;;  %v314_v27 = vadd.s32 1, %v302_v12  ;;  %v542_v34 = vrot.slane %v415_v33, 2 }
  0x1c   :  { %v5596_v21 = vsel %vm305_vm5, 1.0, %v5435_v20  ;;  %vm921_vm5 = vcmask 48128  }
  0x1d   :  { %vm306_vm7 = vcmp.eq.s32.totalorder %v301_v11, %v303_v22  ;;  %vm317_vm9 = vcmp.eq.s32.totalorder %v301_v11, %v314_v27  ;;  %v315_v29 = vadd.s32 1, %v303_v22  ;;  %3969 = vmatpush.msk.msrb.mxu2 %vm441_vm12, %v542_v34 }
  0x1e   :  { %3942 = vmatmul.msk.f32.gmra.mxu2 %vm106_vm2, %v233_v23  ;;  %3935 = vmatmul.msk.f32.gmra.mxu1 %vm106_vm2, %v165_v24  ;;  %v299_v23 = vadd.s32 16, %v297_v4  ;;  %v5602_v24 = vsel %vm306_vm7, 1.0, %v5435_v20  ;;  %v5609_v28 = vsel %vm317_vm9, 1.0, %v5435_v20  ;;  %vm3758_vm7 = vcmask 949248  }
  0x1f   :  { %vm318_vm10 = vcmp.eq.s32.totalorder %v301_v11, %v315_v29 }
  0x23   :  { %3929 = vmatmul.msk.f32.gmra.mxu0 %vm106_vm2, %v94_v16 }
  0x26   :  { %3943 = vmatmul.msk.f32.gmra.mxu2 %vm106_vm2, %v235_v30  ;;  %3936 = vmatmul.msk.f32.gmra.mxu1 %vm106_vm2, %v167_v31  ;;  %v5614_v30 = vsel %vm318_vm10, 1.0, %v5435_v20 }
  0x2b   :  { %3930 = vmatmul.msk.f32.gmra.mxu0 %vm106_vm2, %v96_v25  ;;  %v304_v25 = vmul.u32 2, %v299_v23 }
  0x2d   :  { %vm307_vm8 = vcmp.eq.s32.totalorder %v301_v11, %v304_v25  ;;  %v316_v31 = vadd.s32 1, %v304_v25  ;;  %v532_v25 = vrot.slane %v5435_v20, 2 }
  0x2e   :  { %3944 = vmatmul.msk.f32.gmra.mxu2 %vm106_vm2, %v237_v35  ;;  %3937 = vmatmul.msk.f32.gmra.mxu1 %vm106_vm2, %v169_v36  ;;  %v3949_v26 = vsel %vm307_vm8, 1.0, %v5435_v20  ;;  %v409_v35 = vld [vmem:[%s6977_s4 + $0x18] sm:$0xff]  ;;  %v412_v36 = vld [vmem:[%s6977_s4 + $0x30] sm:$0xff] }
  0x2f   :  { %vm319_vm11 = vcmp.eq.s32.totalorder %v301_v11, %v316_v31  ;;  %3961 = vmatpush.msk.msrb.mxu0 %vm441_vm12, %v409_v35 }
  0x33   :  { %3931 = vmatmul.msk.f32.gmra.mxu0 %vm106_vm2, %v98_v32  ;;  %v3952_v32 = vsel %vm319_vm11, 1.0, %v5435_v20  ;;  %v649_v20 = vld [vmem:[%s6979_s6 + $0x10] sm:$0xff]  ;;  %vm3907_vm11 = vcmask 0  }
  0x36   :  { %3945 = vmatmul.msk.f32.gmra.mxu2 %vm106_vm2, %v239_v40  ;;  %3938 = vmatmul.msk.f32.gmra.mxu1 %vm106_vm2, %v171_v41  ;;  %v407_v40 = vld [vmem:[%s6977_s4 + $0x8] sm:$0xff]  ;;  %v406_v41 = vld [vmem:[%s6977_s4] sm:$0xff] }
  0x3b   :  { %3932 = vmatmul.msk.f32.gmra.mxu0 %vm106_vm2, %v102_v37  ;;  %v484_v37 = vrot.slane %v412_v36, 1 }
  0x3d   :  { %3965 = vmatpush.msk.msrb.mxu1 %vm441_vm12, %v484_v37 }
  0x3e   :  { %3946 = vmatmul.msk.f32.gmra.mxu2 %vm106_vm2, %v238_v38  ;;  %3939 = vmatmul.msk.f32.gmra.mxu1 %vm106_vm2, %v170_v39  ;;  %v408_v38 = vld [vmem:[%s6977_s4 + $0x10] sm:$0xff]  ;;  %v414_v39 = vld [vmem:[%s6977_s4 + $0x40] sm:$0xff]  ;;  %vm849_vm2 = vcmask 326656  }
  0x3f   :  { %458 = vmatpush.msrb.mxu0 %v408_v38  ;;  %v646_v38 = vld [vmem:[%s6995_s10] sm:$0x7f]  ;;  %s3916_s10 = sshll.u32 %s6990_s17, 4  ;;  %s3917_s10 = int_to_ptr.hbm [resolvable:$true] %s3916_s10 }
  0x41   :  { %459 = vmatpush.msrb.mxu0 %v407_v40 }
  0x43   :  { %460 = vmatpush.msrb.mxu0 %v406_v41  ;;  %v657_v41 = vrot.slane %v646_v38, 6 }
  0x90   :  { %v142_v42 = vpop.f32.mrf.mxu0 }
  0x91   :  { %v143_v8 = vadd.f32 %v5372_v56, %v142_v42  ;;  %v540_v42 = vrot.slane %v414_v39, 2  ;;  %v648_v39 = vld [vmem:[%s6979_s6 + $0x8] sm:$0xff] }
  0x93   :  { %v204_v43 = vpop.f32.mrf.mxu1 }
  0x94   :  { %v222_v15 = vadd.f32 %v204_v43, %v143_v8  ;;  %v411_v43 = vld [vmem:[%s6977_s4 + $0x28] sm:$0xff] }
  0x98   :  { %v145_v44 = vpop.f32.mrf.mxu0 }
  0x99   :  { %v272_v45 = vpop.f32.mrf.mxu2  ;;  %v146_v5 = vadd.f32 %v5372_v56, %v145_v44  ;;  %v482_v44 = vrot.slane %v411_v43, 1 }
  0x9a   :  { %v290_v19 = vadd.f32 %v272_v45, %v222_v15 }
  0x9b   :  { %v207_v46 = vpop.f32.mrf.mxu1 }
  0x9c   :  { %v223_v13 = vadd.f32 %v207_v46, %v146_v5  ;;  %v543_v46 = vsel %vm228_vm3, %v540_v42, %v542_v34 }
  0x9d   :  { %568 = vmatpush.msrb.mxu2 %v543_v46 }
  0xa0   :  { %v148_v47 = vpop.f32.mrf.mxu0 }
  0xa1   :  { %v275_v48 = vpop.f32.mrf.mxu2  ;;  %v149_v1 = vadd.f32 %v5372_v56, %v148_v47  ;;  %v485_v47 = vsel %vm160_vm4, %v482_v44, %v484_v37  ;;  %v702_v37 = vrot.slane %v649_v20, 4 }
  0xa2   :  { %v291_v18 = vadd.f32 %v275_v48, %v223_v13  ;;  %510 = vmatpush.msrb.mxu1 %v485_v47  ;;  %v413_v48 = vld [vmem:[%s6977_s4 + $0x38] sm:$0xff] }
  0xa3   :  { %v210_v49 = vpop.f32.mrf.mxu1 }
  0xa4   :  { %v224_v9 = vadd.f32 %v210_v49, %v149_v1  ;;  %v410_v49 = vld [vmem:[%s6977_s4 + $0x20] sm:$0xff] }
  0xa8   :  { %v151_v50 = vpop.f32.mrf.mxu0 }
  0xa9   :  { %v278_v51 = vpop.f32.mrf.mxu2  ;;  %v152_v63 = vadd.f32 %v5372_v56, %v151_v50  ;;  %v479_v50 = vrot.slane %v409_v35, 1  ;;  %v650_v35 = vld [vmem:[%s6979_s6 + $0x18] sm:$0xff] }
  0xaa   :  { %v292_v16 = vadd.f32 %v278_v51, %v224_v9  ;;  %v538_v51 = vrot.slane %v413_v48, 2 }
  0xab   :  { %v213_v52 = vpop.f32.mrf.mxu1 }
  0xac   :  { %v225_v6 = vadd.f32 %v213_v52, %v152_v63  ;;  %v480_v52 = vrot.slane %v410_v49, 1 }
  0xb0   :  { %v154_v53 = vpop.f32.mrf.mxu0 }
  0xb1   :  { %v281_v54 = vpop.f32.mrf.mxu2  ;;  %v155_v61 = vadd.f32 %v5372_v56, %v154_v53 }
  0xb2   :  { %v293_v14 = vadd.f32 %v281_v54, %v225_v6  ;;  %v541_v54 = vsel %vm228_vm3, %v538_v51, %v540_v42 }
  0xb3   :  { %v216_v55 = vpop.f32.mrf.mxu1  ;;  %569 = vmatpush.msrb.mxu2 %v541_v54 }
  0xb4   :  { %v226_v2 = vadd.f32 %v216_v55, %v155_v61  ;;  %v483_v55 = vsel %vm160_vm4, %v480_v52, %v482_v44  ;;  %v659_v44 = vsel %vm89_vm1, 0.0, %v657_v41 }
  0xb5   :  { %511 = vmatpush.msrb.mxu1 %v483_v55  ;;  %v697_v46 = vrot.slane %v659_v44, 1 }
  0xb8   :  { %v157_v57 = vpop.f32.mrf.mxu0 }
  0xb9   :  { %v284_v58 = vpop.f32.mrf.mxu2  ;;  %v158_v59 = vadd.f32 %v5372_v56, %v157_v57  ;;  %v537_v56 = vrot.slane %v412_v36, 2  ;;  %v481_v57 = vsel %vm160_vm4, %v479_v50, %v480_v52  ;;  %v703_v36 = vrot.slane %v650_v35, 4  ;;  %v647_v50 = vld [vmem:[%s6979_s6] sm:$0xff]  ;;  %v831_v35 = vld [vmem:[%s6981_s8 + $0x30] sm:$0xff] }
  0xba   :  { %v294_v10 = vadd.f32 %v284_v58, %v226_v2  ;;  %512 = vmatpush.msrb.mxu1 %v481_v57  ;;  %v5373_v52 = vld [vmem:[%s6978_s5] ss:$0 sm:$0xff] }
  0xbb   :  { %v219_v60 = vpop.f32.mrf.mxu1  ;;  %v539_v58 = vsel %vm228_vm3, %v537_v56, %v538_v51  ;;  %v704_v43 = vsel %vm121_vm0, %v702_v37, %v703_v36 }
  0xbc   :  { %v227_v0 = vadd.f32 %v219_v60, %v158_v59  ;;  %570 = vmatpush.msrb.mxu2 %v539_v58  ;;  %3979 = vmatpush.msk.msra.mxu1 %vm121_vm0, %v649_v20  ;;  %v836_v20 = vld [vmem:[%s6981_s8 + $0x58] sm:$0xff] }
  0xbe   :  { %688 = vmatpush.msra.mxu1 %v648_v39  ;;  %v830_v39 = vld [vmem:[%s6981_s8 + $0x28] sm:$0xff] }
  0xc0   :  { %689 = vmatpush.msra.mxu1 %v647_v50  ;;  %v825_v50 = vld [vmem:[%s6981_s8] sm:$0xff] }
  0xc1   :  { %v287_v3 = vpop.f32.mrf.mxu2 }
  0xc2   :  { %v295_v7 = vadd.f32 %v287_v3, %v227_v0 }
  0xc4   :  { %3953 = vmatpush.msk.msra.mxu3 %vm89_vm1, %v295_v7 }
  0xc6   :  { %350 = vmatpush.msra.mxu3 %v294_v10 }
  0xc8   :  { %351 = vmatpush.msra.mxu3 %v293_v14 }
  0xca   :  { %352 = vmatpush.msra.mxu3 %v292_v16 }
  0xcc   :  { %353 = vmatpush.msra.mxu3 %v291_v18 }
  0xce   :  { %354 = vmatpush.msra.mxu3 %v290_v19 }
  0xcf   :  { %3954 = vmatmul.msk.f32.vlgmr.msra.gmra.mxu3 %vm326_vm6, %v5596_v21 }
  0xd0   :  { %3957 = vmatpush.msk.msrb.mxu3 %vm89_vm1, %v295_v7 }
  0xd2   :  { %385 = vmatpush.msrb.mxu3 %v294_v10 }
  0xd4   :  { %386 = vmatpush.msrb.mxu3 %v293_v14 }
  0xd6   :  { %387 = vmatpush.msrb.mxu3 %v292_v16 }
  0xd7   :  { %3955 = vmatmul.msk.f32.gmra.mxu3 %vm326_vm6, %v5602_v24 }
  0xd8   :  { %388 = vmatpush.msrb.mxu3 %v291_v18 }
  0xda   :  { %389 = vmatpush.msrb.mxu3 %v290_v19 }
  0xdf   :  { %3956 = vmatmul.msk.f32.gmra.mxu3 %vm326_vm6, %v3949_v26 }
  0xe7   :  { %3958 = vmatmul.msk.f32.vlgmr.msrb.gmra.mxu3 %vm326_vm6, %v5609_v28 }
  0xef   :  { %3959 = vmatmul.msk.f32.gmra.mxu3 %vm326_vm6, %v5614_v30 }
  0xf7   :  { %3960 = vmatmul.msk.f32.gmra.mxu3 %vm326_vm6, %v3952_v32  ;;  %v651_v32 = vld [vmem:[%s6979_s6 + $0x20] sm:$0xff]  ;;  %vm1133_vm6 = vcmask 1042434  }
  0xf8   :  { %v705_v34 = vrot.slane %v651_v32, 4  ;;  %v829_v32 = vld [vmem:[%s6981_s8 + $0x20] sm:$0xff] }
  0xfa   :  { %3982 = vmatpush.msk.msra.mxu2 %vm121_vm0, %v705_v34  ;;  %v706_v42 = vsel %vm121_vm0, %v703_v36, %v705_v34  ;;  %v828_v36 = vld [vmem:[%s6981_s8 + $0x18] sm:$0xff] }
  0xfc   :  { %729 = vmatpush.msra.mxu2 %v706_v42 }
  0xfe   :  { %730 = vmatpush.msra.mxu2 %v704_v43 }
 0x152   :  { %v356_v45 = vpop.f32.mrf.mxu3 }
 0x15a   :  { %v359_v53 = vpop.f32.mrf.mxu3 }
 0x162   :  { %v362_v59 = vpop.f32.mrf.mxu3 }
 0x16a   :  { %v391_v60 = vpop.f32.mrf.mxu3 }
 0x16b   :  { %v400_v61 = vmax.f32 %v356_v45, %v391_v60  ;;  %v660_v45 = vsel %vm441_vm12, %v657_v41, 0.0  ;;  %v827_v41 = vld [vmem:[%s6981_s8 + $0x10] sm:$0xff] }
 0x16c   :  { %v698_v47 = vrot.slane %v660_v45, 1 }
 0x16d   :  { %v403_v62 = vmax.f32 %v400_v61, 0.0 }
 0x16e   :  { %v699_v48 = vsel %vm160_vm4, %v697_v46, %v698_v47  ;;  %v5123_v46 = vld [vmem:[#allocation3 + $0x4c] sm:$0xf0] }
 0x16f   :  { %v420_v63 = vrot.slane %v403_v62, 6 }
 0x171   :  { %v427_v0 = vsel %vm89_vm1, 0.0, %v420_v63 }
 0x172   :  { %v394_v1 = vpop.f32.mrf.mxu3  ;;  %3962 = vmatmul.msk.f32.vlgmr.msrb.gmra.mxu0 %vm432_vm13, %v427_v0  ;;  %v471_v6 = vrot.slane %v427_v0, 1  ;;  %v527_v7 = vrot.slane %v427_v0, 2  ;;  %v654_v0 = vld [vmem:[%s6979_s6 + $0x38] sm:$0xf] }
 0x173   :  { %v401_v2 = vmax.f32 %v359_v53, %v394_v1  ;;  %v653_v1 = vld [vmem:[%s6979_s6 + $0x30] sm:$0xff] }
 0x175   :  { %v404_v3 = vmax.f32 %v401_v2, 0.0  ;;  %v652_v2 = vld [vmem:[%s6979_s6 + $0x28] sm:$0xff] }
 0x177   :  { %v421_v4 = vrot.slane %v404_v3, 6  ;;  %v740_v3 = vrot.slane %v659_v44, 2 }
 0x179   :  { %v422_v5 = vsel %vm89_vm1, %v420_v63, %v421_v4 }
 0x17a   :  { %v397_v8 = vpop.f32.mrf.mxu3  ;;  %3963 = vmatmul.msk.f32.gmra.mxu0 %vm432_vm13, %v422_v5  ;;  %v472_v9 = vrot.slane %v422_v5, 1  ;;  %v528_v10 = vrot.slane %v422_v5, 2 }
 0x17b   :  { %v402_v11 = vmax.f32 %v362_v59, %v397_v8 }
 0x17c   :  { %v473_v12 = vsel %vm160_vm4, %v471_v6, %v472_v9  ;;  %v529_v13 = vsel %vm228_vm3, %v527_v7, %v528_v10  ;;  %v834_v6 = vld [vmem:[%s6981_s8 + $0x48] sm:$0xff]  ;;  %v833_v7 = vld [vmem:[%s6981_s8 + $0x40] sm:$0xff] }
 0x17d   :  { %v405_v14 = vmax.f32 %v402_v11, 0.0  ;;  %3966 = vmatmul.msk.f32.vlgmr.msrb.gmra.mxu1 %vm432_vm13, %v473_v12  ;;  %3970 = vmatmul.msk.f32.vlgmr.msrb.gmra.mxu2 %vm432_vm13, %v529_v13  ;;  %v5374_v12 = vld [vmem:[%s6980_s7] ss:$0 sm:$0xff] }
 0x17e   :  { %864 = vmatpush.msrb.mxu2 %v829_v32  ;;  %v5808_v32 = vld [vmem:[#allocation3 + $0x148] sm:$0x11] }
 0x17f   :  { %v423_v15 = vrot.slane %v405_v14, 6 }
 0x180   :  { %865 = vmatpush.msrb.mxu2 %v828_v36  ;;  %v5130_v36 = vld [vmem:[#allocation3 + $0x9c] sm:$0xf] }
 0x181   :  { %v424_v16 = vsel %vm89_vm1, %v421_v4, %v423_v15  ;;  %v741_v4 = vrot.slane %v660_v45, 2 }
 0x182   :  { %v428_v17 = vsel %vm160_vm4, %v424_v16, 0.0  ;;  %866 = vmatpush.msrb.mxu2 %v827_v41 }
 0x183   :  { %3964 = vmatmul.msk.f32.gmra.mxu0 %vm432_vm13, %v428_v17  ;;  %v474_v18 = vrot.slane %v428_v17, 1  ;;  %v530_v19 = vrot.slane %v428_v17, 2  ;;  %v742_v5 = vsel %vm228_vm3, %v740_v3, %v741_v4  ;;  %v5797_v3 = vld [vmem:[#allocation3 + $0xd8] sm:$0x11] }
 0x185   :  { %v475_v22 = vsel %vm160_vm4, %v472_v9, %v474_v18  ;;  %v531_v23 = vsel %vm228_vm3, %v528_v10, %v530_v19  ;;  %v533_v26 = vsel %vm228_vm3, %v530_v19, %v532_v25  ;;  %v839_v25 = vld [vmem:[%s6981_s8 + $0x70] sm:$0xff] }
 0x186   :  { %3967 = vmatmul.msk.f32.gmra.mxu1 %vm432_vm13, %v475_v22  ;;  %3971 = vmatmul.msk.f32.gmra.mxu2 %vm432_vm13, %v531_v23 }
 0x18e   :  { %3968 = vmatmul.msk.f32.gmra.mxu1 %vm432_vm13, %v474_v18  ;;  %3972 = vmatmul.msk.f32.gmra.mxu2 %vm432_vm13, %v533_v26  ;;  %v838_v26 = vld [vmem:[%s6981_s8 + $0x68] sm:$0xff] }
 0x196   :  { %3983 = vmatmul.msk.f32.vlgmr.msra.gmra.mxu2 %vm664_vm14, %v699_v48  ;;  %3980 = vmatmul.msk.f32.vlgmr.msra.gmra.mxu1 %vm664_vm14, %v659_v44  ;;  %v826_v44 = vld [vmem:[%s6981_s8 + $0x8] sm:$0xff] }
 0x197   :  { %867 = vmatpush.msrb.mxu2 %v826_v44  ;;  %v5122_v48 = vld [vmem:[#allocation3 + $0x4c] sm:$0xf]  ;;  %v5127_v44 = vld [vmem:[#allocation3 + $0x7c] sm:$0xf0] }
 0x199   :  { %868 = vmatpush.msrb.mxu2 %v825_v50 }
 0x19e   :  { %3984 = vmatmul.msk.f32.gmra.mxu2 %vm664_vm14, %v698_v47  ;;  %3981 = vmatmul.msk.f32.gmra.mxu1 %vm664_vm14, %v660_v45  ;;  %v4033_v45 = vld [vmem:[#allocation3 + $0x40] sm:$0xf] }
 0x19f   :  { %v4034_v47 = vor.u32 %v5123_v46, %v4033_v45  ;;  %v5126_v45 = vld [vmem:[#allocation3 + $0x7c] sm:$0xf]  ;;  %v4063_v46 = vld [vmem:[#allocation3 + $0x88] sm:$0xf0] }
 0x1a0   :  { %v4066_v50 = vor.u32 %v5126_v45, %v4063_v46  ;;  %v5150_v45 = vld [vmem:[#allocation3 + $0x15c] sm:$0xf]  ;;  %v4167_v46 = vld [vmem:[#allocation3 + $0x168] sm:$0xf0] }
 0x1ef   :  { %v462_v27 = vpop.f32.mrf.mxu0 }
 0x1f0   :  { %v463_v58 = vadd.f32 %v5373_v52, %v462_v27  ;;  %v837_v27 = vld [vmem:[%s6981_s8 + $0x60] sm:$0xff] }
 0x1f7   :  { %v465_v33 = vpop.f32.mrf.mxu0 }
 0x1f8   :  { %v466_v55 = vadd.f32 %v5373_v52, %v465_v33 }
 0x1fa   :  { %v514_v29 = vpop.f32.mrf.mxu1 }
 0x1fb   :  { %v523_v61 = vadd.f32 %v514_v29, %v463_v58  ;;  %v5758_v29 = vld [vmem:[#allocation3 + $0x60] sm:$0x11]  ;;  %v5115_v58 = vld [vmem:[#allocation3 + $0xc] sm:$0xf0] }
 0x1fc   :  { %v1025_v33 = vunpack.c.l.b16 %v5758_v29 }
 0x1fe   :  { %v1041_v37 = vpack.c.b16 %v1025_v33, %v1025_v33 }
 0x200   :  { %v572_v31 = vpop.f32.mrf.mxu2  ;;  %v468_v51 = vpop.f32.mrf.mxu0  ;;  %v1062_v42 = vsel %vm441_vm12, %v1041_v37, 0  ;;  %v4079_v37 = vld [vmem:[#allocation3 + $0xa8] sm:$0xf0] }
 0x201   :  { %v469_v54 = vadd.f32 %v5373_v52, %v468_v51  ;;  %v581_v63 = vadd.f32 %v572_v31, %v523_v61  ;;  %v5760_v31 = vld [vmem:[#allocation3 + $0x68] sm:$0x11]  ;;  %v4017_v52 = vld [vmem:[#allocation3 + $0x20] sm:$0xf]  ;;  %v4011_v61 = vld [vmem:[#allocation3 + $0x18] sm:$0xf0]  ;;  %v4082_v41 = vor.u32 %v5130_v36, %v4079_v37 }
 0x202   :  { %v1028_v34 = vunpack.c.h.b16 %v5760_v31  ;;  %v5154_v36 = vld [vmem:[#allocation3 + $0x17c] sm:$0xf]  ;;  %v4183_v37 = vld [vmem:[#allocation3 + $0x188] sm:$0xf0] }
 0x203   :  { %v517_v40 = vpop.f32.mrf.mxu1 }
 0x204   :  { %v524_v59 = vadd.f32 %v517_v40, %v466_v55  ;;  %v1044_v38 = vpack.c.b16 %v1028_v34, %v1028_v34  ;;  %v835_v40 = vld [vmem:[%s6981_s8 + $0x50] sm:$0xff] }
 0x206   :  { %v1071_v43 = vsel %vm441_vm12, %v1044_v38, 0 }
 0x209   :  { %v575_v49 = vpop.f32.mrf.mxu2 }
 0x20a   :  { %v582_v62 = vadd.f32 %v575_v49, %v524_v59  ;;  %v4043_v49 = vld [vmem:[#allocation3 + $0x58] sm:$0xf0] }
 0x20b   :  { %v520_v53 = vpop.f32.mrf.mxu1  ;;  %v4046_v51 = vor.u32 %v5122_v48, %v4043_v49 }
 0x20c   :  { %v525_v56 = vadd.f32 %v520_v53, %v469_v54  ;;  %v5119_v53 = vld [vmem:[#allocation3 + $0x2c] sm:$0xf0]  ;;  %v5118_v54 = vld [vmem:[#allocation3 + $0x2c] sm:$0xf] }
 0x20d   :  { %v4018_v55 = vor.u32 %v5119_v53, %v4017_v52  ;;  %v5147_v52 = vld [vmem:[#allocation3 + $0x12c] sm:$0xf0] }
 0x211   :  { %v578_v57 = vpop.f32.mrf.mxu2 }
 0x212   :  { %v583_v60 = vadd.f32 %v578_v57, %v525_v56  ;;  %v4027_v56 = vld [vmem:[#allocation3 + $0x38] sm:$0xf0]  ;;  %v4001_v57 = vld [vmem:[#allocation3] sm:$0xf] }
 0x213   :  { %v691_v8 = vpop.f32.mrf.mxu1  ;;  %v4030_v59 = vor.u32 %v5118_v54, %v4027_v56  ;;  %v4147_v56 = vld [vmem:[#allocation3 + $0x138] sm:$0xf0] }
 0x214   :  { %3973 = vmatpush.msk.msra.mxu3 %vm160_vm4, %v583_v60  ;;  %3976 = vmatpush.msk.msra.mxu0 %vm160_vm4, %v583_v60  ;;  %v692_v16 = vadd.f32 %v5374_v12, %v691_v8  ;;  %v5114_v60 = vld [vmem:[#allocation3 + $0xc] sm:$0xf]  ;;  %vm1057_vm4 = vcmask 408576  }
 0x216   :  { %606 = vmatpush.msra.mxu3 %v582_v62  ;;  %633 = vmatpush.msra.mxu0 %v582_v62  ;;  %v4002_v62 = vor.u32 %v5115_v58, %v4001_v57  ;;  %v5820_v57 = vld [vmem:[#allocation3 + $0x1b0] sm:$0x11]  ;;  %v5822_v58 = vld [vmem:[#allocation3 + $0x1b8] sm:$0x11] }
 0x218   :  { %607 = vmatpush.msra.mxu3 %v581_v63  ;;  %634 = vmatpush.msra.mxu0 %v581_v63 }
 0x219   :  { %3974 = vmatmul.msk.f32.vlgmr.msra.gmra.mxu3 %vm584_vm15, %v5596_v21  ;;  %3977 = vmatmul.msk.f32.vlgmr.msra.gmra.mxu0 %vm584_vm15, %v5609_v28  ;;  %v732_v10 = vpop.f32.mrf.mxu2 }
 0x21a   :  { %3985 = vmatpush.msk.msrb.mxu3 %vm121_vm0, %v654_v0  ;;  %v738_v18 = vadd.f32 %v732_v10, %v692_v16  ;;  %vm775_vm0 = vcmask 72704   ;;  %v4014_v0 = vor.u32 %v5114_v60, %v4011_v61  ;;  %v4121_v61 = vld [vmem:[#allocation3 + $0x100] sm:$0xf] }
 0x21b   :  { %v694_v11 = vpop.f32.mrf.mxu1 }
 0x21c   :  { %764 = vmatpush.msrb.mxu3 %v653_v1  ;;  %v695_v14 = vadd.f32 %v5374_v12, %v694_v11 }
 0x21e   :  { %765 = vmatpush.msrb.mxu3 %v652_v2  ;;  %v5795_v2 = vld [vmem:[#allocation3 + $0xd0] sm:$0x11] }
 0x220   :  { %887 = vmatpush.msra.mxu3 %v834_v6 }
 0x221   :  { %3975 = vmatmul.msk.f32.gmra.mxu3 %vm584_vm15, %v5602_v24  ;;  %3978 = vmatmul.msk.f32.gmra.mxu0 %vm584_vm15, %v5614_v30  ;;  %v832_v30 = vld [vmem:[%s6981_s8 + $0x38] sm:$0xff]  ;;  %v735_v15 = vpop.f32.mrf.mxu2 }
 0x222   :  { %888 = vmatpush.msra.mxu3 %v833_v7  ;;  %v739_v17 = vadd.f32 %v735_v15, %v695_v14  ;;  %v1193_v7 = vunpack.c.l.b16 %v5795_v2  ;;  %v4085_v14 = vld [vmem:[#allocation3 + $0xb0] sm:$0xf] }
 0x224   :  { %889 = vmatpush.msra.mxu3 %v832_v30  ;;  %v1196_v30 = vunpack.c.h.b16 %v5797_v3  ;;  %v1209_v11 = vpack.c.b16 %v1193_v7, %v1193_v7 }
 0x226   :  { %890 = vmatpush.msra.mxu3 %v831_v35  ;;  %v1212_v12 = vpack.c.b16 %v1196_v30, %v1196_v30  ;;  %v4069_v35 = vld [vmem:[#allocation3 + $0x90] sm:$0xf]  ;;  %v4105_v30 = vld [vmem:[#allocation3 + $0xe0] sm:$0xf] }
 0x228   :  { %891 = vmatpush.msra.mxu3 %v830_v39  ;;  %v1362_v39 = vunpack.c.h.b16 %v5808_v32 }
 0x229   :  { %3986 = vmatmul.msk.f32.vlgmr.msrb.gmra.mxu3 %vm664_vm14, %v742_v5 }
 0x22a   :  { %1077 = vmatpush.bf16.msrb.mxu3 %v1062_v42  ;;  %v4053_v42 = vld [vmem:[#allocation3 + $0x70] sm:$0xf]  ;;  %v1378_v48 = vpack.c.b16 %v1362_v39, %v1362_v39 }
 0x22b   :  { %v4054_v49 = vor.u32 %v5127_v44, %v4053_v42  ;;  %v4157_v42 = vld [vmem:[#allocation3 + $0x150] sm:$0xf]  ;;  %v5151_v44 = vld [vmem:[#allocation3 + $0x15c] sm:$0xf0] }
 0x22c   :  { %v1404_v54 = vsel %vm441_vm12, %v1378_v48, 0 }
 0x22e   :  { %1078 = vmatpush.bf16.msrb.mxu3 %v4034_v47 }
 0x231   :  { %3987 = vmatmul.msk.f32.gmra.mxu3 %vm664_vm14, %v741_v4 }
 0x232   :  { %1079 = vmatpush.bf16.msrb.mxu3 %v4018_v55  ;;  %v5146_v55 = vld [vmem:[#allocation3 + $0x12c] sm:$0xf] }
 0x233   :  { %v4150_v60 = vor.u32 %v5146_v55, %v4147_v56  ;;  %v5170_v56 = vld [vmem:[#allocation3 + $0x20c] sm:$0xf] }
 0x236   :  { %1080 = vmatpush.bf16.msrb.mxu3 %v4002_v62  ;;  %v5143_v62 = vld [vmem:[#allocation3 + $0x10c] sm:$0xf0] }
 0x296   :  { %v636_v63 = vpop.f32.mrf.mxu0 }
 0x29c   :  { %v5735_v24 = vpop.f32.mrf.mxu3 }
 0x29d   :  { %v642_v15 = vmax.f32 %v5735_v24, %v636_v63  ;;  %v5142_v63 = vld [vmem:[#allocation3 + $0x10c] sm:$0xf] }
 0x29e   :  { %v5793_v1 = vpop.f32.mrf.mxu0 }
 0x29f   :  { %v644_v33 = vmax.f32 %v642_v15, 0.0 }
 0x2a4   :  { %v5740_v9 = vpop.f32.mrf.mxu3 }
 0x2ac   :  { %v767_v13 = vpop.f32.mrf.mxu3 }
 0x2ad   :  { %v773_v23 = vadd.f32 %v767_v13, %v738_v18  ;;  %v5134_v18 = vld [vmem:[#allocation3 + $0xbc] sm:$0xf] }
 0x2b4   :  { %v770_v19 = vpop.f32.mrf.mxu3 }
 0x2b5   :  { %v774_v22 = vadd.f32 %v770_v19, %v739_v17  ;;  %v5135_v17 = vld [vmem:[#allocation3 + $0xbc] sm:$0xf0] }
 0x2b6   :  { %v4086_v24 = vor.u32 %v5135_v17, %v4085_v14  ;;  %v4189_v17 = vld [vmem:[#allocation3 + $0x190] sm:$0xf] }
 0x2b7   :  { %3988 = vmatpush.msk.msrb.mxu0 %vm441_vm12, %v774_v22  ;;  %3990 = vmatpush.msk.msrb.mxu1 %vm441_vm12, %v774_v22 }
 0x2b9   :  { %796 = vmatpush.msrb.mxu0 %v773_v23  ;;  %818 = vmatpush.msrb.mxu1 %v773_v23  ;;  %v1229_v23 = vsel %vm441_vm12, %v1209_v11, 0  ;;  %v4115_v11 = vld [vmem:[#allocation3 + $0xf8] sm:$0xf0] }
 0x2ba   :  { %3989 = vmatmul.msk.f32.vlgmr.msrb.gmra.mxu0 %vm775_vm0, %v5596_v21  ;;  %3991 = vmatmul.msk.f32.vlgmr.msrb.gmra.mxu1 %vm775_vm0, %v5609_v28 }
 0x2bb   :  { %911 = vmatpush.msra.mxu0 %v839_v25  ;;  %v1238_v25 = vsel %vm441_vm12, %v1212_v12, 0 }
 0x2bd   :  { %912 = vmatpush.msra.mxu0 %v838_v26  ;;  %v4095_v26 = vld [vmem:[#allocation3 + $0xc8] sm:$0xf0] }
 0x2be   :  { %v4098_v34 = vor.u32 %v5134_v18, %v4095_v26  ;;  %v5159_v18 = vld [vmem:[#allocation3 + $0x19c] sm:$0xf0] }
 0x2bf   :  { %913 = vmatpush.msra.mxu0 %v837_v27  ;;  %v5806_v27 = vld [vmem:[#allocation3 + $0x140] sm:$0x11]  ;;  %v4190_v26 = vor.u32 %v5159_v18, %v4189_v17 }
 0x2c0   :  { %v1359_v38 = vunpack.c.l.b16 %v5806_v27 }
 0x2c1   :  { %914 = vmatpush.msra.mxu0 %v836_v20  ;;  %v5131_v20 = vld [vmem:[#allocation3 + $0x9c] sm:$0xf0] }
 0x2c2   :  { %v1375_v47 = vpack.c.b16 %v1359_v38, %v1359_v38 }
 0x2c3   :  { %915 = vmatpush.msra.mxu0 %v835_v40  ;;  %v4070_v40 = vor.u32 %v5131_v20, %v4069_v35  ;;  %v5837_v35 = vld [vmem:[#allocation3 + $0x228] sm:$0x11]  ;;  %v5155_v20 = vld [vmem:[#allocation3 + $0x17c] sm:$0xf0] }
 0x2c4   :  { %v1395_v53 = vsel %vm441_vm12, %v1375_v47, 0  ;;  %v1692_v39 = vunpack.c.h.b16 %v5837_v35 }
 0x2c5   :  { %1116 = vmatpush.bf16.msrb.mxu0 %v1071_v43  ;;  %v5812_v43 = vpack.c.bf16 %v644_v33, %v644_v33 }
 0x2c6   :  { %v1708_v48 = vpack.c.b16 %v1692_v39, %v1692_v39  ;;  %v5179_v39 = vld [vmem:[#allocation3 + $0x25c] sm:$0xf0] }
 0x2c7   :  { %v5827_v14 = vshrl.u32 %v5812_v43, 16 }
 0x2c8   :  { %v1734_v55 = vsel %vm441_vm12, %v1708_v48, 0  ;;  %v5175_v48 = vld [vmem:[#allocation3 + $0x23c] sm:$0xf0] }
 0x2c9   :  { %1117 = vmatpush.bf16.msrb.mxu0 %v4046_v51  ;;  %v4137_v51 = vld [vmem:[#allocation3 + $0x120] sm:$0xf] }
 0x2cd   :  { %1118 = vmatpush.bf16.msrb.mxu0 %v4030_v59  ;;  %v4138_v59 = vor.u32 %v5147_v52, %v4137_v51  ;;  %v5842_v51 = vrot.slane %v5812_v43, 1  ;;  %v4241_v52 = vld [vmem:[#allocation3 + $0x200] sm:$0xf] }
 0x2d1   :  { %1119 = vmatpush.bf16.msrb.mxu0 %v4014_v0  ;;  %v4131_v0 = vld [vmem:[#allocation3 + $0x118] sm:$0xf0] }
 0x2d2   :  { %v4134_v7 = vor.u32 %v5142_v63, %v4131_v0  ;;  %v5167_v63 = vld [vmem:[#allocation3 + $0x1ec] sm:$0xf0]  ;;  %v5166_v0 = vld [vmem:[#allocation3 + $0x1ec] sm:$0xf] }
 0x337   :  { %v798_v4 = vpop.f32.mrf.mxu0  ;;  %v820_v5 = vpop.f32.mrf.mxu1 }
 0x338   :  { %v823_v6 = vmax.f32 %v798_v4, %v820_v5  ;;  %v1524_v4 = vunpack.c.l.b16 %v5820_v57  ;;  %v1527_v5 = vunpack.c.h.b16 %v5822_v58 }
 0x33a   :  { %v824_v8 = vmax.f32 %v823_v6, 0.0  ;;  %v4122_v6 = vor.u32 %v5143_v62, %v4121_v61  ;;  %v1540_v12 = vpack.c.b16 %v1524_v4, %v1524_v4  ;;  %v4225_v62 = vld [vmem:[#allocation3 + $0x1e0] sm:$0xf]  ;;  %v4235_v4 = vld [vmem:[#allocation3 + $0x1f8] sm:$0xf0] }
 0x33c   :  { %v842_v10 = vrot.slane %v824_v8, 6  ;;  %v5139_v8 = vld [vmem:[#allocation3 + $0xec] sm:$0xf0] }
 0x33d   :  { %v4106_v15 = vor.u32 %v5139_v8, %v4105_v30  ;;  %v4238_v30 = vor.u32 %v5166_v0, %v4235_v4  ;;  %v4209_v8 = vld [vmem:[#allocation3 + $0x1c0] sm:$0xf]  ;;  %v5194_v4 = vld [vmem:[#allocation3 + $0x2ec] sm:$0xf] }
 0x33e   :  { %v844_v13 = vsel %vm89_vm1, 0.0, %v842_v10  ;;  %v5138_v10 = vld [vmem:[#allocation3 + $0xec] sm:$0xf] }
 0x33f   :  { %v845_v16 = vsel %vm228_vm3, %v844_v13, 0.0  ;;  %v1543_v13 = vpack.c.b16 %v1527_v5, %v1527_v5  ;;  %v5850_v5 = vld [vmem:[#allocation3 + $0x290] sm:$0x11] }
 0x340   :  { %v873_v19 = vrot.slane %v845_v16, 1  ;;  %v897_v22 = vrot.slane %v845_v16, 2  ;;  %3992 = vmatmul.msk.f32.vlgmr.msrb.gmra.mxu2 %vm849_vm2, %v845_v16  ;;  %v4118_v16 = vor.u32 %v5138_v10, %v4115_v11  ;;  %v5163_v10 = vld [vmem:[#allocation3 + $0x1cc] sm:$0xf0]  ;;  %v5162_v11 = vld [vmem:[#allocation3 + $0x1cc] sm:$0xf] }
 0x342   :  { %3993 = vmatmul.msk.f32.vlgmr.msra.gmra.mxu3 %vm849_vm2, %v873_v19  ;;  %3994 = vmatmul.msk.f32.vlgmr.msra.gmra.mxu0 %vm849_vm2, %v897_v22  ;;  %v1560_v19 = vsel %vm441_vm12, %v1540_v12, 0  ;;  %v1569_v22 = vsel %vm441_vm12, %v1543_v13, 0  ;;  %v4219_v12 = vld [vmem:[#allocation3 + $0x1d8] sm:$0xf0]  ;;  %v1854_v13 = vunpack.c.l.b16 %v5850_v5 }
 0x343   :  { %1244 = vmatpush.bf16.msra.mxu3 %v1229_v23  ;;  %1283 = vmatpush.bf16.msra.mxu0 %v1238_v25  ;;  %v5158_v23 = vld [vmem:[#allocation3 + $0x19c] sm:$0xf]  ;;  %v4199_v25 = vld [vmem:[#allocation3 + $0x1a8] sm:$0xf0]  ;;  %v4222_v17 = vor.u32 %v5162_v11, %v4219_v12  ;;  %v5191_v11 = vld [vmem:[#allocation3 + $0x2cc] sm:$0xf0] }
 0x344   :  { %v4202_v33 = vor.u32 %v5158_v23, %v4199_v25  ;;  %v1870_v18 = vpack.c.b16 %v1854_v13, %v1854_v13  ;;  %v4293_v23 = vld [vmem:[#allocation3 + $0x270] sm:$0xf]  ;;  %v5183_v25 = vld [vmem:[#allocation3 + $0x27c] sm:$0xf0]  ;;  %v5190_v12 = vld [vmem:[#allocation3 + $0x2cc] sm:$0xf] }
 0x345   :  { %v4339_v13 = vld [vmem:[#allocation3 + $0x2d8] sm:$0xf0] }
 0x347   :  { %1245 = vmatpush.bf16.msra.mxu3 %v4086_v24  ;;  %1284 = vmatpush.bf16.msra.mxu0 %v4098_v34  ;;  %v4173_v24 = vld [vmem:[#allocation3 + $0x170] sm:$0xf]  ;;  %v5835_v34 = vld [vmem:[#allocation3 + $0x220] sm:$0x11] }
 0x348   :  { %v1689_v38 = vunpack.c.l.b16 %v5835_v34 }
 0x34a   :  { %4047 = vmatmul.msk.bf16.vlgmr.msrb.gmra.mxu3 %vm1057_vm4, %v5812_v43  ;;  %4050 = vmatmul.msk.bf16.vlgmr.msrb.gmra.mxu0 %vm1057_vm4, %v5812_v43  ;;  %v1705_v47 = vpack.c.b16 %v1689_v38, %v1689_v38  ;;  %v4277_v38 = vld [vmem:[#allocation3 + $0x250] sm:$0xf] }
 0x34b   :  { %1246 = vmatpush.bf16.msra.mxu3 %v4070_v40  ;;  %1285 = vmatpush.bf16.msra.mxu0 %v4082_v41  ;;  %v4174_v40 = vor.u32 %v5155_v20, %v4173_v24  ;;  %v4186_v41 = vor.u32 %v5154_v36, %v4183_v37  ;;  %v5182_v24 = vld [vmem:[#allocation3 + $0x27c] sm:$0xf]  ;;  %v4303_v20 = vld [vmem:[#allocation3 + $0x288] sm:$0xf0]  ;;  %v4294_v36 = vor.u32 %v5183_v25, %v4293_v23  ;;  %v5187_v23 = vld [vmem:[#allocation3 + $0x2ac] sm:$0xf0] }
 0x34c   :  { %v4306_v37 = vor.u32 %v5182_v24, %v4303_v20  ;;  %v5186_v25 = vld [vmem:[#allocation3 + $0x2ac] sm:$0xf] }
 0x34f   :  { %1247 = vmatpush.bf16.msra.mxu3 %v4054_v49  ;;  %1286 = vmatpush.bf16.msra.mxu0 %v4066_v50  ;;  %v4158_v49 = vor.u32 %v5151_v44, %v4157_v42  ;;  %v4170_v50 = vor.u32 %v5150_v45, %v4167_v46  ;;  %v5865_v42 = vld [vmem:[#allocation3 + $0x300] sm:$0x11]  ;;  %v5867_v44 = vld [vmem:[#allocation3 + $0x308] sm:$0x11]  ;;  %v4278_v45 = vor.u32 %v5179_v39, %v4277_v38  ;;  %v5887_v39 = vrot.slane %v5827_v14, 2 }
 0x353   :  { %1410 = vmatpush.bf16.msrb.mxu3 %v1395_v53  ;;  %1449 = vmatpush.bf16.msrb.mxu0 %v1404_v54  ;;  %v5171_v53 = vld [vmem:[#allocation3 + $0x20c] sm:$0xf0]  ;;  %v1725_v54 = vsel %vm441_vm12, %v1705_v47, 0 }
 0x354   :  { %v4261_v47 = vld [vmem:[#allocation3 + $0x230] sm:$0xf] }
 0x357   :  { %1411 = vmatpush.bf16.msrb.mxu3 %v4138_v59  ;;  %1450 = vmatpush.bf16.msrb.mxu0 %v4150_v60  ;;  %v4251_v59 = vld [vmem:[#allocation3 + $0x218] sm:$0xf0]  ;;  %v4242_v60 = vor.u32 %v5171_v53, %v4241_v52  ;;  %v2019_v52 = vunpack.c.l.b16 %v5865_v42  ;;  %v2022_v53 = vunpack.c.h.b16 %v5867_v44 }
 0x358   :  { %v4254_v61 = vor.u32 %v5170_v56, %v4251_v59 }
 0x359   :  { %v2035_v56 = vpack.c.b16 %v2019_v52, %v2019_v52  ;;  %v2038_v59 = vpack.c.b16 %v2022_v53, %v2022_v53  ;;  %v4381_v52 = vld [vmem:[#allocation3 + $0x330] sm:$0xf]  ;;  %v5203_v53 = vld [vmem:[#allocation3 + $0x33c] sm:$0xf0] }
 0x35a   :  { %4099 = vmatmul.msk.bf16.vlgmr.msra.gmra.mxu3 %vm1057_vm4, %v5827_v14  ;;  %4102 = vmatmul.msk.bf16.vlgmr.msra.gmra.mxu0 %vm1057_vm4, %v5827_v14 }
 0x35b   :  { %1412 = vmatpush.bf16.msrb.mxu3 %v4122_v6  ;;  %1451 = vmatpush.bf16.msrb.mxu0 %v4134_v7  ;;  %v5852_v6 = vld [vmem:[#allocation3 + $0x298] sm:$0x11]  ;;  %v4226_v7 = vor.u32 %v5167_v63, %v4225_v62  ;;  %v5195_v62 = vld [vmem:[#allocation3 + $0x2ec] sm:$0xf0]  ;;  %v2055_v63 = vsel %vm441_vm12, %v2035_v56, 0  ;;  %v2064_v0 = vsel %vm441_vm12, %v2038_v59, 0 }
 0x35c   :  { %v5895_v56 = vld [vmem:[#allocation3 + $0x3e0] sm:$0x11]  ;;  %v5897_v59 = vld [vmem:[#allocation3 + $0x3e8] sm:$0x11] }
 0x35f   :  { %1413 = vmatpush.bf16.msrb.mxu3 %v4106_v15  ;;  %1452 = vmatpush.bf16.msrb.mxu0 %v4118_v16  ;;  %v1857_v15 = vunpack.c.h.b16 %v5852_v6  ;;  %v4210_v16 = vor.u32 %v5163_v10, %v4209_v8  ;;  %v4329_v10 = vld [vmem:[#allocation3 + $0x2c0] sm:$0xf] }
 0x363   :  { %1575 = vmatpush.bf16.msra.mxu3 %v1560_v19  ;;  %1614 = vmatpush.bf16.msra.mxu0 %v1569_v22  ;;  %v1873_v19 = vpack.c.b16 %v1857_v15, %v1857_v15  ;;  %v5857_v22 = vrot.slane %v5827_v14, 1  ;;  %v5880_v15 = vld [vmem:[#allocation3 + $0x370] sm:$0x11] }
 0x367   :  { %1576 = vmatpush.bf16.msra.mxu3 %v4190_v26  ;;  %1615 = vmatpush.bf16.msra.mxu0 %v4202_v33  ;;  %v1890_v26 = vsel %vm441_vm12, %v1870_v18, 0  ;;  %v1899_v33 = vsel %vm441_vm12, %v1873_v19, 0  ;;  %v4342_v18 = vor.u32 %v5190_v12, %v4339_v13  ;;  %v4313_v19 = vld [vmem:[#allocation3 + $0x2a0] sm:$0xf] }
 0x368   :  { %v4314_v20 = vor.u32 %v5187_v23, %v4313_v19  ;;  %v4449_v23 = vld [vmem:[#allocation3 + $0x3c0] sm:$0xf] }
 0x36a   :  { %4151 = vmatmul.msk.bf16.vlgmr.msrb.gmra.mxu3 %vm1057_vm4, %v5842_v51  ;;  %4154 = vmatmul.msk.bf16.vlgmr.msrb.gmra.mxu0 %vm1057_vm4, %v5842_v51 }
 0x36b   :  { %1577 = vmatpush.bf16.msra.mxu3 %v4174_v40  ;;  %1616 = vmatpush.bf16.msra.mxu0 %v4186_v41  ;;  %v5178_v40 = vld [vmem:[#allocation3 + $0x25c] sm:$0xf]  ;;  %v4287_v41 = vld [vmem:[#allocation3 + $0x268] sm:$0xf0] }
 0x36c   :  { %v4290_v46 = vor.u32 %v5178_v40, %v4287_v41  ;;  %v4397_v40 = vld [vmem:[#allocation3 + $0x350] sm:$0xf]  ;;  %v5207_v41 = vld [vmem:[#allocation3 + $0x35c] sm:$0xf0] }
 0x36f   :  { %1578 = vmatpush.bf16.msra.mxu3 %v4158_v49  ;;  %1617 = vmatpush.bf16.msra.mxu0 %v4170_v50  ;;  %v5174_v49 = vld [vmem:[#allocation3 + $0x23c] sm:$0xf]  ;;  %v4271_v50 = vld [vmem:[#allocation3 + $0x248] sm:$0xf0] }
 0x373   :  { %1740 = vmatpush.bf16.msrb.mxu3 %v1725_v54  ;;  %1779 = vmatpush.bf16.msrb.mxu0 %v1734_v55  ;;  %v4262_v54 = vor.u32 %v5175_v48, %v4261_v47  ;;  %v4274_v55 = vor.u32 %v5174_v49, %v4271_v50  ;;  %v5206_v47 = vld [vmem:[#allocation3 + $0x35c] sm:$0xf]  ;;  %v4407_v48 = vld [vmem:[#allocation3 + $0x368] sm:$0xf0]  ;;  %v4398_v49 = vor.u32 %v5207_v41, %v4397_v40  ;;  %v5910_v41 = vld [vmem:[#allocation3 + $0x450] sm:$0x11] }
 0x374   :  { %v4410_v50 = vor.u32 %v5206_v47, %v4407_v48  ;;  %v4443_v40 = vld [vmem:[#allocation3 + $0x3b8] sm:$0xf0]  ;;  %v4417_v48 = vld [vmem:[#allocation3 + $0x380] sm:$0xf] }
 0x377   :  { %1741 = vmatpush.bf16.msrb.mxu3 %v4242_v60  ;;  %1780 = vmatpush.bf16.msrb.mxu0 %v4254_v61  ;;  %v5872_v60 = vrot.slane %v5812_v43, 2  ;;  %v4345_v61 = vld [vmem:[#allocation3 + $0x2e0] sm:$0xf] }
 0x37a   :  { %4203 = vmatmul.msk.bf16.vlgmr.msra.gmra.mxu3 %vm1057_vm4, %v5857_v22  ;;  %4206 = vmatmul.msk.bf16.vlgmr.msra.gmra.mxu0 %vm1057_vm4, %v5857_v22 }
 0x37b   :  { %1742 = vmatpush.bf16.msrb.mxu3 %v4226_v7  ;;  %1781 = vmatpush.bf16.msrb.mxu0 %v4238_v30  ;;  %v4355_v7 = vld [vmem:[#allocation3 + $0x2f8] sm:$0xf0]  ;;  %v4346_v30 = vor.u32 %v5195_v62, %v4345_v61  ;;  %v4382_v61 = vor.u32 %v5203_v53, %v4381_v52  ;;  %v5210_v53 = vld [vmem:[#allocation3 + $0x38c] sm:$0xf] }
 0x37c   :  { %v4358_v8 = vor.u32 %v5194_v4, %v4355_v7  ;;  %v2349_v4 = vunpack.c.l.b16 %v5895_v56  ;;  %v2352_v7 = vunpack.c.h.b16 %v5897_v59 }
 0x37e   :  { %v2365_v12 = vpack.c.b16 %v2349_v4, %v2349_v4  ;;  %v2368_v13 = vpack.c.b16 %v2352_v7, %v2352_v7 }
 0x37f   :  { %1743 = vmatpush.bf16.msrb.mxu3 %v4210_v16  ;;  %1782 = vmatpush.bf16.msrb.mxu0 %v4222_v17  ;;  %v5882_v16 = vld [vmem:[#allocation3 + $0x378] sm:$0x11]  ;;  %v4330_v17 = vor.u32 %v5191_v11, %v4329_v10 }
 0x380   :  { %v2187_v24 = vunpack.c.h.b16 %v5882_v16  ;;  %v2394_v19 = vsel %vm441_vm12, %v2368_v13, 0 }
 0x382   :  { %v2203_v38 = vpack.c.b16 %v2187_v24, %v2187_v24 }
 0x383   :  { %1905 = vmatpush.bf16.msra.mxu3 %v1890_v26  ;;  %1944 = vmatpush.bf16.msra.mxu0 %v1899_v33  ;;  %v4323_v26 = vld [vmem:[#allocation3 + $0x2b8] sm:$0xf0]  ;;  %v2184_v33 = vunpack.c.l.b16 %v5880_v15 }
 0x387   :  { %1906 = vmatpush.bf16.msra.mxu3 %v4294_v36  ;;  %1945 = vmatpush.bf16.msra.mxu0 %v4306_v37  ;;  %v4326_v36 = vor.u32 %v5186_v25, %v4323_v26  ;;  %v2200_v37 = vpack.c.b16 %v2184_v33, %v2184_v33  ;;  %v5219_v25 = vld [vmem:[#allocation3 + $0x3cc] sm:$0xf0]  ;;  %v5218_v26 = vld [vmem:[#allocation3 + $0x3cc] sm:$0xf]  ;;  %v4459_v33 = vld [vmem:[#allocation3 + $0x3d8] sm:$0xf0] }
 0x388   :  { %v4450_v24 = vor.u32 %v5219_v25, %v4449_v23  ;;  %v5226_v23 = vld [vmem:[#allocation3 + $0x41c] sm:$0xf]  ;;  %v4495_v25 = vld [vmem:[#allocation3 + $0x428] sm:$0xf0] }
 0x38a   :  { %4255 = vmatmul.msk.bf16.vlgmr.msrb.gmra.mxu3 %vm1057_vm4, %v5872_v60  ;;  %4258 = vmatmul.msk.bf16.vlgmr.msrb.gmra.mxu0 %vm1057_vm4, %v5872_v60 }
 0x38b   :  { %1907 = vmatpush.bf16.msra.mxu3 %v4278_v45  ;;  %1946 = vmatpush.bf16.msra.mxu0 %v4290_v46  ;;  %v2220_v45 = vsel %vm441_vm12, %v2200_v37, 0  ;;  %v2229_v46 = vsel %vm441_vm12, %v2203_v38, 0  ;;  %v5215_v37 = vld [vmem:[#allocation3 + $0x3ac] sm:$0xf0]  ;;  %v5214_v38 = vld [vmem:[#allocation3 + $0x3ac] sm:$0xf] }
 0x38c   :  { %v4446_v47 = vor.u32 %v5214_v38, %v4443_v40  ;;  %v5930_v38 = vld [vmem:[#allocation3 + $0x4c8] sm:$0x11]  ;;  %v1026_v40 = vunpack.c.h.b16 %v5758_v29 }
 0x38f   :  { %1908 = vmatpush.bf16.msra.mxu3 %v4262_v54  ;;  %1947 = vmatpush.bf16.msra.mxu0 %v4274_v55  ;;  %v5202_v54 = vld [vmem:[#allocation3 + $0x33c] sm:$0xf]  ;;  %v4391_v55 = vld [vmem:[#allocation3 + $0x348] sm:$0xf0] }
 0x390   :  { %v4394_v62 = vor.u32 %v5202_v54, %v4391_v55  ;;  %v4427_v54 = vld [vmem:[#allocation3 + $0x398] sm:$0xf0] }
 0x393   :  { %2070 = vmatpush.bf16.msrb.mxu3 %v2055_v63  ;;  %2109 = vmatpush.bf16.msrb.mxu0 %v2064_v0  ;;  %v4365_v63 = vld [vmem:[#allocation3 + $0x310] sm:$0xf]  ;;  %v5199_v0 = vld [vmem:[#allocation3 + $0x31c] sm:$0xf0] }
 0x394   :  { %v4366_v10 = vor.u32 %v5199_v0, %v4365_v63  ;;  %v5917_v0 = vrot.slane %v5827_v14, 3 }
 0x397   :  { %2071 = vmatpush.bf16.msrb.mxu3 %v4346_v30  ;;  %2110 = vmatpush.bf16.msrb.mxu0 %v4358_v8  ;;  %v5198_v30 = vld [vmem:[#allocation3 + $0x31c] sm:$0xf]  ;;  %v4375_v8 = vld [vmem:[#allocation3 + $0x328] sm:$0xf0] }
 0x398   :  { %v4378_v11 = vor.u32 %v5198_v30, %v4375_v8  ;;  %v4501_v30 = vld [vmem:[#allocation3 + $0x430] sm:$0xf]  ;;  %v5231_v8 = vld [vmem:[#allocation3 + $0x43c] sm:$0xf0] }
 0x39a   :  { %4307 = vmatmul.msk.bf16.vlgmr.msra.gmra.mxu3 %vm1057_vm4, %v5887_v39  ;;  %4310 = vmatmul.msk.bf16.vlgmr.msra.gmra.mxu0 %vm1057_vm4, %v5887_v39 }
 0x39b   :  { %2072 = vmatpush.bf16.msrb.mxu3 %v4330_v17  ;;  %2111 = vmatpush.bf16.msrb.mxu0 %v4342_v18  ;;  %v5902_v17 = vrot.slane %v5812_v43, 3  ;;  %v2385_v18 = vsel %vm441_vm12, %v2365_v12, 0  ;;  %v4502_v12 = vor.u32 %v5231_v8, %v4501_v30 }
 0x39f   :  { %2073 = vmatpush.bf16.msrb.mxu3 %v4314_v20  ;;  %2112 = vmatpush.bf16.msrb.mxu0 %v4326_v36  ;;  %v4462_v20 = vor.u32 %v5218_v26, %v4459_v33  ;;  %v4433_v36 = vld [vmem:[#allocation3 + $0x3a0] sm:$0xf]  ;;  %v5375_v26 = vld [vmem:[%s6982_s9] ss:$0 sm:$0xff] }
 0x3a3   :  { %2235 = vmatpush.bf16.msra.mxu3 %v2220_v45  ;;  %2274 = vmatpush.bf16.msra.mxu0 %v2229_v46  ;;  %v5912_v45 = vld [vmem:[#allocation3 + $0x458] sm:$0x11]  ;;  %v4434_v46 = vor.u32 %v5215_v37, %v4433_v36  ;;  %v4469_v36 = vld [vmem:[#allocation3 + $0x3f0] sm:$0xf]  ;;  %v5928_v37 = vld [vmem:[#allocation3 + $0x4c0] sm:$0x11] }
 0x3a4   :  { %v2518_v52 = vunpack.c.h.b16 %v5912_v45 }
 0x3a6   :  { %v2534_v63 = vpack.c.b16 %v2518_v52, %v2518_v52  ;;  %v2681_v52 = vunpack.c.l.b16 %v5928_v37 }
 0x3a7   :  { %2236 = vmatpush.bf16.msra.mxu3 %v4398_v49  ;;  %2275 = vmatpush.bf16.msra.mxu0 %v4410_v50  ;;  %v5211_v49 = vld [vmem:[#allocation3 + $0x38c] sm:$0xf0]  ;;  %v2515_v50 = vunpack.c.l.b16 %v5910_v41 }
 0x3a8   :  { %v4418_v55 = vor.u32 %v5211_v49, %v4417_v48  ;;  %v2560_v7 = vsel %vm441_vm12, %v2534_v63, 0  ;;  %v5222_v48 = vld [vmem:[#allocation3 + $0x3fc] sm:$0xf]  ;;  %v4479_v49 = vld [vmem:[#allocation3 + $0x408] sm:$0xf0]  ;;  %v1042_v63 = vpack.c.b16 %v1026_v40, %v1026_v40  ;;  %v2697_v30 = vpack.c.b16 %v2681_v52, %v2681_v52 }
 0x3a9   :  { %v4025_v52 = vld [vmem:[#allocation3 + $0x28] sm:$0xf] }
 0x3aa   :  { %4359 = vmatmul.msk.bf16.vlgmr.msrb.gmra.mxu3 %vm1057_vm4, %v5902_v17  ;;  %4362 = vmatmul.msk.bf16.vlgmr.msrb.gmra.mxu0 %vm1057_vm4, %v5902_v17 }
 0x3ab   :  { %2237 = vmatpush.bf16.msra.mxu3 %v4382_v61  ;;  %2276 = vmatpush.bf16.msra.mxu0 %v4394_v62  ;;  %v4430_v61 = vor.u32 %v5210_v53, %v4427_v54  ;;  %v2531_v62 = vpack.c.b16 %v2515_v50, %v2515_v50  ;;  %v643_v50 = vmax.f32 %v5740_v9, %v5793_v1  ;;  %v2684_v53 = vunpack.c.h.b16 %v5930_v38 }
 0x3ac   :  { %v1065_v1 = vsel %vm441_vm12, %v1042_v63, 0  ;;  %v5239_v63 = vld [vmem:[#allocation3 + $0x48c] sm:$0xf0] }
 0x3ad   :  { %v2551_v4 = vsel %vm441_vm12, %v2531_v62, 0  ;;  %v2700_v8 = vpack.c.b16 %v2684_v53, %v2684_v53  ;;  %v5120_v53 = vld [vmem:[#allocation3 + $0x34] sm:$0xf0] }
 0x3af   :  { %2238 = vmatpush.bf16.msra.mxu3 %v4366_v10  ;;  %2277 = vmatpush.bf16.msra.mxu0 %v4378_v11  ;;  %v5230_v10 = vld [vmem:[#allocation3 + $0x43c] sm:$0xf]  ;;  %v4511_v11 = vld [vmem:[#allocation3 + $0x448] sm:$0xf0] }
 0x3b0   :  { %v4514_v13 = vor.u32 %v5230_v10, %v4511_v11 }
 0x3b3   :  { %2400 = vmatpush.bf16.msrb.mxu3 %v2385_v18  ;;  %2439 = vmatpush.bf16.msrb.mxu0 %v2394_v19  ;;  %v4485_v18 = vld [vmem:[#allocation3 + $0x410] sm:$0xf]  ;;  %v5227_v19 = vld [vmem:[#allocation3 + $0x41c] sm:$0xf0] }
 0x3b7   :  { %2401 = vmatpush.bf16.msrb.mxu3 %v4450_v24  ;;  %2440 = vmatpush.bf16.msrb.mxu0 %v4462_v20  ;;  %v4486_v24 = vor.u32 %v5227_v19, %v4485_v18  ;;  %v4498_v20 = vor.u32 %v5226_v23, %v4495_v25  ;;  %v4035_v18 = vld [vmem:[#allocation3 + $0x50] sm:$0xf0]  ;;  %v4041_v19 = vld [vmem:[#allocation3 + $0x48] sm:$0xf]  ;;  %v5124_v23 = vld [vmem:[#allocation3 + $0x54] sm:$0xf0] }
 0x3b8   :  { %v2717_v25 = vsel %vm441_vm12, %v2697_v30, 0  ;;  %v4003_v30 = vld [vmem:[#allocation3 + $0x10] sm:$0xf0] }
 0x3ba   :  { %4411 = vmatmul.msk.bf16.vlgmr.msra.gmra.mxu3 %vm1057_vm4, %v5917_v0  ;;  %4414 = vmatmul.msk.bf16.vlgmr.msra.gmra.mxu0 %vm1057_vm4, %v5917_v0 }
 0x3bb   :  { %2402 = vmatpush.bf16.msrb.mxu3 %v4434_v46  ;;  %2441 = vmatpush.bf16.msrb.mxu0 %v4446_v47  ;;  %v1027_v46 = vunpack.c.l.b16 %v5760_v31  ;;  %v5223_v47 = vld [vmem:[#allocation3 + $0x3fc] sm:$0xf0] }
 0x3bd   :  { %v1043_v29 = vpack.c.b16 %v1027_v46, %v1027_v46 }
 0x3bf   :  { %2403 = vmatpush.bf16.msrb.mxu3 %v4418_v55  ;;  %2442 = vmatpush.bf16.msrb.mxu0 %v4430_v61  ;;  %v917_v33 = vpop.f32.mrf.mxu0  ;;  %v4470_v55 = vor.u32 %v5223_v47, %v4469_v36  ;;  %v4482_v61 = vor.u32 %v5222_v48, %v4479_v49  ;;  %v1068_v11 = vsel %vm441_vm12, %v1043_v29, 0  ;;  %v4563_v36 = vld [vmem:[#allocation3 + $0x4b8] sm:$0xf0]  ;;  %v4042_v47 = vor.u32 %v5124_v23, %v4041_v19  ;;  %v5117_v48 = vld [vmem:[#allocation3 + $0x24] sm:$0xf] }
 0x3c0   :  { %v4019_v49 = vld [vmem:[#allocation3 + $0x30] sm:$0xf0]  ;;  %v5238_v29 = vld [vmem:[#allocation3 + $0x48c] sm:$0xf]  ;;  %v5235_v19 = vld [vmem:[#allocation3 + $0x46c] sm:$0xf0] }
 0x3c3   :  { %2566 = vmatpush.bf16.msra.mxu3 %v2551_v4  ;;  %2605 = vmatpush.bf16.msra.mxu0 %v2560_v7  ;;  %v870_v54 = vpop.f32.mrf.mxu2  ;;  %v645_v4 = vmax.f32 %v643_v50, 0.0  ;;  %v1194_v50 = vunpack.c.h.b16 %v5795_v2 }
 0x3c4   :  { %v871_v62 = vadd.f32 %v5375_v26, %v870_v54  ;;  %v2726_v26 = vsel %vm441_vm12, %v2700_v8, 0  ;;  %v4009_v8 = vld [vmem:[#allocation3 + $0x8] sm:$0xf] }
 0x3c5   :  { %v893_v31 = vpop.f32.mrf.mxu3  ;;  %v1210_v2 = vpack.c.b16 %v1194_v50, %v1194_v50  ;;  %v5136_v50 = vld [vmem:[#allocation3 + $0xc4] sm:$0xf0] }
 0x3c6   :  { %v896_v7 = vadd.f32 %v893_v31, %v871_v62  ;;  %v1195_v62 = vunpack.c.l.b16 %v5797_v3  ;;  %v4022_v31 = vor.u32 %v5117_v48, %v4019_v49  ;;  %v4093_v49 = vld [vmem:[#allocation3 + $0xb8] sm:$0xf] }
 0x3c7   :  { %2567 = vmatpush.bf16.msra.mxu3 %v4502_v12  ;;  %2606 = vmatpush.bf16.msra.mxu0 %v4514_v13  ;;  %v5938_v10 = vpop.f32.mrf.mxu0  ;;  %v5942_v12 = vpack.c.bf16 %v645_v4, %v645_v4  ;;  %v5121_v13 = vld [vmem:[#allocation3 + $0x44] sm:$0xf]  ;;  %v4547_v4 = vld [vmem:[#allocation3 + $0x498] sm:$0xf0] }
 0x3c8   :  { %v920_v9 = vadd.f32 %v917_v33, %v896_v7  ;;  %v4553_v33 = vld [vmem:[#allocation3 + $0x4a0] sm:$0xf]  ;;  %v4038_v40 = vor.u32 %v5121_v13, %v4035_v18  ;;  %v5113_v7 = vld [vmem:[#allocation3 + $0x4] sm:$0xf]  ;;  %v1211_v13 = vpack.c.b16 %v1195_v62, %v1195_v62  ;;  %v4077_v62 = vld [vmem:[#allocation3 + $0x98] sm:$0xf] }
 0x3c9   :  { %v4521_v18 = vld [vmem:[#allocation3 + $0x460] sm:$0xf]  ;;  %v4006_v3 = vor.u32 %v5113_v7, %v4003_v30  ;;  %v5125_v30 = vld [vmem:[#allocation3 + $0x74] sm:$0xf] }
 0x3ca   :  { %3995 = vmatpush.msk.msra.mxu1 %vm228_vm3, %v920_v9  ;;  %3997 = vmatpush.msk.msra.mxu2 %vm228_vm3, %v920_v9  ;;  %v5116_v9 = vld [vmem:[#allocation3 + $0x14] sm:$0xf0]  ;;  %v1235_v48 = vsel %vm441_vm12, %v1211_v13, 0  ;;  %vm2913_vm3 = vcmask 654336  }
 0x3cb   :  { %2568 = vmatpush.bf16.msra.mxu3 %v4486_v24  ;;  %2607 = vmatpush.bf16.msra.mxu0 %v4498_v20  ;;  %v5243_v24 = vld [vmem:[#allocation3 + $0x4ac] sm:$0xf0]  ;;  %v5242_v20 = vld [vmem:[#allocation3 + $0x4ac] sm:$0xf] }
 0x3cc   :  { %4463 = vmatmul.msk.bf16.vlgmr.msrb.gmra.mxu3 %vm1057_vm4, %v5942_v12  ;;  %4466 = vmatmul.msk.bf16.vlgmr.msrb.gmra.mxu0 %vm1057_vm4, %v5942_v12  ;;  %v4554_v54 = vor.u32 %v5243_v24, %v4553_v33  ;;  %v5133_v33 = vld [vmem:[#allocation3 + $0xb4] sm:$0xf]  ;;  %v4087_v24 = vld [vmem:[#allocation3 + $0xc0] sm:$0xf0] }
 0x3cd   :  { %3998 = vmatmul.msk.f32.vlgmr.msra.gmra.mxu2 %vm921_vm5, %v5609_v28  ;;  %1090 = vmatpush.bf16.msrb.mxu1 %v1065_v1  ;;  %v5954_v46 = vpop.f32.mrf.mxu3  ;;  %v4537_v28 = vld [vmem:[#allocation3 + $0x480] sm:$0xf] }
 0x3ce   :  { %1103 = vmatpush.bf16.msrb.mxu2 %v1068_v11  ;;  %3996 = vmatmul.msk.f32.vlgmr.msra.gmra.mxu1 %vm921_vm5, %v5596_v21  ;;  %v4026_v21 = vor.u32 %v5120_v53, %v4025_v52  ;;  %v4538_v1 = vor.u32 %v5239_v63, %v4537_v28  ;;  %v4550_v11 = vor.u32 %v5238_v29, %v4547_v4  ;;  %v5965_v52 = vshrl.u32 %v5942_v12, 16  ;;  %v5129_v28 = vld [vmem:[#allocation3 + $0x94] sm:$0xf]  ;;  %v5132_v63 = vld [vmem:[#allocation3 + $0xa4] sm:$0xf0] }
 0x3cf   :  { %2569 = vmatpush.bf16.msra.mxu3 %v4470_v55  ;;  %2608 = vmatpush.bf16.msra.mxu0 %v4482_v61  ;;  %v4566_v55 = vor.u32 %v5242_v20, %v4563_v36  ;;  %v1123_v61 = vpop.f32.mrf.mxu0  ;;  %v4522_v20 = vor.u32 %v5235_v19, %v4521_v18  ;;  %v5234_v36 = vld [vmem:[#allocation3 + $0x46c] sm:$0xf]  ;;  %v4090_v53 = vor.u32 %v5133_v33, %v4087_v24  ;;  %v1360_v29 = vunpack.c.h.b16 %v5806_v27  ;;  %v5128_v27 = vld [vmem:[#allocation3 + $0x84] sm:$0xf0]  ;;  %v5145_v18 = vld [vmem:[#allocation3 + $0x124] sm:$0xf] }
 0x3d0   :  { %v4071_v61 = vld [vmem:[#allocation3 + $0xa0] sm:$0xf0]  ;;  %v1361_v4 = vunpack.c.l.b16 %v5808_v32  ;;  %v4078_v7 = vor.u32 %v5132_v63, %v4077_v62  ;;  %v4139_v19 = vld [vmem:[#allocation3 + $0x130] sm:$0xf0]  ;;  %v5148_v33 = vld [vmem:[#allocation3 + $0x134] sm:$0xf0] }
 0x3d1   :  { %1091 = vmatpush.bf16.msrb.mxu1 %v4038_v40  ;;  %v4531_v40 = vld [vmem:[#allocation3 + $0x478] sm:$0xf0] }
 0x3d2   :  { %1104 = vmatpush.bf16.msrb.mxu2 %v4042_v47 }
 0x3d3   :  { %2732 = vmatpush.bf16.msrb.mxu3 %v2717_v25  ;;  %2771 = vmatpush.bf16.msrb.mxu0 %v2726_v26  ;;  %v4010_v25 = vor.u32 %v5116_v9, %v4009_v8  ;;  %v1232_v26 = vsel %vm441_vm12, %v1210_v2, 0  ;;  %v4055_v2 = vld [vmem:[#allocation3 + $0x80] sm:$0xf0]  ;;  %v4061_v9 = vld [vmem:[#allocation3 + $0x78] sm:$0xf] }
 0x3d4   :  { %v4062_v13 = vor.u32 %v5128_v27, %v4061_v9 }
 0x3d5   :  { %1092 = vmatpush.bf16.msrb.mxu1 %v4022_v31  ;;  %v1084_v23 = vpop.f32.mrf.mxu3 }
 0x3d6   :  { %1105 = vmatpush.bf16.msrb.mxu2 %v4026_v21  ;;  %v4074_v21 = vor.u32 %v5129_v28, %v4071_v61  ;;  %v4107_v28 = vld [vmem:[#allocation3 + $0xf0] sm:$0xf0]  ;;  %v1526_v61 = vunpack.c.l.b16 %v5822_v58 }
 0x3d7   :  { %2733 = vmatpush.bf16.msrb.mxu3 %v4554_v54  ;;  %2772 = vmatpush.bf16.msrb.mxu0 %v4566_v55  ;;  %v5961_v47 = vpop.f32.mrf.mxu0  ;;  %v4534_v54 = vor.u32 %v5234_v36, %v4531_v40  ;;  %v4094_v55 = vor.u32 %v5136_v50, %v4093_v49  ;;  %v4123_v36 = vld [vmem:[#allocation3 + $0x110] sm:$0xf0]  ;;  %v1525_v40 = vunpack.c.h.b16 %v5820_v57 }
 0x3d8   :  { %v5157_v58 = vld [vmem:[#allocation3 + $0x194] sm:$0xf] }
 0x3d9   :  { %1093 = vmatpush.bf16.msrb.mxu1 %v4006_v3  ;;  %v1541_v57 = vpack.c.b16 %v1525_v40, %v1525_v40 }
 0x3da   :  { %1106 = vmatpush.bf16.msrb.mxu2 %v4010_v25  ;;  %v4142_v25 = vor.u32 %v5145_v18, %v4139_v19  ;;  %v1690_v19 = vunpack.c.h.b16 %v5835_v34 }
 0x3db   :  { %2734 = vmatpush.bf16.msrb.mxu3 %v4538_v1  ;;  %2773 = vmatpush.bf16.msrb.mxu0 %v4550_v11  ;;  %v1376_v1 = vpack.c.b16 %v1360_v29, %v1360_v29  ;;  %v1377_v11 = vpack.c.b16 %v1361_v4, %v1361_v4  ;;  %v4113_v4 = vld [vmem:[#allocation3 + $0xe8] sm:$0xf] }
 0x3dc   :  { %4048 = vmatmul.msk.bf16.vlgmr.msrb.gmra.mxu1 %vm1057_vm4, %v5812_v43  ;;  %4515 = vmatmul.msk.bf16.vlgmr.msra.gmra.mxu3 %vm1057_vm4, %v5965_v52 }
 0x3dd   :  { %1257 = vmatpush.bf16.msra.mxu1 %v1232_v26  ;;  %4049 = vmatmul.msk.bf16.vlgmr.msrb.gmra.mxu2 %vm1057_vm4, %v5812_v43  ;;  %v5977_v31 = vpop.f32.mrf.mxu3  ;;  %v4058_v43 = vor.u32 %v5125_v30, %v4055_v2  ;;  %v1398_v32 = vsel %vm441_vm12, %v1376_v1, 0  ;;  %v1401_v3 = vsel %vm441_vm12, %v1377_v11, 0  ;;  %v4145_v26 = vld [vmem:[#allocation3 + $0x128] sm:$0xf]  ;;  %v1542_v30 = vpack.c.b16 %v1526_v61, %v1526_v61  ;;  %v4197_v1 = vld [vmem:[#allocation3 + $0x198] sm:$0xf] }
 0x3de   :  { %1270 = vmatpush.bf16.msra.mxu2 %v1235_v48  ;;  %4518 = vmatmul.msk.bf16.vlgmr.msra.gmra.mxu0 %vm1057_vm4, %v5965_v52  ;;  %v5985_v48 = vrot.slane %v5942_v12, 1  ;;  %v4146_v49 = vor.u32 %v5148_v33, %v4145_v26  ;;  %v1563_v2 = vsel %vm441_vm12, %v1541_v57, 0  ;;  %v5160_v11 = vld [vmem:[#allocation3 + $0x1a4] sm:$0xf0]  ;;  %v1691_v33 = vunpack.c.l.b16 %v5837_v35  ;;  %v5169_v61 = vld [vmem:[#allocation3 + $0x204] sm:$0xf] }
 0x3df   :  { %2735 = vmatpush.bf16.msrb.mxu3 %v4522_v20  ;;  %2774 = vmatpush.bf16.msrb.mxu0 %v4534_v54  ;;  %v1290_v8 = vpop.f32.mrf.mxu0  ;;  %v5141_v20 = vld [vmem:[#allocation3 + $0x104] sm:$0xf]  ;;  %v5144_v54 = vld [vmem:[#allocation3 + $0x114] sm:$0xf0]  ;;  %v1566_v9 = vsel %vm441_vm12, %v1542_v30, 0  ;;  %v4198_v18 = vor.u32 %v5160_v11, %v4197_v1  ;;  %v1856_v1 = vunpack.c.l.b16 %v5852_v6 }
 0x3e0   :  { %v4126_v50 = vor.u32 %v5141_v20, %v4123_v36  ;;  %v4191_v8 = vld [vmem:[#allocation3 + $0x1a0] sm:$0xf0]  ;;  %v5149_v20 = vld [vmem:[#allocation3 + $0x154] sm:$0xf] }
 0x3e1   :  { %1258 = vmatpush.bf16.msra.mxu1 %v4090_v53  ;;  %v4129_v53 = vld [vmem:[#allocation3 + $0x108] sm:$0xf]  ;;  %v4194_v27 = vor.u32 %v5157_v58, %v4191_v8  ;;  %v4159_v36 = vld [vmem:[#allocation3 + $0x160] sm:$0xf0]  ;;  %v4243_v57 = vld [vmem:[#allocation3 + $0x210] sm:$0xf0]  ;;  %v1855_v58 = vunpack.c.h.b16 %v5850_v5 }
 0x3e2   :  { %1271 = vmatpush.bf16.msra.mxu2 %v4094_v55  ;;  %v5137_v55 = vld [vmem:[#allocation3 + $0xe4] sm:$0xf]  ;;  %v4130_v63 = vor.u32 %v5144_v54, %v4129_v53  ;;  %v5152_v53 = vld [vmem:[#allocation3 + $0x164] sm:$0xf0]  ;;  %v4162_v34 = vor.u32 %v5149_v20, %v4159_v36  ;;  %v1707_v54 = vpack.c.b16 %v1691_v33, %v1691_v33  ;;  %v4227_v30 = vld [vmem:[#allocation3 + $0x1f0] sm:$0xf0] }
 0x3e3   :  { %v4110_v29 = vor.u32 %v5137_v55, %v4107_v28  ;;  %v4233_v8 = vld [vmem:[#allocation3 + $0x1e8] sm:$0xf]  ;;  %v5161_v11 = vld [vmem:[#allocation3 + $0x1c4] sm:$0xf]  ;;  %v5181_v6 = vld [vmem:[#allocation3 + $0x274] sm:$0xf] }
 0x3e4   :  { %v4295_v20 = vld [vmem:[#allocation3 + $0x280] sm:$0xf0] }
 0x3e5   :  { %1259 = vmatpush.bf16.msra.mxu1 %v4074_v21  ;;  %v1251_v23 = vpop.f32.mrf.mxu3  ;;  %v5140_v21 = vld [vmem:[#allocation3 + $0xf4] sm:$0xf0] }
 0x3e6   :  { %1272 = vmatpush.bf16.msra.mxu2 %v4078_v7  ;;  %v4181_v23 = vld [vmem:[#allocation3 + $0x178] sm:$0xf] }
 0x3e7   :  { %v5981_v24 = vpop.f32.mrf.mxu0 }
 0x3e9   :  { %1260 = vmatpush.bf16.msra.mxu1 %v4058_v43 }
 0x3ea   :  { %1273 = vmatpush.bf16.msra.mxu2 %v4062_v13  ;;  %v5153_v13 = vld [vmem:[#allocation3 + $0x174] sm:$0xf] }
 0x3ec   :  { %4100 = vmatmul.msk.bf16.vlgmr.msra.gmra.mxu1 %vm1057_vm4, %v5827_v14  ;;  %4567 = vmatmul.msk.bf16.vlgmr.msrb.gmra.mxu3 %vm1057_vm4, %v5985_v48 }
 0x3ed   :  { %1423 = vmatpush.bf16.msrb.mxu1 %v1398_v32  ;;  %4101 = vmatmul.msk.bf16.vlgmr.msra.gmra.mxu2 %vm1057_vm4, %v5827_v14  ;;  %v5996_v62 = vpop.f32.mrf.mxu3  ;;  %v4114_v14 = vor.u32 %v5140_v21, %v4113_v4  ;;  %v4175_v32 = vld [vmem:[#allocation3 + $0x180] sm:$0xf0]  ;;  %v4249_v4 = vld [vmem:[#allocation3 + $0x208] sm:$0xf]  ;;  %v5172_v21 = vld [vmem:[#allocation3 + $0x214] sm:$0xf0] }
 0x3ee   :  { %1436 = vmatpush.bf16.msrb.mxu2 %v1401_v3  ;;  %4570 = vmatmul.msk.bf16.vlgmr.msrb.gmra.mxu0 %vm1057_vm4, %v5985_v48  ;;  %v4178_v26 = vor.u32 %v5153_v13, %v4175_v32 }
 0x3ef   :  { %v1456_v7 = vpop.f32.mrf.mxu0 }
 0x3f0   :  { %v4246_v7 = vor.u32 %v5169_v61, %v4243_v57  ;;  %v4285_v61 = vld [vmem:[#allocation3 + $0x258] sm:$0xf]  ;;  %v5180_v57 = vld [vmem:[#allocation3 + $0x264] sm:$0xf0] }
 0x3f1   :  { %1424 = vmatpush.bf16.msrb.mxu1 %v4142_v25  ;;  %v5156_v25 = vld [vmem:[#allocation3 + $0x184] sm:$0xf0] }
 0x3f2   :  { %1437 = vmatpush.bf16.msrb.mxu2 %v4146_v49  ;;  %v4182_v40 = vor.u32 %v5156_v25, %v4181_v23  ;;  %v1706_v49 = vpack.c.b16 %v1690_v19, %v1690_v19  ;;  %v4217_v19 = vld [vmem:[#allocation3 + $0x1c8] sm:$0xf]  ;;  %v5164_v23 = vld [vmem:[#allocation3 + $0x1d4] sm:$0xf0] }
 0x3f3   :  { %v4218_v5 = vor.u32 %v5164_v23, %v4217_v19  ;;  %v5189_v23 = vld [vmem:[#allocation3 + $0x2c4] sm:$0xf] }
 0x3f4   :  { %v1728_v28 = vsel %vm441_vm12, %v1706_v49, 0  ;;  %v4301_v49 = vld [vmem:[#allocation3 + $0x278] sm:$0xf] }
 0x3f5   :  { %1425 = vmatpush.bf16.msrb.mxu1 %v4126_v50  ;;  %v1417_v43 = vpop.f32.mrf.mxu3  ;;  %v4165_v50 = vld [vmem:[#allocation3 + $0x158] sm:$0xf] }
 0x3f6   :  { %1438 = vmatpush.bf16.msrb.mxu2 %v4130_v63  ;;  %v4166_v35 = vor.u32 %v5152_v53, %v4165_v50  ;;  %v4211_v43 = vld [vmem:[#allocation3 + $0x1d0] sm:$0xf0]  ;;  %v5184_v50 = vld [vmem:[#allocation3 + $0x284] sm:$0xf0]  ;;  %v4298_v53 = vor.u32 %v5181_v6, %v4295_v20  ;;  %v4637_v20 = vld [vmem:[%s6984_s11 + $0x80] sm:$0xf] }
 0x3f7   :  { %v6001_v3 = vpop.f32.mrf.mxu0  ;;  %v4214_v25 = vor.u32 %v5161_v11, %v4211_v43  ;;  %v4347_v11 = vld [vmem:[#allocation3 + $0x2f0] sm:$0xf0]  ;;  %v4353_v43 = vld [vmem:[#allocation3 + $0x2e8] sm:$0xf] }
 0x3f9   :  { %1426 = vmatpush.bf16.msrb.mxu1 %v4110_v29  ;;  %v1731_v29 = vsel %vm441_vm12, %v1707_v54, 0  ;;  %v5177_v54 = vld [vmem:[#allocation3 + $0x254] sm:$0xf] }
 0x3fa   :  { %1439 = vmatpush.bf16.msrb.mxu2 %v4114_v14  ;;  %v5168_v14 = vld [vmem:[#allocation3 + $0x1f4] sm:$0xf0] }
 0x3fb   :  { %v4234_v32 = vor.u32 %v5168_v14, %v4233_v8  ;;  %v5176_v8 = vld [vmem:[#allocation3 + $0x244] sm:$0xf0] }
 0x3fc   :  { %4152 = vmatmul.msk.bf16.vlgmr.msrb.gmra.mxu1 %vm1057_vm4, %v5842_v51 }
 0x3fd   :  { %1588 = vmatpush.bf16.msra.mxu1 %v1563_v2  ;;  %4153 = vmatmul.msk.bf16.vlgmr.msrb.gmra.mxu2 %vm1057_vm4, %v5842_v51  ;;  %v6008_v55 = vpop.f32.mrf.mxu3  ;;  %v5165_v51 = vld [vmem:[#allocation3 + $0x1e4] sm:$0xf]  ;;  %v4250_v2 = vor.u32 %v5172_v21, %v4249_v4  ;;  %v2021_v21 = vunpack.c.l.b16 %v5867_v44 }
 0x3fe   :  { %1601 = vmatpush.bf16.msra.mxu2 %v1566_v9  ;;  %v4263_v4 = vld [vmem:[#allocation3 + $0x240] sm:$0xf0] }
 0x3ff   :  { %v1621_v63 = vpop.f32.mrf.mxu0 }
 0x400   :  { %v2020_v63 = vunpack.c.h.b16 %v5865_v42 }
 0x401   :  { %1589 = vmatpush.bf16.msra.mxu1 %v4194_v27  ;;  %v4230_v27 = vor.u32 %v5165_v51, %v4227_v30 }
 0x402   :  { %1602 = vmatpush.bf16.msra.mxu2 %v4198_v18  ;;  %v1871_v18 = vpack.c.b16 %v1855_v58, %v1855_v58  ;;  %v2036_v30 = vpack.c.b16 %v2020_v63, %v2020_v63  ;;  %v4269_v58 = vld [vmem:[#allocation3 + $0x238] sm:$0xf]  ;;  %v2186_v63 = vunpack.c.l.b16 %v5882_v16 }
 0x404   :  { %v1893_v33 = vsel %vm441_vm12, %v1871_v18, 0  ;;  %v2058_v42 = vsel %vm441_vm12, %v2036_v30, 0 }
 0x405   :  { %1590 = vmatpush.bf16.msra.mxu1 %v4178_v26  ;;  %v1582_v9 = vpop.f32.mrf.mxu3  ;;  %v1872_v26 = vpack.c.b16 %v1856_v1, %v1856_v1  ;;  %v5193_v1 = vld [vmem:[#allocation3 + $0x2e4] sm:$0xf] }
 0x406   :  { %1603 = vmatpush.bf16.msra.mxu2 %v4182_v40  ;;  %v2037_v9 = vpack.c.b16 %v2021_v21, %v2021_v21  ;;  %v4350_v18 = vor.u32 %v5193_v1, %v4347_v11  ;;  %v5188_v21 = vld [vmem:[#allocation3 + $0x2b4] sm:$0xf0]  ;;  %v5254_v1 = vld [vmem:[%s6984_s11 + $0x4c] sm:$0xf] }
 0x407   :  { %v6014_v13 = vpop.f32.mrf.mxu0  ;;  %v1896_v40 = vsel %vm441_vm12, %v1872_v26, 0 }
 0x408   :  { %v2061_v44 = vsel %vm441_vm12, %v2037_v9, 0 }
 0x409   :  { %1591 = vmatpush.bf16.msra.mxu1 %v4162_v34 }
 0x40a   :  { %1604 = vmatpush.bf16.msra.mxu2 %v4166_v35  ;;  %v4279_v35 = vld [vmem:[#allocation3 + $0x260] sm:$0xf0] }
 0x40c   :  { %4204 = vmatmul.msk.bf16.vlgmr.msra.gmra.mxu1 %vm1057_vm4, %v5857_v22 }
 0x40d   :  { %1753 = vmatpush.bf16.msrb.mxu1 %v1728_v28  ;;  %4205 = vmatmul.msk.bf16.vlgmr.msra.gmra.mxu2 %vm1057_vm4, %v5857_v22  ;;  %v6021_v36 = vpop.f32.mrf.mxu3  ;;  %v4302_v28 = vor.u32 %v5184_v50, %v4301_v49  ;;  %v4282_v22 = vor.u32 %v5177_v54, %v4279_v35  ;;  %v4315_v54 = vld [vmem:[#allocation3 + $0x2b0] sm:$0xf0]  ;;  %v2185_v35 = vunpack.c.h.b16 %v5880_v15  ;;  %v4631_v15 = vld [vmem:[%s6984_s11 + $0x78] sm:$0xf0] }
 0x40e   :  { %1766 = vmatpush.bf16.msrb.mxu2 %v1731_v29  ;;  %v5173_v29 = vld [vmem:[#allocation3 + $0x234] sm:$0xf] }
 0x40f   :  { %v1786_v34 = vpop.f32.mrf.mxu0 }
 0x410   :  { %v5185_v34 = vld [vmem:[#allocation3 + $0x2a4] sm:$0xf] }
 0x411   :  { %1754 = vmatpush.bf16.msrb.mxu1 %v4246_v7  ;;  %v4286_v7 = vor.u32 %v5180_v57, %v4285_v61  ;;  %v4621_v61 = vld [vmem:[%s6984_s11 + $0x60] sm:$0xf]  ;;  %v4318_v16 = vor.u32 %v5185_v34, %v4315_v54  ;;  %v5201_v34 = vld [vmem:[#allocation3 + $0x334] sm:$0xf]  ;;  %v4383_v54 = vld [vmem:[#allocation3 + $0x340] sm:$0xf0] }
 0x412   :  { %1767 = vmatpush.bf16.msrb.mxu2 %v4250_v2  ;;  %v4266_v2 = vor.u32 %v5173_v29, %v4263_v4  ;;  %v5258_v29 = vld [vmem:[%s6984_s11 + $0x6c] sm:$0xf] }
 0x413   :  { %v4321_v4 = vld [vmem:[#allocation3 + $0x2a8] sm:$0xf] }
 0x415   :  { %1755 = vmatpush.bf16.msrb.mxu1 %v4230_v27  ;;  %v1747_v51 = vpop.f32.mrf.mxu3  ;;  %v4270_v27 = vor.u32 %v5176_v8, %v4269_v58  ;;  %v4322_v58 = vor.u32 %v5188_v21, %v4321_v4  ;;  %v2202_v8 = vpack.c.b16 %v2186_v63, %v2186_v63  ;;  %v5197_v63 = vld [vmem:[#allocation3 + $0x314] sm:$0xf]  ;;  %v4386_v4 = vor.u32 %v5201_v34, %v4383_v54  ;;  %v5275_v34 = vld [vmem:[%s6984_s11 + $0xec] sm:$0xf0] }
 0x416   :  { %1768 = vmatpush.bf16.msrb.mxu2 %v4234_v32  ;;  %v5196_v32 = vld [vmem:[#allocation3 + $0x2f4] sm:$0xf0]  ;;  %v4634_v51 = vor.u32 %v5258_v29, %v4631_v15  ;;  %v4573_v29 = vld [vmem:[%s6984_s11] sm:$0xf]  ;;  %v5247_v15 = vld [vmem:[%s6984_s11 + $0xc] sm:$0xf0] }
 0x417   :  { %v6026_v14 = vpop.f32.mrf.mxu0  ;;  %v4354_v26 = vor.u32 %v5196_v32, %v4353_v43  ;;  %v5205_v32 = vld [vmem:[#allocation3 + $0x354] sm:$0xf]  ;;  %v4574_v21 = vor.u32 %v5247_v15, %v4573_v29  ;;  %v5213_v15 = vld [vmem:[#allocation3 + $0x3a4] sm:$0xf] }
 0x418   :  { %v4451_v54 = vld [vmem:[#allocation3 + $0x3d0] sm:$0xf0] }
 0x419   :  { %1756 = vmatpush.bf16.msrb.mxu1 %v4214_v25  ;;  %v4331_v25 = vld [vmem:[#allocation3 + $0x2d0] sm:$0xf0] }
 0x41a   :  { %1769 = vmatpush.bf16.msrb.mxu2 %v4218_v5  ;;  %v4337_v5 = vld [vmem:[#allocation3 + $0x2c8] sm:$0xf]  ;;  %v4334_v49 = vor.u32 %v5189_v23, %v4331_v25  ;;  %v2226_v25 = vsel %vm441_vm12, %v2202_v8, 0  ;;  %v4751_v8 = vld [vmem:[%s6984_s11 + $0x138] sm:$0xf0] }
 0x41c   :  { %4256 = vmatmul.msk.bf16.vlgmr.msrb.gmra.mxu1 %vm1057_vm4, %v5872_v60 }
 0x41d   :  { %1918 = vmatpush.bf16.msra.mxu1 %v1893_v33  ;;  %4257 = vmatmul.msk.bf16.vlgmr.msrb.gmra.mxu2 %vm1057_vm4, %v5872_v60  ;;  %v6034_v19 = vpop.f32.mrf.mxu3  ;;  %v5192_v33 = vld [vmem:[#allocation3 + $0x2d4] sm:$0xf0]  ;;  %v5263_v60 = vld [vmem:[%s6984_s11 + $0x8c] sm:$0xf0] }
 0x41e   :  { %1931 = vmatpush.bf16.msra.mxu2 %v1896_v40  ;;  %v5262_v40 = vld [vmem:[%s6984_s11 + $0x8c] sm:$0xf]  ;;  %v4638_v50 = vor.u32 %v5263_v60, %v4637_v20  ;;  %v4338_v57 = vor.u32 %v5192_v33, %v4337_v5  ;;  %v4589_v33 = vld [vmem:[%s6984_s11 + $0x20] sm:$0xf] }
 0x41f   :  { %v1951_v6 = vpop.f32.mrf.mxu0  ;;  %v5208_v5 = vld [vmem:[#allocation3 + $0x364] sm:$0xf0] }
 0x420   :  { %2920 = vmatpush.bf16.msra.mxu3 %v4638_v50  ;;  %v5251_v6 = vld [vmem:[%s6984_s11 + $0x2c] sm:$0xf0]  ;;  %v5250_v20 = vld [vmem:[%s6984_s11 + $0x2c] sm:$0xf] }
 0x421   :  { %1919 = vmatpush.bf16.msra.mxu1 %v4298_v53  ;;  %v4647_v53 = vld [vmem:[%s6984_s11 + $0x98] sm:$0xf0] }
 0x422   :  { %1932 = vmatpush.bf16.msra.mxu2 %v4302_v28  ;;  %v4650_v28 = vor.u32 %v5262_v40, %v4647_v53  ;;  %v4590_v40 = vor.u32 %v5251_v6, %v4589_v33  ;;  %v4735_v33 = vld [vmem:[%s6984_s11 + $0x118] sm:$0xf0] }
 0x424   :  { %2959 = vmatpush.bf16.msra.mxu0 %v4650_v28  ;;  %v4389_v28 = vld [vmem:[#allocation3 + $0x338] sm:$0xf] }
 0x425   :  { %1920 = vmatpush.bf16.msra.mxu1 %v4282_v22  ;;  %v5259_v22 = vld [vmem:[%s6984_s11 + $0x6c] sm:$0xf0]  ;;  %v1912_v30 = vpop.f32.mrf.mxu3 }
 0x426   :  { %1933 = vmatpush.bf16.msra.mxu2 %v4286_v7  ;;  %v4622_v7 = vor.u32 %v5259_v22, %v4621_v61  ;;  %v5204_v61 = vld [vmem:[#allocation3 + $0x344] sm:$0xf0]  ;;  %v2350_v22 = vunpack.c.h.b16 %v5895_v56  ;;  %v4583_v56 = vld [vmem:[%s6984_s11 + $0x18] sm:$0xf0] }
 0x427   :  { %v6062_v9 = vpop.f32.mrf.mxu0 }
 0x428   :  { %2921 = vmatpush.bf16.msra.mxu3 %v4622_v7  ;;  %2960 = vmatpush.bf16.msra.mxu0 %v4634_v51  ;;  %v5246_v7 = vld [vmem:[%s6984_s11 + $0xc] sm:$0xf]  ;;  %v4741_v51 = vld [vmem:[%s6984_s11 + $0x120] sm:$0xf] }
 0x429   :  { %1921 = vmatpush.bf16.msra.mxu1 %v4266_v2  ;;  %v2201_v2 = vpack.c.b16 %v2185_v35, %v2185_v35  ;;  %v4586_v30 = vor.u32 %v5246_v7, %v4583_v56 }
 0x42a   :  { %1934 = vmatpush.bf16.msra.mxu2 %v4270_v27  ;;  %v4605_v27 = vld [vmem:[%s6984_s11 + $0x40] sm:$0xf] }
 0x42b   :  { %v2223_v43 = vsel %vm441_vm12, %v2201_v2, 0  ;;  %v5283_v2 = vld [vmem:[%s6984_s11 + $0x12c] sm:$0xf0] }
 0x42c   :  { %4308 = vmatmul.msk.bf16.vlgmr.msra.gmra.mxu1 %vm1057_vm4, %v5887_v39 }
 0x42d   :  { %2083 = vmatpush.bf16.msrb.mxu1 %v2058_v42  ;;  %v5255_v42 = vld [vmem:[%s6984_s11 + $0x4c] sm:$0xf0]  ;;  %4309 = vmatmul.msk.bf16.vlgmr.msra.gmra.mxu2 %vm1057_vm4, %v5887_v39  ;;  %v6094_v50 = vpop.f32.mrf.mxu3  ;;  %v4367_v39 = vld [vmem:[#allocation3 + $0x320] sm:$0xf0] }
 0x42e   :  { %2096 = vmatpush.bf16.msrb.mxu2 %v2061_v44  ;;  %v4606_v11 = vor.u32 %v5255_v42, %v4605_v27  ;;  %v4615_v44 = vld [vmem:[%s6984_s11 + $0x58] sm:$0xf0]  ;;  %v5200_v42 = vld [vmem:[#allocation3 + $0x324] sm:$0xf0] }
 0x42f   :  { %v4618_v23 = vor.u32 %v5254_v1, %v4615_v44  ;;  %v4373_v27 = vld [vmem:[#allocation3 + $0x318] sm:$0xf]  ;;  %v2351_v1 = vunpack.c.l.b16 %v5897_v59  ;;  %v5278_v59 = vld [vmem:[%s6984_s11 + $0x10c] sm:$0xf] }
 0x430   :  { %2922 = vmatpush.bf16.msra.mxu3 %v4606_v11  ;;  %v4742_v11 = vor.u32 %v5283_v2, %v4741_v51  ;;  %v5271_v51 = vld [vmem:[%s6984_s11 + $0xcc] sm:$0xf0]  ;;  %v5216_v2 = vld [vmem:[#allocation3 + $0x3b4] sm:$0xf0] }
 0x431   :  { %2084 = vmatpush.bf16.msrb.mxu1 %v4350_v18  ;;  %v4399_v18 = vld [vmem:[#allocation3 + $0x360] sm:$0xf0]  ;;  %2961 = vmatpush.bf16.msra.mxu0 %v4618_v23  ;;  %v5279_v23 = vld [vmem:[%s6984_s11 + $0x10c] sm:$0xf0]  ;;  %v2367_v6 = vpack.c.b16 %v2351_v1, %v2351_v1 }
 0x432   :  { %2097 = vmatpush.bf16.msrb.mxu2 %v4354_v26  ;;  %v4405_v26 = vld [vmem:[#allocation3 + $0x358] sm:$0xf]  ;;  %v4402_v60 = vor.u32 %v5205_v32, %v4399_v18  ;;  %v4370_v32 = vor.u32 %v5197_v63, %v4367_v39  ;;  %v4725_v18 = vld [vmem:[%s6984_s11 + $0x100] sm:$0xf]  ;;  %v4457_v63 = vld [vmem:[#allocation3 + $0x3c8] sm:$0xf] }
 0x433   :  { %v4406_v53 = vor.u32 %v5208_v5, %v4405_v26  ;;  %v4374_v26 = vor.u32 %v5200_v42, %v4373_v27  ;;  %v4726_v5 = vor.u32 %v5279_v23, %v4725_v18  ;;  %v5220_v39 = vld [vmem:[#allocation3 + $0x3d4] sm:$0xf0]  ;;  %v5209_v1 = vld [vmem:[#allocation3 + $0x384] sm:$0xf]  ;;  %v2516_v18 = vunpack.c.h.b16 %v5910_v41 }
 0x434   :  { %2923 = vmatpush.bf16.msra.mxu3 %v4590_v40  ;;  %v4458_v56 = vor.u32 %v5220_v39, %v4457_v63 }
 0x435   :  { %2085 = vmatpush.bf16.msrb.mxu1 %v4334_v49  ;;  %v4599_v49 = vld [vmem:[%s6984_s11 + $0x38] sm:$0xf0] }
 0x436   :  { %2098 = vmatpush.bf16.msrb.mxu2 %v4338_v57  ;;  %v4602_v35 = vor.u32 %v5250_v20, %v4599_v49  ;;  %v2116_v57 = vpop.f32.mrf.mxu0  ;;  %v4738_v20 = vor.u32 %v5278_v59, %v4735_v33  ;;  %v5217_v49 = vld [vmem:[#allocation3 + $0x3c4] sm:$0xf]  ;;  %v5266_v59 = vld [vmem:[%s6984_s11 + $0xac] sm:$0xf]  ;;  %v2517_v33 = vunpack.c.l.b16 %v5912_v45 }
 0x437   :  { %v2391_v57 = vsel %vm441_vm12, %v2367_v6, 0  ;;  %v4454_v29 = vor.u32 %v5217_v49, %v4451_v54  ;;  %v2532_v49 = vpack.c.b16 %v2516_v18, %v2516_v18  ;;  %v5224_v18 = vld [vmem:[#allocation3 + $0x404] sm:$0xf0] }
 0x438   :  { %2962 = vmatpush.bf16.msra.mxu0 %v4602_v35  ;;  %2924 = vmatpush.bf16.msra.mxu3 %v4574_v21  ;;  %v4693_v21 = vld [vmem:[%s6984_s11 + $0xc0] sm:$0xf] }
 0x439   :  { %2086 = vmatpush.bf16.msrb.mxu1 %v4318_v16  ;;  %v4390_v16 = vor.u32 %v5204_v61, %v4389_v28  ;;  %v5274_v28 = vld [vmem:[%s6984_s11 + $0xec] sm:$0xf]  ;;  %v4719_v61 = vld [vmem:[%s6984_s11 + $0xf8] sm:$0xf0]  ;;  %v2554_v54 = vsel %vm441_vm12, %v2532_v49, 0 }
 0x43a   :  { %2099 = vmatpush.bf16.msrb.mxu2 %v4322_v58  ;;  %v5282_v58 = vld [vmem:[%s6984_s11 + $0x12c] sm:$0xf] }
 0x43b   :  { %v4754_v44 = vor.u32 %v5282_v58, %v4751_v8  ;;  %v4694_v58 = vor.u32 %v5271_v51, %v4693_v21  ;;  %v4493_v21 = vld [vmem:[#allocation3 + $0x418] sm:$0xf] }
 0x43c   :  { %2963 = vmatpush.bf16.msra.mxu0 %v4586_v30  ;;  %3110 = vmatpush.bf16.msrb.mxu3 %v4742_v11  ;;  %v4441_v30 = vld [vmem:[#allocation3 + $0x3a8] sm:$0xf]  ;;  %v4677_v11 = vld [vmem:[%s6984_s11 + $0xa0] sm:$0xf] }
 0x43d   :  { %2248 = vmatpush.bf16.msra.mxu1 %v2223_v43  ;;  %v2366_v43 = vpack.c.b16 %v2350_v22, %v2350_v22  ;;  %v4722_v22 = vor.u32 %v5274_v28, %v4719_v61  ;;  %4361 = vmatmul.msk.bf16.vlgmr.msrb.gmra.mxu2 %vm1057_vm4, %v5902_v17  ;;  %v4503_v28 = vld [vmem:[#allocation3 + $0x440] sm:$0xf0]  ;;  %v4509_v61 = vld [vmem:[#allocation3 + $0x438] sm:$0xf] }
 0x43e   :  { %2261 = vmatpush.bf16.msra.mxu2 %v2226_v25  ;;  %v2077_v25 = vpop.f32.mrf.mxu3  ;;  %4360 = vmatmul.msk.bf16.vlgmr.msrb.gmra.mxu1 %vm1057_vm4, %v5902_v17  ;;  %v5270_v17 = vld [vmem:[%s6984_s11 + $0xcc] sm:$0xf] }
 0x43f   :  { %v2388_v40 = vsel %vm441_vm12, %v2366_v43, 0  ;;  %v4442_v43 = vor.u32 %v5216_v2, %v4441_v30  ;;  %v4687_v25 = vld [vmem:[%s6984_s11 + $0xb8] sm:$0xf0]  ;;  %v5302_v2 = vld [vmem:[%s6984_s11 + $0x1cc] sm:$0xf] }
 0x440   :  { %3149 = vmatpush.bf16.msrb.mxu0 %v4754_v44  ;;  %3111 = vmatpush.bf16.msrb.mxu3 %v4726_v5  ;;  %v5267_v44 = vld [vmem:[%s6984_s11 + $0xac] sm:$0xf0]  ;;  %v5212_v5 = vld [vmem:[#allocation3 + $0x394] sm:$0xf0]  ;;  %v4690_v6 = vor.u32 %v5266_v59, %v4687_v25 }
 0x441   :  { %2249 = vmatpush.bf16.msra.mxu1 %v4402_v60  ;;  %v6134_v60 = vpop.f32.mrf.mxu0  ;;  %v4678_v23 = vor.u32 %v5267_v44, %v4677_v11  ;;  %v5221_v11 = vld [vmem:[#allocation3 + $0x3f4] sm:$0xf]  ;;  %v4471_v44 = vld [vmem:[#allocation3 + $0x400] sm:$0xf0] }
 0x442   :  { %2262 = vmatpush.bf16.msra.mxu2 %v4406_v53  ;;  %v4709_v53 = vld [vmem:[%s6984_s11 + $0xe0] sm:$0xf] }
 0x443   :  { %v4710_v35 = vor.u32 %v5275_v34, %v4709_v53  ;;  %v2533_v53 = vpack.c.b16 %v2517_v33, %v2517_v33 }
 0x444   :  { %3150 = vmatpush.bf16.msrb.mxu0 %v4738_v20 }
 0x445   :  { %2250 = vmatpush.bf16.msra.mxu1 %v4386_v4  ;;  %v4435_v4 = vld [vmem:[#allocation3 + $0x3b0] sm:$0xf0]  ;;  %3112 = vmatpush.bf16.msrb.mxu3 %v4710_v35  ;;  %v2557_v45 = vsel %vm441_vm12, %v2533_v53, 0 }
 0x446   :  { %2263 = vmatpush.bf16.msra.mxu2 %v4390_v16  ;;  %v6157_v7 = vpop.f32.mrf.mxu3  ;;  %v4703_v16 = vld [vmem:[%s6984_s11 + $0xd8] sm:$0xf0]  ;;  %v4438_v42 = vor.u32 %v5213_v15, %v4435_v4  ;;  %v5229_v35 = vld [vmem:[#allocation3 + $0x434] sm:$0xf]  ;;  %v4487_v15 = vld [vmem:[#allocation3 + $0x420] sm:$0xf0] }
 0x447   :  { %v4706_v8 = vor.u32 %v5270_v17, %v4703_v16  ;;  %v4506_v63 = vor.u32 %v5229_v35, %v4503_v28  ;;  %v4845_v17 = vld [vmem:[%s6984_s11 + $0x1c0] sm:$0xf] }
 0x448   :  { %3151 = vmatpush.bf16.msrb.mxu0 %v4722_v22 }
 0x449   :  { %2251 = vmatpush.bf16.msra.mxu1 %v4370_v32  ;;  %v2281_v27 = vpop.f32.mrf.mxu0  ;;  %v4419_v32 = vld [vmem:[#allocation3 + $0x390] sm:$0xf0]  ;;  %3113 = vmatpush.bf16.msrb.mxu3 %v4694_v58  ;;  %v4855_v58 = vld [vmem:[%s6984_s11 + $0x1d8] sm:$0xf0] }
 0x44a   :  { %2264 = vmatpush.bf16.msra.mxu2 %v4374_v26  ;;  %v4425_v26 = vld [vmem:[#allocation3 + $0x388] sm:$0xf]  ;;  %v4422_v20 = vor.u32 %v5209_v1, %v4419_v32  ;;  %v2682_v27 = vunpack.c.h.b16 %v5928_v37  ;;  %v4477_v32 = vld [vmem:[#allocation3 + $0x3f8] sm:$0xf]  ;;  %v4858_v59 = vor.u32 %v5302_v2, %v4855_v58  ;;  %v5299_v37 = vld [vmem:[%s6984_s11 + $0x1ac] sm:$0xf0] }
 0x44b   :  { %v4426_v41 = vor.u32 %v5212_v5, %v4425_v26  ;;  %v944_v39 = vpop.f32.mrf.mxu1  ;;  %v4829_v26 = vld [vmem:[%s6984_s11 + $0x1a0] sm:$0xf]  ;;  %v5237_v58 = vld [vmem:[#allocation3 + $0x484] sm:$0xf] }
 0x44c   :  { %3152 = vmatpush.bf16.msrb.mxu0 %v4706_v8  ;;  %v2698_v5 = vpack.c.b16 %v2682_v27, %v2682_v27  ;;  %v4830_v49 = vor.u32 %v5299_v37, %v4829_v26  ;;  %v4781_v26 = vld [vmem:[%s6984_s11 + $0x140] sm:$0xf]  ;;  %v5287_v37 = vld [vmem:[%s6984_s11 + $0x14c] sm:$0xf0] }
 0x44d   :  { %2413 = vmatpush.bf16.msrb.mxu1 %v2388_v40  ;;  %3114 = vmatpush.bf16.msrb.mxu3 %v4678_v23 }
 0x44e   :  { %2426 = vmatpush.bf16.msrb.mxu2 %v2391_v57  ;;  %v2242_v40 = vpop.f32.mrf.mxu3  ;;  %v5232_v57 = vld [vmem:[#allocation3 + $0x444] sm:$0xf0]  ;;  %4412 = vmatmul.msk.bf16.vlgmr.msra.gmra.mxu1 %vm1057_vm4, %v5917_v0  ;;  %v2720_v35 = vsel %vm441_vm12, %v2698_v5, 0 }
 0x44f   :  { %4413 = vmatmul.msk.bf16.vlgmr.msra.gmra.mxu2 %vm1057_vm4, %v5917_v0  ;;  %v4510_v22 = vor.u32 %v5232_v57, %v4509_v61  ;;  %v5303_v0 = vld [vmem:[%s6984_s11 + $0x1cc] sm:$0xf0]  ;;  %v4478_v40 = vor.u32 %v5224_v18, %v4477_v32  ;;  %v1131_v32 = vrot.slane %v5938_v10, 5  ;;  %v5286_v10 = vld [vmem:[%s6984_s11 + $0x14c] sm:$0xf] }
 0x450   :  { %3153 = vmatpush.bf16.msrb.mxu0 %v4690_v6  ;;  %v966_v51 = vpop.f32.mrf.mxu2  ;;  %v4846_v23 = vor.u32 %v5303_v0, %v4845_v17  ;;  %v5298_v6 = vld [vmem:[%s6984_s11 + $0x1ac] sm:$0xf]  ;;  %v5295_v61 = vld [vmem:[%s6984_s11 + $0x18c] sm:$0xf0]  ;;  %v4797_v17 = vld [vmem:[%s6984_s11 + $0x160] sm:$0xf] }
 0x451   :  { %2414 = vmatpush.bf16.msrb.mxu1 %v4454_v29  ;;  %v6182_v34 = vpop.f32.mrf.mxu0  ;;  %v5225_v29 = vld [vmem:[#allocation3 + $0x414] sm:$0xf]  ;;  %v969_v16 = vmax.f32 %v944_v39, %v966_v51  ;;  %v4823_v39 = vld [vmem:[%s6984_s11 + $0x198] sm:$0xf0] }
 0x452   :  { %2427 = vmatpush.bf16.msrb.mxu2 %v4458_v56  ;;  %v5228_v56 = vld [vmem:[#allocation3 + $0x424] sm:$0xf0]  ;;  %v4490_v8 = vor.u32 %v5225_v29, %v4487_v15  ;;  %v4555_v29 = vld [vmem:[#allocation3 + $0x4b0] sm:$0xf0] }
 0x453   :  { %v4494_v1 = vor.u32 %v5228_v56, %v4493_v21  ;;  %v4561_v15 = vld [vmem:[#allocation3 + $0x4a8] sm:$0xf]  ;;  %v5244_v21 = vld [vmem:[#allocation3 + $0x4b4] sm:$0xf0] }
 0x454   :  { %v4562_v2 = vor.u32 %v5244_v21, %v4561_v15  ;;  %v4645_v15 = vld [vmem:[%s6984_s11 + $0x88] sm:$0xf]  ;;  %v5264_v21 = vld [vmem:[%s6984_s11 + $0x94] sm:$0xf0] }
 0x455   :  { %2415 = vmatpush.bf16.msrb.mxu1 %v4438_v42  ;;  %v2683_v42 = vunpack.c.l.b16 %v5930_v38  ;;  %v4474_v38 = vor.u32 %v5221_v11, %v4471_v44  ;;  %v5240_v11 = vld [vmem:[#allocation3 + $0x494] sm:$0xf0] }
 0x456   :  { %2428 = vmatpush.bf16.msrb.mxu2 %v4442_v43  ;;  %v6190_v4 = vpop.f32.mrf.mxu3  ;;  %v970_v43 = vmax.f32 %v969_v16, 0.0  ;;  %v5291_v16 = vld [vmem:[%s6984_s11 + $0x16c] sm:$0xf0] }
 0x457   :  { %v2699_v33 = vpack.c.b16 %v2683_v42, %v2683_v42 }
 0x458   :  { %v6206_v25 = vpack.c.bf16 %v970_v43, %v970_v43  ;;  %v4798_v43 = vor.u32 %v5291_v16, %v4797_v17 }
 0x459   :  { %2416 = vmatpush.bf16.msrb.mxu1 %v4422_v20  ;;  %v2446_v30 = vpop.f32.mrf.mxu0  ;;  %v4839_v20 = vld [vmem:[%s6984_s11 + $0x1b8] sm:$0xf0]  ;;  %v1095_v53 = vpop.f32.mrf.mxu1  ;;  %v2723_v28 = vsel %vm441_vm12, %v2699_v33, 0 }
 0x45a   :  { %2429 = vmatpush.bf16.msrb.mxu2 %v4426_v41  ;;  %4651 = vmatmul.msk.bf16.vlgmr.msra.gmra.mxu3 %vm2913_vm3, %v6206_v25  ;;  %v5290_v30 = vld [vmem:[%s6984_s11 + $0x16c] sm:$0xf]  ;;  %v1129_v27 = vrot.slane %v1095_v53, 7 }
 0x45b   :  { %4654 = vmatmul.msk.bf16.vlgmr.msra.gmra.mxu0 %vm2913_vm3, %v6206_v25  ;;  %3300 = vmatpush.bf16.msra.mxu3 %v4846_v23  ;;  %v4529_v53 = vld [vmem:[#allocation3 + $0x468] sm:$0xf] }
 0x45c   :  { %3339 = vmatpush.bf16.msra.mxu0 %v4858_v59 }
 0x45d   :  { %2579 = vmatpush.bf16.msra.mxu1 %v2554_v54  ;;  %v4842_v54 = vor.u32 %v5298_v6, %v4839_v20  ;;  %v4791_v6 = vld [vmem:[%s6984_s11 + $0x158] sm:$0xf0]  ;;  %v5233_v20 = vld [vmem:[#allocation3 + $0x464] sm:$0xf] }
 0x45e   :  { %2592 = vmatpush.bf16.msra.mxu2 %v2557_v45  ;;  %v2407_v41 = vpop.f32.mrf.mxu3  ;;  %v4813_v45 = vld [vmem:[%s6984_s11 + $0x180] sm:$0xf]  ;;  %4464 = vmatmul.msk.bf16.vlgmr.msrb.gmra.mxu1 %vm1057_vm4, %v5942_v12 }
 0x45f   :  { %3301 = vmatpush.bf16.msra.mxu3 %v4830_v49  ;;  %v4814_v56 = vor.u32 %v5295_v61, %v4813_v45  ;;  %4465 = vmatmul.msk.bf16.vlgmr.msrb.gmra.mxu2 %vm1057_vm4, %v5942_v12  ;;  %v4807_v12 = vld [vmem:[%s6984_s11 + $0x178] sm:$0xf0]  ;;  %v4523_v49 = vld [vmem:[#allocation3 + $0x470] sm:$0xf0]  ;;  %v6276_v45 = vshrl.u32 %v6206_v25, 16  ;;  %v4794_v61 = vor.u32 %v5286_v10, %v4791_v6 }
 0x460   :  { %3340 = vmatpush.bf16.msra.mxu0 %v4842_v54  ;;  %v1108_v44 = vpop.f32.mrf.mxu2  ;;  %v4810_v59 = vor.u32 %v5290_v30, %v4807_v12  ;;  %v5236_v54 = vld [vmem:[#allocation3 + $0x474] sm:$0xf0]  ;;  %v4646_v30 = vor.u32 %v5264_v21, %v4645_v15  ;;  %v4629_v12 = vld [vmem:[%s6984_s11 + $0x68] sm:$0xf]  ;;  %v5249_v10 = vld [vmem:[%s6984_s11 + $0x24] sm:$0xf] }
 0x461   :  { %2580 = vmatpush.bf16.msra.mxu1 %v4506_v63  ;;  %v6232_v57 = vpop.f32.mrf.mxu0  ;;  %v5294_v63 = vld [vmem:[%s6984_s11 + $0x18c] sm:$0xf]  ;;  %v1130_v18 = vrot.slane %v1108_v44, 6  ;;  %v1097_v23 = vpop.f32.mrf.mxu1  ;;  %v4591_v6 = vld [vmem:[%s6984_s11 + $0x30] sm:$0xf0] }
 0x462   :  { %2593 = vmatpush.bf16.msra.mxu2 %v4510_v22  ;;  %v5241_v22 = vld [vmem:[#allocation3 + $0x4a4] sm:$0xf]  ;;  %v4826_v51 = vor.u32 %v5294_v63, %v4823_v39  ;;  %v4526_v63 = vor.u32 %v5233_v20, %v4523_v49  ;;  %v4530_v39 = vor.u32 %v5236_v54, %v4529_v53  ;;  %v5252_v49 = vld [vmem:[%s6984_s11 + $0x34] sm:$0xf0]  ;;  %v4743_v15 = vld [vmem:[%s6984_s11 + $0x130] sm:$0xf0] }
 0x463   :  { %v4558_v0 = vor.u32 %v5241_v22, %v4555_v29  ;;  %3302 = vmatpush.bf16.msra.mxu3 %v4814_v56  ;;  %v1134_v41 = vsel %vm1133_vm6, %v1130_v18, %v1131_v32  ;;  %v4639_v22 = vld [vmem:[%s6984_s11 + $0x90] sm:$0xf0]  ;;  %v4613_v32 = vld [vmem:[%s6984_s11 + $0x48] sm:$0xf]  ;;  %v971_v18 = vld [vmem:[%s6985_s12] sm:$0xf] }
 0x464   :  { %3341 = vmatpush.bf16.msra.mxu0 %v4826_v51 }
 0x465   :  { %2581 = vmatpush.bf16.msra.mxu1 %v4490_v8  ;;  %v4539_v8 = vld [vmem:[#allocation3 + $0x490] sm:$0xf0] }
 0x466   :  { %2594 = vmatpush.bf16.msra.mxu2 %v4494_v1  ;;  %v6256_v42 = vpop.f32.mrf.mxu3  ;;  %v4545_v1 = vld [vmem:[#allocation3 + $0x488] sm:$0xf]  ;;  %v4542_v5 = vor.u32 %v5237_v58, %v4539_v8  ;;  %v5260_v58 = vld [vmem:[%s6984_s11 + $0x74] sm:$0xf0] }
 0x467   :  { %v4546_v33 = vor.u32 %v5240_v11, %v4545_v1  ;;  %3303 = vmatpush.bf16.msra.mxu3 %v4798_v43  ;;  %v5253_v1 = vld [vmem:[%s6984_s11 + $0x44] sm:$0xf]  ;;  %v4607_v11 = vld [vmem:[%s6984_s11 + $0x50] sm:$0xf0] }
 0x468   :  { %3342 = vmatpush.bf16.msra.mxu0 %v4810_v59  ;;  %v1110_v56 = vpop.f32.mrf.mxu2  ;;  %v1298_v59 = vrot.slane %v5961_v47, 5 }
 0x469   :  { %2582 = vmatpush.bf16.msra.mxu1 %v4474_v38  ;;  %v2612_v38 = vpop.f32.mrf.mxu0  ;;  %v1262_v51 = vpop.f32.mrf.mxu1  ;;  %v4749_v56 = vld [vmem:[%s6984_s11 + $0x128] sm:$0xf] }
 0x46a   :  { %2595 = vmatpush.bf16.msra.mxu2 %v4478_v40  ;;  %v1132_v40 = vsel %vm441_vm12, %v5954_v46, %v1129_v27  ;;  %v5261_v46 = vld [vmem:[%s6984_s11 + $0x84] sm:$0xf]  ;;  %4755 = vmatmul.msk.bf16.vlgmr.msrb.gmra.mxu3 %vm2913_vm3, %v6276_v45  ;;  %v4630_v27 = vor.u32 %v5260_v58, %v4629_v12  ;;  %v1296_v44 = vrot.slane %v1262_v51, 7  ;;  %v4610_v38 = vor.u32 %v5253_v1, %v4607_v11  ;;  %v5284_v51 = vld [vmem:[%s6984_s11 + $0x134] sm:$0xf0] }
 0x46b   :  { %4758 = vmatmul.msk.bf16.vlgmr.msrb.gmra.mxu0 %vm2913_vm3, %v6276_v45  ;;  %v4642_v17 = vor.u32 %v5261_v46, %v4639_v22  ;;  %v5248_v22 = vld [vmem:[%s6984_s11 + $0x14] sm:$0xf0]  ;;  %v4750_v12 = vor.u32 %v5284_v51, %v4749_v56  ;;  %v5277_v58 = vld [vmem:[%s6984_s11 + $0x104] sm:$0xf] }
 0x46c   :  { %3343 = vmatpush.bf16.msra.mxu0 %v4794_v61  ;;  %v5245_v61 = vld [vmem:[%s6984_s11 + $0x4] sm:$0xf]  ;;  %v5280_v1 = vld [vmem:[%s6984_s11 + $0x114] sm:$0xf0] }
 0x46d   :  { %2745 = vmatpush.bf16.msrb.mxu1 %v2720_v35  ;;  %v1135_v35 = vsel %vm89_vm1, %v1132_v40, %v1134_v41  ;;  %v1299_v40 = vsel %vm441_vm12, %v5977_v31, %v1296_v44  ;;  %v4597_v41 = vld [vmem:[%s6984_s11 + $0x28] sm:$0xf] }
 0x46e   :  { %2758 = vmatpush.bf16.msrb.mxu2 %v2723_v28  ;;  %v4782_v28 = vor.u32 %v5287_v37, %v4781_v26  ;;  %v2573_v29 = vpop.f32.mrf.mxu3  ;;  %4516 = vmatmul.msk.bf16.vlgmr.msra.gmra.mxu1 %vm1057_vm4, %v5965_v52  ;;  %v1137_v20 = vadd.f32 %v1135_v35, %v971_v18  ;;  %v4594_v35 = vor.u32 %v5249_v10, %v4591_v6  ;;  %v4711_v18 = vld [vmem:[%s6984_s11 + $0xf0] sm:$0xf0] }
 0x46f   :  { %4517 = vmatmul.msk.bf16.vlgmr.msra.gmra.mxu2 %vm1057_vm4, %v5965_v52  ;;  %v5256_v52 = vld [vmem:[%s6984_s11 + $0x54] sm:$0xf0]  ;;  %v4598_v31 = vor.u32 %v5252_v49, %v4597_v41  ;;  %v5281_v29 = vld [vmem:[%s6984_s11 + $0x124] sm:$0xf] }
 0x470   :  { %3304 = vmatpush.bf16.msra.mxu3 %v4782_v28  ;;  %v1275_v23 = vpop.f32.mrf.mxu2  ;;  %v6347_v28 = vrot.slane %v6206_v25, 1 }
 0x471   :  { %2746 = vmatpush.bf16.msrb.mxu1 %v4558_v0  ;;  %v6294_v16 = vpop.f32.mrf.mxu0  ;;  %v5257_v0 = vld [vmem:[%s6984_s11 + $0x64] sm:$0xf]  ;;  %v1297_v26 = vrot.slane %v1275_v23, 6  ;;  %v1264_v37 = vpop.f32.mrf.mxu1 }
 0x472   :  { %2759 = vmatpush.bf16.msrb.mxu2 %v4562_v2  ;;  %v4623_v2 = vld [vmem:[%s6984_s11 + $0x70] sm:$0xf0] }
 0x473   :  { %v4626_v8 = vor.u32 %v5257_v0, %v4623_v2  ;;  %v1300_v47 = vsel %vm1133_vm6, %v1297_v26, %v1298_v59  ;;  %v4746_v2 = vor.u32 %v5281_v29, %v4743_v15  ;;  %v5276_v59 = vld [vmem:[%s6984_s11 + $0xf4] sm:$0xf0]  ;;  %v1464_v26 = vrot.slane %v5981_v24, 5  ;;  %v4853_v29 = vld [vmem:[%s6984_s11 + $0x1c8] sm:$0xf] }
 0x474   :  { %v1301_v53 = vsel %vm89_vm1, %v1299_v40, %v1300_v47  ;;  %v4695_v40 = vld [vmem:[%s6984_s11 + $0xd0] sm:$0xf0]  ;;  %v4701_v47 = vld [vmem:[%s6984_s11 + $0xc8] sm:$0xf]  ;;  %v5304_v15 = vld [vmem:[%s6984_s11 + $0x1d4] sm:$0xf0] }
 0x475   :  { %2747 = vmatpush.bf16.msrb.mxu1 %v4542_v5  ;;  %v1303_v54 = vadd.f32 %v1301_v53, %v1137_v20  ;;  %v5269_v20 = vld [vmem:[%s6984_s11 + $0xc4] sm:$0xf] }
 0x476   :  { %2760 = vmatpush.bf16.msrb.mxu2 %v4546_v33  ;;  %v6318_v43 = vpop.f32.mrf.mxu3  ;;  %v4614_v33 = vor.u32 %v5256_v52, %v4613_v32  ;;  %v5273_v52 = vld [vmem:[%s6984_s11 + $0xe4] sm:$0xf]  ;;  %v4698_v49 = vor.u32 %v5269_v20, %v4695_v40 }
 0x478   :  { %v1277_v21 = vpop.f32.mrf.mxu2 }
 0x479   :  { %2748 = vmatpush.bf16.msrb.mxu1 %v4526_v63  ;;  %v2778_v5 = vpop.f32.mrf.mxu0  ;;  %v4575_v63 = vld [vmem:[%s6984_s11 + $0x10] sm:$0xf0] }
 0x47a   :  { %2761 = vmatpush.bf16.msrb.mxu2 %v4530_v39  ;;  %v4581_v39 = vld [vmem:[%s6984_s11 + $0x8] sm:$0xf]  ;;  %4859 = vmatmul.msk.bf16.vlgmr.msra.gmra.mxu3 %vm2913_vm3, %v6347_v28  ;;  %v4714_v5 = vor.u32 %v5273_v52, %v4711_v18 }
 0x47b   :  { %4862 = vmatmul.msk.bf16.vlgmr.msra.gmra.mxu0 %vm2913_vm3, %v6347_v28  ;;  %v4582_v0 = vor.u32 %v5248_v22, %v4581_v39  ;;  %v5301_v39 = vld [vmem:[%s6984_s11 + $0x1c4] sm:$0xf]  ;;  %v4821_v18 = vld [vmem:[%s6984_s11 + $0x188] sm:$0xf] }
 0x47d   :  { %2933 = vmatpush.bf16.msra.mxu1 %v4642_v17  ;;  %v1428_v17 = vpop.f32.mrf.mxu1 }
 0x47e   :  { %2946 = vmatpush.bf16.msra.mxu2 %v4646_v30  ;;  %v2739_v46 = vpop.f32.mrf.mxu3  ;;  %v4578_v30 = vor.u32 %v5245_v61, %v4575_v63  ;;  %4568 = vmatmul.msk.bf16.vlgmr.msrb.gmra.mxu1 %vm1057_vm4, %v5985_v48  ;;  %v1462_v44 = vrot.slane %v1428_v17, 7  ;;  %v4685_v61 = vld [vmem:[%s6984_s11 + $0xa8] sm:$0xf]  ;;  %v4854_v17 = vor.u32 %v5304_v15, %v4853_v29 }
 0x47f   :  { %4569 = vmatmul.msk.bf16.vlgmr.msrb.gmra.mxu2 %vm1057_vm4, %v5985_v48  ;;  %v4717_v48 = vld [vmem:[%s6984_s11 + $0xe8] sm:$0xf]  ;;  %v4847_v46 = vld [vmem:[%s6984_s11 + $0x1d0] sm:$0xf0] }
 0x480   :  { %v1441_v23 = vpop.f32.mrf.mxu2  ;;  %v4718_v6 = vor.u32 %v5276_v59, %v4717_v48  ;;  %v4850_v51 = vor.u32 %v5301_v39, %v4847_v46 }
 0x481   :  { %2934 = vmatpush.bf16.msra.mxu1 %v4626_v8  ;;  %v4727_v8 = vld [vmem:[%s6984_s11 + $0x110] sm:$0xf0]  ;;  %v1463_v37 = vrot.slane %v1441_v23, 6  ;;  %v5296_v23 = vld [vmem:[%s6984_s11 + $0x194] sm:$0xf0] }
 0x482   :  { %2947 = vmatpush.bf16.msra.mxu2 %v4630_v27  ;;  %v4733_v27 = vld [vmem:[%s6984_s11 + $0x108] sm:$0xf]  ;;  %v4730_v11 = vor.u32 %v5277_v58, %v4727_v8 }
 0x483   :  { %v4734_v32 = vor.u32 %v5280_v1, %v4733_v27  ;;  %v1466_v10 = vsel %vm1133_vm6, %v1463_v37, %v1464_v26 }
 0x485   :  { %2935 = vmatpush.bf16.msra.mxu1 %v4610_v38  ;;  %v1430_v38 = vpop.f32.mrf.mxu1 }
 0x486   :  { %2948 = vmatpush.bf16.msra.mxu2 %v4614_v33  ;;  %v1465_v33 = vsel %vm441_vm12, %v5996_v62, %v1462_v44  ;;  %v5272_v62 = vld [vmem:[%s6984_s11 + $0xd4] sm:$0xf0]  ;;  %v1629_v44 = vrot.slane %v6001_v3, 5  ;;  %v4822_v3 = vor.u32 %v5296_v23, %v4821_v18  ;;  %v5289_v38 = vld [vmem:[%s6984_s11 + $0x164] sm:$0xf] }
 0x487   :  { %v1467_v24 = vsel %vm89_vm1, %v1465_v33, %v1466_v10  ;;  %v4702_v53 = vor.u32 %v5272_v62, %v4701_v47  ;;  %v5292_v10 = vld [vmem:[%s6984_s11 + $0x174] sm:$0xf0]  ;;  %v4783_v47 = vld [vmem:[%s6984_s11 + $0x150] sm:$0xf0] }
 0x488   :  { %v1469_v41 = vadd.f32 %v1467_v24, %v1303_v54  ;;  %v1443_v63 = vpop.f32.mrf.mxu2  ;;  %v5268_v54 = vld [vmem:[%s6984_s11 + $0xb4] sm:$0xf0]  ;;  %v5285_v24 = vld [vmem:[%s6984_s11 + $0x144] sm:$0xf] }
 0x489   :  { %2936 = vmatpush.bf16.msra.mxu1 %v4594_v35  ;;  %v5265_v35 = vld [vmem:[%s6984_s11 + $0xa4] sm:$0xf]  ;;  %v4686_v56 = vor.u32 %v5268_v54, %v4685_v61  ;;  %v1794_v63 = vrot.slane %v6014_v13, 5 }
 0x48a   :  { %2949 = vmatpush.bf16.msra.mxu2 %v4598_v31  ;;  %v4679_v31 = vld [vmem:[%s6984_s11 + $0xb0] sm:$0xf0] }
 0x48b   :  { %v4682_v21 = vor.u32 %v5265_v35, %v4679_v31 }
 0x48d   :  { %2937 = vmatpush.bf16.msra.mxu1 %v4578_v30  ;;  %v1593_v22 = vpop.f32.mrf.mxu1  ;;  %v5297_v30 = vld [vmem:[%s6984_s11 + $0x1a4] sm:$0xf] }
 0x48e   :  { %2950 = vmatpush.bf16.msra.mxu2 %v4582_v0  ;;  %v4831_v0 = vld [vmem:[%s6984_s11 + $0x1b0] sm:$0xf0]  ;;  %v1627_v58 = vrot.slane %v1593_v22, 7 }
 0x48f   :  { %v4834_v8 = vor.u32 %v5297_v30, %v4831_v0 }
 0x490   :  { %4652 = vmatmul.msk.bf16.vlgmr.msra.gmra.mxu1 %vm2913_vm3, %v6206_v25  ;;  %v1606_v27 = vpop.f32.mrf.mxu2  ;;  %v1630_v48 = vsel %vm441_vm12, %v6008_v55, %v1627_v58  ;;  %v4805_v55 = vld [vmem:[%s6984_s11 + $0x168] sm:$0xf] }
 0x491   :  { %3123 = vmatpush.bf16.msrb.mxu1 %v4746_v2  ;;  %4653 = vmatmul.msk.bf16.vlgmr.msra.gmra.mxu2 %vm2913_vm3, %v6206_v25  ;;  %v4837_v2 = vld [vmem:[%s6984_s11 + $0x1a8] sm:$0xf]  ;;  %v5293_v25 = vld [vmem:[%s6984_s11 + $0x184] sm:$0xf]  ;;  %v4806_v40 = vor.u32 %v5292_v10, %v4805_v55 }
 0x492   :  { %3136 = vmatpush.bf16.msrb.mxu2 %v4750_v12  ;;  %v5300_v12 = vld [vmem:[%s6984_s11 + $0x1b4] sm:$0xf0] }
 0x493   :  { %v4838_v1 = vor.u32 %v5300_v12, %v4837_v2 }
 0x495   :  { %3124 = vmatpush.bf16.msrb.mxu1 %v4730_v11  ;;  %v4815_v11 = vld [vmem:[%s6984_s11 + $0x190] sm:$0xf0]  ;;  %v1595_v52 = vpop.f32.mrf.mxu1 }
 0x496   :  { %3137 = vmatpush.bf16.msrb.mxu2 %v4734_v32  ;;  %v1628_v32 = vrot.slane %v1606_v27, 6  ;;  %v4818_v26 = vor.u32 %v5293_v25, %v4815_v11 }
 0x498   :  { %v1631_v59 = vsel %vm1133_vm6, %v1628_v32, %v1629_v44  ;;  %v1608_v20 = vpop.f32.mrf.mxu2 }
 0x499   :  { %3125 = vmatpush.bf16.msrb.mxu1 %v4714_v5  ;;  %v1632_v37 = vsel %vm89_vm1, %v1630_v48, %v1631_v59  ;;  %v4799_v5 = vld [vmem:[%s6984_s11 + $0x170] sm:$0xf0]  ;;  %v2289_v59 = vrot.slane %v6134_v60, 5  ;;  %v2454_v60 = vrot.slane %v6182_v34, 5 }
 0x49a   :  { %3138 = vmatpush.bf16.msrb.mxu2 %v4718_v6  ;;  %v1634_v33 = vadd.f32 %v1632_v37, %v1469_v41  ;;  %v4802_v6 = vor.u32 %v5289_v38, %v4799_v5  ;;  %v4789_v41 = vld [vmem:[%s6984_s11 + $0x148] sm:$0xf] }
 0x49d   :  { %3126 = vmatpush.bf16.msrb.mxu1 %v4698_v49  ;;  %v1758_v62 = vpop.f32.mrf.mxu1  ;;  %v5288_v49 = vld [vmem:[%s6984_s11 + $0x154] sm:$0xf0] }
 0x49e   :  { %3139 = vmatpush.bf16.msrb.mxu2 %v4702_v53  ;;  %v4786_v53 = vor.u32 %v5285_v24, %v4783_v47  ;;  %v4790_v35 = vor.u32 %v5288_v49, %v4789_v41  ;;  %v1792_v31 = vrot.slane %v1758_v62, 7 }
 0x4a0   :  { %v1771_v61 = vpop.f32.mrf.mxu2  ;;  %v1795_v46 = vsel %vm441_vm12, %v6021_v36, %v1792_v31 }
 0x4a1   :  { %3127 = vmatpush.bf16.msrb.mxu1 %v4682_v21  ;;  %v1793_v54 = vrot.slane %v1771_v61, 6 }
 0x4a2   :  { %3140 = vmatpush.bf16.msrb.mxu2 %v4686_v56 }
 0x4a3   :  { %v1796_v22 = vsel %vm1133_vm6, %v1793_v54, %v1794_v63  ;;  %v6545_v63 = vld [vmem:[%s6986_s13 + $0x1f0] sm:$0x33] }
 0x4a4   :  { %4756 = vmatmul.msk.bf16.vlgmr.msrb.gmra.mxu1 %vm2913_vm3, %v6276_v45  ;;  %v1797_v29 = vsel %vm89_vm1, %v1795_v46, %v1796_v22  ;;  %v3625_v54 = vunpack.c.l.b16 %v6545_v63  ;;  %v5320_v46 = vld [vmem:[%s6986_s13 + $0x74] sm:$0xf0]  ;;  %v4985_v22 = vld [vmem:[%s6986_s13 + $0xf0] sm:$0xf] }
 0x4a5   :  { %3313 = vmatpush.bf16.msra.mxu1 %v4850_v51  ;;  %4757 = vmatmul.msk.bf16.vlgmr.msrb.gmra.mxu2 %vm2913_vm3, %v6276_v45  ;;  %v1760_v39 = vpop.f32.mrf.mxu1  ;;  %v1799_v15 = vadd.f32 %v1797_v29, %v1634_v33  ;;  %v1959_v51 = vrot.slane %v6026_v14, 5 }
 0x4a6   :  { %3326 = vmatpush.bf16.msra.mxu2 %v4854_v17  ;;  %v3689_v29 = vpack.c.b16 %v3625_v54, %v3625_v54 }
 0x4a8   :  { %v1773_v21 = vpop.f32.mrf.mxu2 }
 0x4a9   :  { %3314 = vmatpush.bf16.msra.mxu1 %v4834_v8  ;;  %v5336_v21 = vld [vmem:[%s6986_s13 + $0xf4] sm:$0xf0] }
 0x4aa   :  { %3327 = vmatpush.bf16.msra.mxu2 %v4838_v1 }
 0x4ad   :  { %3315 = vmatpush.bf16.msra.mxu1 %v4818_v26  ;;  %v1923_v56 = vpop.f32.mrf.mxu1 }
 0x4ae   :  { %3328 = vmatpush.bf16.msra.mxu2 %v4822_v3  ;;  %v1957_v45 = vrot.slane %v1923_v56, 7  ;;  %v5049_v56 = vld [vmem:[%s6986_s13 + $0x170] sm:$0xf] }
 0x4b0   :  { %v1936_v13 = vpop.f32.mrf.mxu2  ;;  %v1960_v36 = vsel %vm441_vm12, %v6034_v19, %v1957_v45  ;;  %v5352_v45 = vld [vmem:[%s6986_s13 + $0x174] sm:$0xf0] }
 0x4b1   :  { %3316 = vmatpush.bf16.msra.mxu1 %v4802_v6  ;;  %v1958_v17 = vrot.slane %v1936_v13, 6  ;;  %v4986_v13 = vor.u32 %v5336_v21, %v4985_v22  ;;  %v5362_v22 = vld [vmem:[%s6986_s13 + $0x1c4] sm:$0xf0]  ;;  %v4889_v21 = vld [vmem:[%s6986_s13 + $0x30] sm:$0xf] }
 0x4b2   :  { %3329 = vmatpush.bf16.msra.mxu2 %v4806_v40 }
 0x4b3   :  { %v1961_v0 = vsel %vm1133_vm6, %v1958_v17, %v1959_v51  ;;  %v5050_v51 = vor.u32 %v5352_v45, %v5049_v56  ;;  %v3763_v17 = vsel %vm89_vm1, %v3689_v29, 0  ;;  %v5312_v56 = vld [vmem:[%s6986_s13 + $0x34] sm:$0xf0]  ;;  %v4953_v45 = vld [vmem:[%s6986_s13 + $0xb0] sm:$0xf] }
 0x4b4   :  { %v1962_v2 = vsel %vm89_vm1, %v1960_v36, %v1961_v0  ;;  %3807 = vmatpush.bf16.msrb.mxu0 %v3763_v17  ;;  %v4913_v0 = vld [vmem:[%s6986_s13 + $0x60] sm:$0xf]  ;;  %v5017_v17 = vld [vmem:[%s6986_s13 + $0x130] sm:$0xf] }
 0x4b5   :  { %3317 = vmatpush.bf16.msra.mxu1 %v4786_v53  ;;  %v1925_v30 = vpop.f32.mrf.mxu1  ;;  %v1964_v12 = vadd.f32 %v1962_v2, %v1799_v15  ;;  %v5318_v2 = vld [vmem:[%s6986_s13 + $0x64] sm:$0xf0] }
 0x4b6   :  { %3330 = vmatpush.bf16.msra.mxu2 %v4790_v35 }
 0x4b8   :  { %4860 = vmatmul.msk.bf16.vlgmr.msra.gmra.mxu1 %vm2913_vm3, %v6347_v28  ;;  %v1938_v58 = vpop.f32.mrf.mxu2 }
 0x4b9   :  { %4861 = vmatmul.msk.bf16.vlgmr.msra.gmra.mxu2 %vm2913_vm3, %v6347_v28  ;;  %v2124_v28 = vrot.slane %v6062_v9, 5  ;;  %3781 = vmatpush.bf16.msrb.mxu1 %v4986_v13  ;;  %v2620_v58 = vrot.slane %v6232_v57, 5  ;;  %v5105_v57 = vld [vmem:[%s6986_s13 + $0x1e0] sm:$0xf]  ;;  %v4890_v13 = vor.u32 %v5312_v56, %v4889_v21 }
 0x4ba   :  { %3794 = vmatpush.bf16.msrb.mxu2 %v5050_v51  ;;  %v5328_v51 = vld [vmem:[%s6986_s13 + $0xb4] sm:$0xf0]  ;;  %v5057_v56 = vld [vmem:[%s6986_s13 + $0x180] sm:$0xf] }
 0x4bd   :  { %v2088_v8 = vpop.f32.mrf.mxu1 }
 0x4be   :  { %v2122_v27 = vrot.slane %v2088_v8, 7 }
 0x4c0   :  { %v2101_v1 = vpop.f32.mrf.mxu2  ;;  %v2125_v14 = vsel %vm441_vm12, %v6094_v50, %v2122_v27 }
 0x4c1   :  { %v2123_v25 = vrot.slane %v2101_v1, 6  ;;  %v4914_v1 = vor.u32 %v5318_v2, %v4913_v0  ;;  %v5081_v2 = vld [vmem:[%s6986_s13 + $0x1b0] sm:$0xf] }
 0x4c3   :  { %v2126_v44 = vsel %vm1133_vm6, %v2123_v25, %v2124_v28  ;;  %v5334_v28 = vld [vmem:[%s6986_s13 + $0xe4] sm:$0xf0]  ;;  %v5041_v25 = vld [vmem:[%s6986_s13 + $0x160] sm:$0xf] }
 0x4c4   :  { %v2127_v19 = vsel %vm89_vm1, %v2125_v14, %v2126_v44  ;;  %v5350_v44 = vld [vmem:[%s6986_s13 + $0x164] sm:$0xf0] }
 0x4c5   :  { %v2090_v11 = vpop.f32.mrf.mxu1  ;;  %v2129_v32 = vadd.f32 %v2127_v19, %v1964_v12  ;;  %v4977_v12 = vld [vmem:[%s6986_s13 + $0xe0] sm:$0xf]  ;;  %v5366_v19 = vld [vmem:[%s6986_s13 + $0x1e4] sm:$0xf0] }
 0x4c6   :  { %v4978_v14 = vor.u32 %v5334_v28, %v4977_v12  ;;  %v5360_v12 = vld [vmem:[%s6986_s13 + $0x1b4] sm:$0xf0]  ;;  %v5310_v28 = vld [vmem:[%s6986_s13 + $0x24] sm:$0xf0] }
 0x4c8   :  { %v2103_v52 = vpop.f32.mrf.mxu2  ;;  %3782 = vmatpush.bf16.msrb.mxu1 %v4978_v14 }
 0x4cd   :  { %v2253_v18 = vpop.f32.mrf.mxu1 }
 0x4ce   :  { %v2287_v23 = vrot.slane %v2253_v18, 7  ;;  %v5042_v18 = vor.u32 %v5350_v44, %v5041_v25  ;;  %v4945_v25 = vld [vmem:[%s6986_s13 + $0xa0] sm:$0xf] }
 0x4d0   :  { %v2290_v9 = vsel %vm441_vm12, %v6157_v7, %v2287_v23  ;;  %v5106_v23 = vor.u32 %v5366_v19, %v5105_v57  ;;  %3795 = vmatpush.bf16.msrb.mxu2 %v5042_v18  ;;  %v5326_v19 = vld [vmem:[%s6986_s13 + $0xa4] sm:$0xf0] }
 0x4d1   :  { %v4946_v18 = vor.u32 %v5326_v19, %v4945_v25  ;;  %v4915_v25 = vld [vmem:[%s6986_s13 + $0x68] sm:$0xf0] }
 0x4d2   :  { %v2266_v48 = vpop.f32.mrf.mxu2  ;;  %3808 = vmatpush.bf16.msrb.mxu0 %v5106_v23  ;;  %v5342_v23 = vld [vmem:[%s6986_s13 + $0x124] sm:$0xf0] }
 0x4d3   :  { %v2288_v26 = vrot.slane %v2266_v48, 6 }
 0x4d5   :  { %v2255_v37 = vpop.f32.mrf.mxu1  ;;  %v2291_v3 = vsel %vm1133_vm6, %v2288_v26, %v2289_v59  ;;  %v4905_v26 = vld [vmem:[%s6986_s13 + $0x50] sm:$0xf] }
 0x4d6   :  { %v2292_v50 = vsel %vm89_vm1, %v2290_v9, %v2291_v3  ;;  %v5316_v37 = vld [vmem:[%s6986_s13 + $0x54] sm:$0xf0] }
 0x4d7   :  { %v2294_v5 = vadd.f32 %v2292_v50, %v2129_v32  ;;  %v4906_v3 = vor.u32 %v5316_v37, %v4905_v26  ;;  %v5332_v50 = vld [vmem:[%s6986_s13 + $0xd4] sm:$0xf0] }
 0x4d8   :  { %v6531_v38 = vpop.f32.mrf.mxu0 }
 0x4da   :  { %v2268_v33 = vpop.f32.mrf.mxu2 }
 0x4dd   :  { %v2418_v55 = vpop.f32.mrf.mxu1  ;;  %v6533_v10 = vpop.f32.mrf.mxu3 }
 0x4de   :  { %v2452_v20 = vrot.slane %v2418_v55, 7  ;;  %v5348_v55 = vld [vmem:[%s6986_s13 + $0x154] sm:$0xf0] }
 0x4e0   :  { %v2967_v6 = vpop.f32.mrf.mxu0  ;;  %v2455_v7 = vsel %vm441_vm12, %v6190_v4, %v2452_v20  ;;  %v4921_v4 = vld [vmem:[%s6986_s13 + $0x70] sm:$0xf]  ;;  %v5364_v20 = vld [vmem:[%s6986_s13 + $0x1d4] sm:$0xf0] }
 0x4e1   :  { %v4922_v15 = vor.u32 %v5320_v46, %v4921_v4  ;;  %v5097_v6 = vld [vmem:[%s6986_s13 + $0x1d0] sm:$0xf]  ;;  %v5089_v46 = vld [vmem:[%s6986_s13 + $0x1c0] sm:$0xf] }
 0x4e2   :  { %v2431_v40 = vpop.f32.mrf.mxu2  ;;  %v5090_v29 = vor.u32 %v5362_v22, %v5089_v46  ;;  %v4993_v46 = vld [vmem:[%s6986_s13 + $0x100] sm:$0xf]  ;;  %v5338_v22 = vld [vmem:[%s6986_s13 + $0x104] sm:$0xf0] }
 0x4e3   :  { %v2453_v24 = vrot.slane %v2431_v40, 6  ;;  %3768 = vmatpush.bf16.msrb.mxu3 %v4922_v15  ;;  %v4994_v21 = vor.u32 %v5338_v22, %v4993_v46  ;;  %v5361_v46 = vld [vmem:[%s6986_s13 + $0x1c4] sm:$0xf]  ;;  %v5091_v22 = vld [vmem:[%s6986_s13 + $0x1c8] sm:$0xf0] }
 0x4e5   :  { %v2420_v47 = vpop.f32.mrf.mxu1  ;;  %v2928_v62 = vpop.f32.mrf.mxu3  ;;  %v2456_v41 = vsel %vm1133_vm6, %v2453_v24, %v2454_v60  ;;  %v5098_v60 = vor.u32 %v5364_v20, %v5097_v6  ;;  %v5324_v20 = vld [vmem:[%s6986_s13 + $0x94] sm:$0xf0] }
 0x4e6   :  { %v2457_v49 = vsel %vm89_vm1, %v2455_v7, %v2456_v41  ;;  %v4897_v47 = vld [vmem:[%s6986_s13 + $0x40] sm:$0xf]  ;;  %v5314_v62 = vld [vmem:[%s6986_s13 + $0x44] sm:$0xf0] }
 0x4e7   :  { %v2459_v35 = vadd.f32 %v2457_v49, %v2294_v5  ;;  %3769 = vmatpush.bf16.msrb.mxu3 %v4914_v1  ;;  %v5033_v5 = vld [vmem:[%s6986_s13 + $0x150] sm:$0xf]  ;;  %v4961_v7 = vld [vmem:[%s6986_s13 + $0xc0] sm:$0xf]  ;;  %3809 = vmatpush.bf16.msrb.mxu0 %v5098_v60  ;;  %v4898_v49 = vor.u32 %v5314_v62, %v4897_v47  ;;  %v5340_v60 = vld [vmem:[%s6986_s13 + $0x114] sm:$0xf0] }
 0x4e8   :  { %v6540_v53 = vpop.f32.mrf.mxu0  ;;  %v5034_v40 = vor.u32 %v5348_v55, %v5033_v5  ;;  %v4881_v1 = vld [vmem:[%s6986_s13 + $0x20] sm:$0xf]  ;;  %v4873_v5 = vld [vmem:[%s6986_s13 + $0x10] sm:$0xf]  ;;  %v5356_v62 = vld [vmem:[%s6986_s13 + $0x194] sm:$0xf0] }
 0x4e9   :  { %v4882_v57 = vor.u32 %v5310_v28, %v4881_v1  ;;  %v5317_v28 = vld [vmem:[%s6986_s13 + $0x64] sm:$0xf] }
 0x4ea   :  { %v2433_v31 = vpop.f32.mrf.mxu2  ;;  %3796 = vmatpush.bf16.msrb.mxu2 %v5034_v40  ;;  %v5001_v40 = vld [vmem:[%s6986_s13 + $0x110] sm:$0xf] }
 0x4eb   :  { %3770 = vmatpush.bf16.msrb.mxu3 %v4906_v3  ;;  %v5025_v31 = vld [vmem:[%s6986_s13 + $0x140] sm:$0xf]  ;;  %3810 = vmatpush.bf16.msrb.mxu0 %v5090_v29  ;;  %v5002_v47 = vor.u32 %v5340_v60, %v5001_v40  ;;  %v5035_v60 = vld [vmem:[%s6986_s13 + $0x158] sm:$0xf0] }
 0x4ed   :  { %v2584_v61 = vpop.f32.mrf.mxu1  ;;  %v6547_v34 = vpop.f32.mrf.mxu3 }
 0x4ee   :  { %v2618_v30 = vrot.slane %v2584_v61, 7  ;;  %v5346_v61 = vld [vmem:[%s6986_s13 + $0x144] sm:$0xf0] }
 0x4ef   :  { %v5026_v4 = vor.u32 %v5346_v61, %v5025_v31  ;;  %3771 = vmatpush.bf16.msrb.mxu3 %v4898_v49  ;;  %v5306_v31 = vld [vmem:[%s6986_s13 + $0x4] sm:$0xf0]  ;;  %v4929_v61 = vld [vmem:[%s6986_s13 + $0x80] sm:$0xf] }
 0x4f0   :  { %v3157_v39 = vpop.f32.mrf.mxu0  ;;  %v2621_v32 = vsel %vm441_vm12, %v6256_v42, %v2618_v30  ;;  %v4969_v42 = vld [vmem:[%s6986_s13 + $0xd0] sm:$0xf]  ;;  %v5344_v30 = vld [vmem:[%s6986_s13 + $0x134] sm:$0xf0] }
 0x4f1   :  { %v4970_v33 = vor.u32 %v5332_v50, %v4969_v42  ;;  %3797 = vmatpush.bf16.msrb.mxu2 %v5026_v4  ;;  %v5018_v0 = vor.u32 %v5344_v30, %v5017_v17  ;;  %v4923_v17 = vld [vmem:[%s6986_s13 + $0x78] sm:$0xf0]  ;;  %v5335_v30 = vld [vmem:[%s6986_s13 + $0xf4] sm:$0xf] }
 0x4f2   :  { %v2597_v36 = vpop.f32.mrf.mxu2 }
 0x4f3   :  { %v2619_v8 = vrot.slane %v2597_v36, 6  ;;  %3783 = vmatpush.bf16.msrb.mxu1 %v4970_v33  ;;  %v4954_v36 = vor.u32 %v5328_v51, %v4953_v45  ;;  %3772 = vmatpush.bf16.msrb.mxu3 %v4890_v13  ;;  %v5308_v33 = vld [vmem:[%s6986_s13 + $0x14] sm:$0xf0]  ;;  %v5354_v45 = vld [vmem:[%s6986_s13 + $0x184] sm:$0xf0] }
 0x4f4   :  { %v4874_v6 = vor.u32 %v5308_v33, %v4873_v5  ;;  %v5058_v13 = vor.u32 %v5354_v45, %v5057_v56  ;;  %v5319_v51 = vld [vmem:[%s6986_s13 + $0x74] sm:$0xf]  ;;  %v4891_v45 = vld [vmem:[%s6986_s13 + $0x38] sm:$0xf0] }
 0x4f5   :  { %v2586_v27 = vpop.f32.mrf.mxu1  ;;  %v3118_v11 = vpop.f32.mrf.mxu3  ;;  %v2622_v52 = vsel %vm1133_vm6, %v2619_v8, %v2620_v58  ;;  %v5082_v8 = vor.u32 %v5360_v12, %v5081_v2  ;;  %3798 = vmatpush.bf16.msrb.mxu2 %v5018_v0  ;;  %v4987_v0 = vld [vmem:[%s6986_s13 + $0xf8] sm:$0xf0]  ;;  %v5351_v2 = vld [vmem:[%s6986_s13 + $0x174] sm:$0xf] }
 0x4f6   :  { %v2623_v48 = vsel %vm89_vm1, %v2621_v32, %v2622_v52  ;;  %v2786_v11 = vrot.slane %v6294_v16, 5  ;;  %v5009_v32 = vld [vmem:[%s6986_s13 + $0x120] sm:$0xf]  ;;  %v5051_v12 = vld [vmem:[%s6986_s13 + $0x178] sm:$0xf0] }
 0x4f7   :  { %v6609_v9 = vadd.f32 %v2623_v48, %v2459_v35  ;;  %v5330_v35 = vld [vmem:[%s6986_s13 + $0xc4] sm:$0xf0]  ;;  %3811 = vmatpush.bf16.msrb.mxu0 %v5082_v8  ;;  %v5073_v16 = vld [vmem:[%s6986_s13 + $0x1a0] sm:$0xf]  ;;  %3773 = vmatpush.bf16.msrb.mxu3 %v4882_v57  ;;  %v5010_v42 = vor.u32 %v5342_v23, %v5009_v32  ;;  %v4990_v8 = vor.u32 %v5335_v30, %v4987_v0  ;;  %v5349_v57 = vld [vmem:[%s6986_s13 + $0x164] sm:$0xf] }
 0x4f8   :  { %v6598_v59 = vpop.f32.mrf.mxu0  ;;  %v4962_v39 = vor.u32 %v5330_v35, %v4961_v7  ;;  %v5358_v48 = vld [vmem:[%s6986_s13 + $0x1a4] sm:$0xf0]  ;;  %v4865_v35 = vld [vmem:[%s6986_s13] sm:$0xf]  ;;  %v5043_v32 = vld [vmem:[%s6986_s13 + $0x168] sm:$0xf0] }
 0x4f9   :  { %v5074_v3 = vor.u32 %v5358_v48, %v5073_v16  ;;  %3799 = vmatpush.bf16.msrb.mxu2 %v5010_v42  ;;  %v4866_v4 = vor.u32 %v5306_v31, %v4865_v35  ;;  %v5046_v16 = vor.u32 %v5349_v57, %v5043_v32  ;;  %v5331_v33 = vld [vmem:[%s6986_s13 + $0xd4] sm:$0xf]  ;;  %v5329_v35 = vld [vmem:[%s6986_s13 + $0xc4] sm:$0xf]  ;;  %v4955_v30 = vld [vmem:[%s6986_s13 + $0xb8] sm:$0xf0] }
 0x4fa   :  { %v2599_v24 = vpop.f32.mrf.mxu2  ;;  %3784 = vmatpush.bf16.msrb.mxu1 %v4962_v39  ;;  %v5311_v56 = vld [vmem:[%s6986_s13 + $0x34] sm:$0xf]  ;;  %v5357_v32 = vld [vmem:[%s6986_s13 + $0x1a4] sm:$0xf] }
 0x4fb   :  { %3812 = vmatpush.bf16.msrb.mxu0 %v5074_v3  ;;  %3774 = vmatpush.bf16.msrb.mxu3 %v4874_v6  ;;  %v5315_v3 = vld [vmem:[%s6986_s13 + $0x54] sm:$0xf] }
 0x4fc   :  { %v5343_v0 = vld [vmem:[%s6986_s13 + $0x134] sm:$0xf] }
 0x4fd   :  { %v2750_v41 = vpop.f32.mrf.mxu1  ;;  %v6644_v54 = vpop.f32.mrf.mxu3  ;;  %3800 = vmatpush.bf16.msrb.mxu2 %v5002_v47  ;;  %v5099_v47 = vld [vmem:[%s6986_s13 + $0x1d8] sm:$0xf0] }
 0x4fe   :  { %v2784_v58 = vrot.slane %v2750_v41, 7  ;;  %3785 = vmatpush.bf16.msrb.mxu1 %v4954_v36  ;;  %v3626_v41 = vunpack.c.h.b16 %v6545_v63  ;;  %v5322_v63 = vld [vmem:[%s6986_s13 + $0x84] sm:$0xf0]  ;;  %v4926_v36 = vor.u32 %v5319_v51, %v4923_v17  ;;  %v4894_v51 = vor.u32 %v5311_v56, %v4891_v45  ;;  %v5327_v17 = vld [vmem:[%s6986_s13 + $0xb4] sm:$0xf] }
 0x4ff   :  { %3775 = vmatpush.bf16.msrb.mxu3 %v4866_v4 }
 0x500   :  { %v3347_v15 = vpop.f32.mrf.mxu0  ;;  %v2787_v26 = vsel %vm441_vm12, %v6318_v43, %v2784_v58  ;;  %v4937_v43 = vld [vmem:[%s6986_s13 + $0x90] sm:$0xf]  ;;  %v3690_v29 = vpack.c.b16 %v3626_v41, %v3626_v41  ;;  %v5313_v41 = vld [vmem:[%s6986_s13 + $0x44] sm:$0xf] }
 0x501   :  { %v4938_v24 = vor.u32 %v5324_v20, %v4937_v43  ;;  %v4930_v15 = vor.u32 %v5322_v63, %v4929_v61  ;;  %3801 = vmatpush.bf16.msrb.mxu2 %v4994_v21  ;;  %v5347_v43 = vld [vmem:[%s6986_s13 + $0x154] sm:$0xf]  ;;  %v5345_v61 = vld [vmem:[%s6986_s13 + $0x144] sm:$0xf] }
 0x502   :  { %v2763_v27 = vpop.f32.mrf.mxu2  ;;  %3786 = vmatpush.bf16.msrb.mxu1 %v4946_v18  ;;  %v3766_v1 = vsel %vm89_vm1, %v3690_v29, 0  ;;  %v5107_v18 = vld [vmem:[%s6986_s13 + $0x1e8] sm:$0xf0] }
 0x503   :  { %v2785_v14 = vrot.slane %v2763_v27, 6  ;;  %v5054_v27 = vor.u32 %v5351_v2, %v5051_v12  ;;  %3820 = vmatpush.bf16.msra.mxu3 %v4926_v36  ;;  %v4958_v36 = vor.u32 %v5327_v17, %v4955_v30  ;;  %v5019_v2 = vld [vmem:[%s6986_s13 + $0x138] sm:$0xf0]  ;;  %v5359_v12 = vld [vmem:[%s6986_s13 + $0x1b4] sm:$0xf] }
 0x505   :  { %v2752_v44 = vpop.f32.mrf.mxu1  ;;  %v3308_v52 = vpop.f32.mrf.mxu3  ;;  %v2788_v37 = vsel %vm1133_vm6, %v2785_v14, %v2786_v11  ;;  %v4918_v11 = vor.u32 %v5317_v28, %v4915_v25  ;;  %v5333_v14 = vld [vmem:[%s6986_s13 + $0xe4] sm:$0xf]  ;;  %3846 = vmatpush.bf16.msra.mxu2 %v5054_v27 }
 0x506   :  { %v2789_v50 = vsel %vm89_vm1, %v2787_v26, %v2788_v37  ;;  %3787 = vmatpush.bf16.msrb.mxu1 %v4938_v24  ;;  %v4979_v44 = vld [vmem:[%s6986_s13 + $0xe8] sm:$0xf0]  ;;  %v5365_v52 = vld [vmem:[%s6986_s13 + $0x1e4] sm:$0xf]  ;;  %v2975_v26 = vrot.slane %v6531_v38, 5 }
 0x507   :  { %v6715_v55 = vadd.f32 %v2789_v50, %v6609_v9  ;;  %v5065_v9 = vld [vmem:[%s6986_s13 + $0x190] sm:$0xf]  ;;  %v4982_v19 = vor.u32 %v5333_v14, %v4979_v44  ;;  %v5110_v48 = vor.u32 %v5365_v52, %v5107_v18  ;;  %v4907_v50 = vld [vmem:[%s6986_s13 + $0x58] sm:$0xf0]  ;;  %3821 = vmatpush.bf16.msra.mxu3 %v4918_v11  ;;  %v5363_v24 = vld [vmem:[%s6986_s13 + $0x1d4] sm:$0xf] }
 0x508   :  { %v5066_v7 = vor.u32 %v5356_v62, %v5065_v9  ;;  %v4910_v5 = vor.u32 %v5315_v3, %v4907_v50  ;;  %v4971_v38 = vld [vmem:[%s6986_s13 + $0xd8] sm:$0xf0]  ;;  %v5102_v62 = vor.u32 %v5363_v24, %v5099_v47  ;;  %v5309_v27 = vld [vmem:[%s6986_s13 + $0x24] sm:$0xf]  ;;  %v4947_v14 = vld [vmem:[%s6986_s13 + $0xa8] sm:$0xf0] }
 0x509   :  { %3847 = vmatpush.bf16.msra.mxu2 %v5046_v16  ;;  %v4974_v40 = vor.u32 %v5331_v33, %v4971_v38  ;;  %v5325_v11 = vld [vmem:[%s6986_s13 + $0xa4] sm:$0xf]  ;;  %v5075_v52 = vld [vmem:[%s6986_s13 + $0x1a8] sm:$0xf0]  ;;  %v5339_v33 = vld [vmem:[%s6986_s13 + $0x114] sm:$0xf] }
 0x50a   :  { %v2765_v49 = vpop.f32.mrf.mxu2  ;;  %3813 = vmatpush.bf16.msrb.mxu0 %v5066_v7  ;;  %3788 = vmatpush.bf16.msrb.mxu1 %v4930_v15  ;;  %v5094_v15 = vor.u32 %v5361_v46, %v5091_v22  ;;  %v5341_v44 = vld [vmem:[%s6986_s13 + $0x124] sm:$0xf]  ;;  %v4950_v57 = vor.u32 %v5325_v11, %v4947_v14  ;;  %v5078_v16 = vor.u32 %v5357_v32, %v5075_v52  ;;  %v4867_v47 = vld [vmem:[%s6986_s13 + $0x8] sm:$0xf0] }
 0x50b   :  { %v4899_v49 = vld [vmem:[%s6986_s13 + $0x48] sm:$0xf0]  ;;  %3822 = vmatpush.bf16.msra.mxu3 %v4910_v5  ;;  %v4939_v5 = vld [vmem:[%s6986_s13 + $0x98] sm:$0xf0]  ;;  %v5305_v24 = vld [vmem:[%s6986_s13 + $0x4] sm:$0xf] }
 0x50c   :  { %v4902_v31 = vor.u32 %v5313_v41, %v4899_v49  ;;  %v4931_v41 = vld [vmem:[%s6986_s13 + $0x88] sm:$0xf0]  ;;  %v5337_v49 = vld [vmem:[%s6986_s13 + $0x104] sm:$0xf] }
 0x50d   :  { %v2939_v39 = vpop.f32.mrf.mxu1 }
 0x50e   :  { %v2973_v58 = vrot.slane %v2939_v39, 7  ;;  %3814 = vmatpush.bf16.msrb.mxu0 %v5058_v13  ;;  %3833 = vmatpush.bf16.msra.mxu1 %v4990_v8  ;;  %v5027_v39 = vld [vmem:[%s6986_s13 + $0x148] sm:$0xf0]  ;;  %v5083_v8 = vld [vmem:[%s6986_s13 + $0x1b8] sm:$0xf0] }
 0x50f   :  { %v5030_v63 = vor.u32 %v5345_v61, %v5027_v39  ;;  %3823 = vmatpush.bf16.msra.mxu3 %v4902_v31  ;;  %v5086_v28 = vor.u32 %v5359_v12, %v5083_v8  ;;  %v5059_v61 = vld [vmem:[%s6986_s13 + $0x188] sm:$0xf0]  ;;  %v4870_v39 = vor.u32 %v5305_v24, %v4867_v47 }
 0x510   :  { %v2976_v6 = vsel %vm441_vm12, %v6533_v10, %v2973_v58  ;;  %v5038_v10 = vor.u32 %v5347_v43, %v5035_v60  ;;  %v5022_v58 = vor.u32 %v5343_v0, %v5019_v2 }
 0x512   :  { %3859 = vmatpush.bf16.msra.mxu0 %v3766_v1  ;;  %3834 = vmatpush.bf16.msra.mxu1 %v4982_v19  ;;  %v4883_v1 = vld [vmem:[%s6986_s13 + $0x28] sm:$0xf0] }
 0x513   :  { %3848 = vmatpush.bf16.msra.mxu2 %v5038_v10  ;;  %3824 = vmatpush.bf16.msra.mxu3 %v4894_v51  ;;  %v4886_v25 = vor.u32 %v5309_v27, %v4883_v1  ;;  %v5011_v19 = vld [vmem:[%s6986_s13 + $0x128] sm:$0xf0] }
 0x514   :  { %v2952_v23 = vpop.f32.mrf.mxu2 }
 0x515   :  { %v2974_v37 = vrot.slane %v2952_v23, 6  ;;  %v2941_v42 = vpop.f32.mrf.mxu1  ;;  %v5014_v23 = vor.u32 %v5341_v44, %v5011_v19 }
 0x516   :  { %3860 = vmatpush.bf16.msra.mxu0 %v5110_v48  ;;  %3835 = vmatpush.bf16.msra.mxu1 %v4974_v40  ;;  %v5307_v48 = vld [vmem:[%s6986_s13 + $0x14] sm:$0xf]  ;;  %v3165_v42 = vrot.slane %v6540_v53, 5 }
 0x517   :  { %v2977_v20 = vsel %vm1133_vm6, %v2974_v37, %v2975_v26  ;;  %3849 = vmatpush.bf16.msra.mxu2 %v5030_v63  ;;  %v4875_v26 = vld [vmem:[%s6986_s13 + $0x18] sm:$0xf0]  ;;  %v5323_v37 = vld [vmem:[%s6986_s13 + $0x94] sm:$0xf]  ;;  %3825 = vmatpush.bf16.msra.mxu3 %v4886_v25  ;;  %v3437_v25 = vld [vmem:[%s6987_s14] sm:$0x3] }
 0x518   :  { %v2978_v9 = vsel %vm89_vm1, %v2976_v6, %v2977_v20  ;;  %v4878_v43 = vor.u32 %v5307_v48, %v4875_v26  ;;  %v5003_v6 = vld [vmem:[%s6986_s13 + $0x118] sm:$0xf0]  ;;  %v5355_v53 = vld [vmem:[%s6986_s13 + $0x194] sm:$0xf]  ;;  %v4942_v60 = vor.u32 %v5323_v37, %v4939_v5  ;;  %v3755_v26 = vperm.slane %v3437_v25, 1  ;;  %s5436_s14 = smov [#allocation6]  }
 0x519   :  { %v6830_v7 = vadd.f32 %v2978_v9, %v6715_v55  ;;  %v4963_v55 = vld [vmem:[%s6986_s13 + $0xc8] sm:$0xf0]  ;;  %v5067_v20 = vld [vmem:[%s6986_s13 + $0x198] sm:$0xf0]  ;;  %v5321_v9 = vld [vmem:[%s6986_s13 + $0x84] sm:$0xf] }
 0x51a   :  { %3861 = vmatpush.bf16.msra.mxu0 %v5102_v62  ;;  %v4966_v4 = vor.u32 %v5329_v35, %v4963_v55  ;;  %v5070_v62 = vor.u32 %v5355_v53, %v5067_v20  ;;  %v4995_v35 = vld [vmem:[%s6986_s13 + $0x108] sm:$0xf0]  ;;  %v5353_v55 = vld [vmem:[%s6986_s13 + $0x184] sm:$0xf] }
 0x51b   :  { %3850 = vmatpush.bf16.msra.mxu2 %v5022_v58  ;;  %3826 = vmatpush.bf16.msra.mxu3 %v4878_v43  ;;  %v4998_v63 = vor.u32 %v5337_v49, %v4995_v35  ;;  %v5062_v22 = vor.u32 %v5353_v55, %v5059_v61  ;;  %v3886_v49 = vld [vmem:[#allocation2] sm:$0x1] }
 0x51c   :  { %v2954_v29 = vpop.f32.mrf.mxu2  ;;  %3836 = vmatpush.bf16.msra.mxu1 %v4966_v4  ;;  %v4934_v4 = vor.u32 %v5321_v9, %v4931_v41 }
 0x51e   :  { %3862 = vmatpush.bf16.msra.mxu0 %v5094_v15 }
 0x51f   :  { %3851 = vmatpush.bf16.msra.mxu2 %v5014_v23  ;;  %3827 = vmatpush.bf16.msra.mxu3 %v4870_v39 }
 0x520   :  { %3837 = vmatpush.bf16.msra.mxu1 %v4958_v36 }
 0x521   :  { %v3129_v21 = vpop.f32.mrf.mxu1 }
 0x522   :  { %v3163_v13 = vrot.slane %v3129_v21, 7  ;;  %3863 = vmatpush.bf16.msra.mxu0 %v5086_v28  ;;  %v3355_v21 = vrot.slane %v6598_v59, 5 }
 0x524   :  { %v3166_v38 = vsel %vm441_vm12, %v6547_v34, %v3163_v13  ;;  %3838 = vmatpush.bf16.msra.mxu1 %v4950_v57  ;;  %v5006_v34 = vor.u32 %v5339_v33, %v5003_v6  ;;  %v3754_v57 = vperm.slane %v3437_v25, 0 }
 0x526   :  { %3864 = vmatpush.bf16.msra.mxu0 %v5078_v16  ;;  %3852 = vmatpush.bf16.msra.mxu2 %v5006_v34 }
 0x528   :  { %v3142_v18 = vpop.f32.mrf.mxu2  ;;  %3839 = vmatpush.bf16.msra.mxu1 %v4942_v60 }
 0x529   :  { %v3164_v3 = vrot.slane %v3142_v18, 6  ;;  %v3131_v50 = vpop.f32.mrf.mxu1 }
 0x52a   :  { %3865 = vmatpush.bf16.msra.mxu0 %v5070_v62  ;;  %3853 = vmatpush.bf16.msra.mxu2 %v4998_v63 }
 0x52b   :  { %v3167_v40 = vsel %vm1133_vm6, %v3164_v3, %v3165_v42  ;;  %v3872_v3 = vld [vmem:[%s6988_s15] sm:$0x3]  ;;  %s3914_s15 = sshll.u32 %s5436_s14, 4  ;;  %s3915_s15 = int_to_ptr.vmem [resolvable:$true] %s3914_s15 }
 0x52c   :  { %v3168_v10 = vsel %vm89_vm1, %v3166_v38, %v3167_v40  ;;  %3840 = vmatpush.bf16.msra.mxu1 %v4934_v4  ;;  %v3874_v53 = vperm.slane %v3872_v3, 0  ;;  %v3875_v40 = vperm.slane %v3872_v3, 1 }
 0x52d   :  { %v3170_v31 = vadd.f32 %v3168_v10, %v6830_v7 }
 0x52e   :  { %3866 = vmatpush.bf16.msra.mxu0 %v5062_v22 }
 0x530   :  { %v3144_v46 = vpop.f32.mrf.mxu2 }
 0x535   :  { %v3319_v29 = vpop.f32.mrf.mxu1 }
 0x536   :  { %v3353_v7 = vrot.slane %v3319_v29, 7 }
 0x538   :  { %v3356_v13 = vsel %vm441_vm12, %v6644_v54, %v3353_v7 }
 0x53c   :  { %v3332_v15 = vpop.f32.mrf.mxu2 }
 0x53d   :  { %v3354_v56 = vrot.slane %v3332_v15, 6  ;;  %v3321_v45 = vpop.f32.mrf.mxu1 }
 0x53f   :  { %v3357_v51 = vsel %vm1133_vm6, %v3354_v56, %v3355_v21 }
 0x540   :  { %v3358_v17 = vsel %vm89_vm1, %v3356_v13, %v3357_v51  ;;  %vm3881_vm1 = vcmask 581632  }
 0x541   :  { %v3360_v30 = vadd.f32 %v3358_v17, %v3170_v31 }
 0x543   :  { %v3365_v36 = vperm.slane %v3360_v30, 3  ;;  %v3362_v0 = vperm.slane %v3360_v30, 0  ;;  %v3363_v2 = vperm.slane %v3360_v30, 1  ;;  %v3364_v12 = vperm.slane %v3360_v30, 2 }
 0x544   :  { %v3334_v58 = vpop.f32.mrf.mxu2 }
 0x545   :  { %v3373_v8 = vpack.c.bf16 %v3365_v36, %v3365_v36  ;;  %v3370_v27 = vpack.c.bf16 %v3362_v0, %v3362_v0  ;;  %v3371_v1 = vpack.c.bf16 %v3363_v2, %v3363_v2  ;;  %v3372_v59 = vpack.c.bf16 %v3364_v12, %v3364_v12 }
 0x547   :  { %3776 = vmatmul.bf16.vlgmr.msrb.gmra.mxu3 %v3370_v27  ;;  %3789 = vmatmul.bf16.vlgmr.msrb.gmra.mxu1 %v3371_v1 }
 0x548   :  { %3802 = vmatmul.bf16.vlgmr.msrb.gmra.mxu2 %v3372_v59  ;;  %5111 = vmatmul.msk.bf16.vlgmr.msrb.gmra.mxu0 %vm3758_vm7, %v3373_v8 }
 0x557   :  { %3828 = vmatmul.bf16.vlgmr.msra.gmra.mxu3 %v3370_v27  ;;  %3841 = vmatmul.bf16.vlgmr.msra.gmra.mxu1 %v3371_v1 }
 0x558   :  { %3854 = vmatmul.bf16.vlgmr.msra.gmra.mxu2 %v3372_v59  ;;  %5112 = vmatmul.msk.bf16.vlgmr.msra.gmra.mxu0 %vm3758_vm7, %v3373_v8 }
 0x5c4   :  { %v3790_v54 = vpop.f32.mrf.mxu1 }
 0x5c5   :  { %v3816_v28 = vpop.f32.mrf.mxu0 }
 0x5ca   :  { %v3777_v11 = vpop.f32.mrf.mxu3 }
 0x5cb   :  { %v3803_v14 = vpop.f32.mrf.mxu2  ;;  %v3778_v32 = vadd.f32 %v3777_v11, %v3754_v57 }
 0x5cc   :  { %v3792_v44 = vpop.f32.mrf.mxu1 }
 0x5cd   :  { %v3818_v19 = vpop.f32.mrf.mxu0  ;;  %v3791_v16 = vadd.f32 %v3790_v54, %v3778_v32 }
 0x5cf   :  { %v3804_v37 = vadd.f32 %v3803_v14, %v3791_v16 }
 0x5d1   :  { %v3817_v38 = vadd.f32 %v3816_v28, %v3804_v37 }
 0x5d2   :  { %v3779_v52 = vpop.f32.mrf.mxu3 }
 0x5d3   :  { %v3805_v18 = vpop.f32.mrf.mxu2  ;;  %v3878_v34 = vmul.f32 %v3874_v53, %v3817_v38 }
 0x5d4   :  { %v3842_v23 = vpop.f32.mrf.mxu1 }
 0x5d5   :  { %v3868_v48 = vpop.f32.mrf.mxu0  ;;  %v3880_v10 = vsel %vm441_vm12, %v3878_v34, 0.0 }
 0x5da   :  { %v3829_v42 = vpop.f32.mrf.mxu3 }
 0x5db   :  { %v3830_v50 = vadd.f32 %v3829_v42, %v3755_v26  ;;  %v3855_v5 = vpop.f32.mrf.mxu2 }
 0x5dc   :  { %v3844_v33 = vpop.f32.mrf.mxu1 }
 0x5dd   :  { %v3843_v43 = vadd.f32 %v3842_v23, %v3830_v50  ;;  %v3870_v6 = vpop.f32.mrf.mxu0 }
 0x5df   :  { %v3856_v20 = vadd.f32 %v3855_v5, %v3843_v43 }
 0x5e1   :  { %v3869_v60 = vadd.f32 %v3868_v48, %v3856_v20 }
 0x5e2   :  { %v3831_v24 = vpop.f32.mrf.mxu3 }
 0x5e3   :  { %v3857_v47 = vpop.f32.mrf.mxu2  ;;  %v3879_v9 = vmul.f32 %v3875_v40, %v3869_v60 }
 0x5e5   :  { %v3882_v62 = vsel %vm3881_vm1, %v3879_v9, 0.0 }
 0x5e6   :  { %v3883_v41 = vadd.f32 %v3882_v62, %v3880_v10 }
 0x5e8   :  { %3884 = vadd.xlane.f32.xlu0 %v3883_v41 }
 0x65b   :  { %v3885_v35 = vpop.xlane.xlu0 %3884 }
 0x65c   :  { %v3887_v31 = vadd.f32 %v3886_v49, %v3885_v35 }
 0x65e   :  { %v3888_v55 = vsub.f32 0.0, %v3887_v31 }
 0x660   :  { %v3889_v61 = vmul.f32 1.442695, %v3888_v55 }
 0x662   :  { %5376 = vpow2.f32 %v3889_v61 }
 0x668   :  { %v5377_v39 = vpop.eup %5376 }
 0x669   :  { %v3891_v4 = vadd.f32 1.0, %v5377_v39 }
 0x66b   :  { %5378 = vrcp.f32 %v3891_v4  ;;  %v3903_v29 = vand.u32 2147483648, %v3891_v4  ;;  %v3901_v15 = vand.u32 2147483647, %v3891_v4  ;;  %vm3897_vm9 = vweird.f32 %v3891_v4 }
 0x66d   :  { %v3904_v56 = vor.u32 1.1754944e-38, %v3903_v29  ;;  %vm3902_vm12 = vcmp.eq.f32.partialorder %v3901_v15, 8.507059e+37 }
 0x671   :  { %v5379_v63 = vpop.eup %5378 }
 0x672   :  { %v3893_v46 = vmul.f32 %v5379_v63, %v3891_v4  ;;  %vm3898_vm8 = vweird.f32 %v5379_v63 }
 0x673   :  { %vm3899_vm10 = vmor %vm3897_vm9, %vm3898_vm8 }
 0x674   :  { %v3894_v22 = vsub.f32 1.0, %v3893_v46 }
 0x676   :  { %v3895_v7 = vmul.f32 %v5379_v63, %v3894_v22 }
 0x678   :  { %v3896_v21 = vadd.f32 %v5379_v63, %v3895_v7 }
 0x67a   :  { %v3900_v45 = vsel %vm3899_vm10, %v5379_v63, %v3896_v21 }
 0x67b   :  { %v3905_v13 = vsel %vm3902_vm12, %v3904_v56, %v3900_v45 }
 0x67c   :  { %3908 = vst.msk [vmem:[#allocation6] sm:$0x1] %vm3907_vm11, %v3905_v13 }
 0x67d   :  { %3919 = dma.vmem_to_hbm [thread:$0]  %s3915_s15, 16, %s3917_s10, [#allocation5]  }
 0x67e   :  { %5430 = dma.done.wait [#allocation5], 16  }
 0x67f   :  { %5431 = vsyncadd [#allocation5], 4294967280 }
 0x680   :  { %3924 = vsyncpa [#allocation4], 1 }
 0x681   :  { %3925 = vsyncpa [#allocation5], 1 }

</bundles_post_ra>
